<compile_context>
chip_gen: v5e
topology: v5e:2x2
jax: 0.10.0
libtpu: 0.0.40
codegen_flags: <defaults>
</compile_context>

<pallas_src>
import math
from functools import partial

import jax
import jax.numpy as jnp
import numpy as np
from jax import lax
from jax.experimental import pallas as pl
from jax.experimental.pallas import tpu as pltpu


def _round_up(x, m):
    return ((x + m - 1) // m) * m


def _prep_layer(w_ih, w_hh, b_ih, b_hh, din_pad, P):
    """Fused, gate-padded weights for one GRU layer (PyTorch gate order r, z, n).

    w_ih: (3H, Din), w_hh: (3H, H), b_ih/b_hh: (3H,)
    Returns:
      wi (din_pad, 3P) bf16, wh (P, 3P) bf16, bi (1, 3P) f32, bh_n (1, P) f32.
      Gate g lives in lanes [g*P, g*P + H); other lanes are zero.
      bi holds b_ir+b_hr | b_iz+b_hz | b_in; bh_n holds b_hn only (n slab),
      so n = tanh(W_in x + b_in + r*(W_hn h + b_hn)) is exact.
    """
    H = w_hh.shape[1]
    Din = w_ih.shape[1]
    wi = jnp.zeros((din_pad, 3 * P), jnp.float32)
    wh = jnp.zeros((P, 3 * P), jnp.float32)
    bi = jnp.zeros((1, 3 * P), jnp.float32)
    bhn = jnp.zeros((1, P), jnp.float32)
    for g in range(3):                                   # r, z, n
        wi = wi.at[:Din, g * P:g * P + H].set(w_ih[g * H:(g + 1) * H, :].T)
        wh = wh.at[:H, g * P:g * P + H].set(w_hh[g * H:(g + 1) * H, :].T)
    bi = bi.at[0, 0:H].set(b_ih[0:H] + b_hh[0:H])                      # r
    bi = bi.at[0, P:P + H].set(b_ih[H:2 * H] + b_hh[H:2 * H])          # z
    bi = bi.at[0, 2 * P:2 * P + H].set(b_ih[2 * H:3 * H])              # n (input bias)
    bhn = bhn.at[0, 0:H].set(b_hh[2 * H:3 * H])                        # n (hidden bias)
    return wi.astype(jnp.bfloat16), wh.astype(jnp.bfloat16), bi, bhn


def _encoder_kernel(x_ref,
                    wi1_ref, wh1_ref, bi1_ref, bh1_ref,
                    wi2_ref, wh2_ref, bi2_ref, bh2_ref,
                    out_ref,
                    h1_ref, h2_ref,
                    *, batch, steps):
    """One grid step == one chunk of `steps` timesteps for the whole batch."""
    B = batch
    U = steps
    P1 = wh1_ref.shape[0]
    P2 = wh2_ref.shape[0]

    # h1/h2 live in VMEM scratch across grid steps; zero them on the first chunk.
    @pl.when(pl.program_id(0) == 0)
    def _():
        h1_ref[...] = jnp.zeros_like(h1_ref)
        h2_ref[...] = jnp.zeros_like(h2_ref)

    # --- Chunk prologue: layer-1 input projection for all U timesteps at once ---
    # (U*B, F) x (F, 3*P1) bf16 matmul, f32 accumulation, r/z/n biases fused in.
    x_chunk = x_ref[...].astype(jnp.bfloat16)
    gi1_chunk = (jnp.dot(x_chunk, wi1_ref[...],
                         preferred_element_type=jnp.float32)
                 + bi1_ref[...])                                   # (U*B, 3*P1) f32

    # Hoist the small bias broadcasts once per chunk.
    bh1n = jnp.broadcast_to(bh1_ref[...], (B, P1))
    bi2 = jnp.broadcast_to(bi2_ref[...], (B, 3 * P2))
    bh2n = jnp.broadcast_to(bh2_ref[...], (B, P2))

    h1 = h1_ref[...]
    h2 = h2_ref[...]

    outs = []
    for u in range(U):                       # bounded unroll over the chunk
        # ---- layer 1 (recurrent part only; input projection precomputed) ----
        gi1 = gi1_chunk[u * B:(u + 1) * B, :]                      # (B, 3*P1)
        gh1 = jnp.dot(h1.astype(jnp.bfloat16), wh1_ref[...],
                      preferred_element_type=jnp.float32)          # (B, 3*P1)
        r1 = jax.nn.sigmoid(gi1[:, 0:P1] + gh1[:, 0:P1])
        z1 = jax.nn.sigmoid(gi1[:, P1:2 * P1] + gh1[:, P1:2 * P1])
        n1 = jnp.tanh(gi1[:, 2 * P1:] + r1 * (gh1[:, 2 * P1:] + bh1n))
        h1 = n1 + z1 * (h1 - n1)                                   # == (1-z)*n + z*h

        # ---- layer 2 ----
        h1_b = h1.astype(jnp.bfloat16)
        gi2 = jnp.dot(h1_b, wi2_ref[...],
                      preferred_element_type=jnp.float32) + bi2    # (B, 3*P2)
        gh2 = jnp.dot(h2.astype(jnp.bfloat16), wh2_ref[...],
                      preferred_element_type=jnp.float32)
        r2 = jax.nn.sigmoid(gi2[:, 0:P2] + gh2[:, 0:P2])
        z2 = jax.nn.sigmoid(gi2[:, P2:2 * P2] + gh2[:, P2:2 * P2])
        n2 = jnp.tanh(gi2[:, 2 * P2:] + r2 * (gh2[:, 2 * P2:] + bh2n))
        h2 = n2 + z2 * (h2 - n2)
        outs.append(h2)

    # Single aligned, lane+sublane-dense store of the whole chunk's output.
    out_ref[...] = jnp.concatenate(outs, axis=0)                   # (U*B, P2)
    h1_ref[...] = h1
    h2_ref[...] = h2


def encoder_forward(x, params, *, target_chunk=16):
    """x: (B, T, F) float32. Returns (B, T, embedding_dim) like PyTorch Encoder.forward."""
    B, T, F = x.shape
    wih1, whh1, bih1, bhh1, wih2, whh2, bih2, bhh2 = params
    H1 = whh1.shape[1]                  # hidden_dim   (PyTorch W_hh is (3H, H))
    H2 = whh2.shape[1]                  # embedding_dim
    P1 = _round_up(H1, 128)             # lane-aligned gate slab widths
    P2 = _round_up(H2, 128)

    wi1, wh1, bi1, bh1n = _prep_layer(wih1, whh1, bih1, bhh1, F, P1)
    wi2, wh2, bi2, bh2n = _prep_layer(wih2, whh2, bih2, bhh2, P1, P2)

    # Timesteps per grid step: chunk*B must be a multiple of 8 sublanes; cap the
    # in-kernel unroll around `target_chunk` timesteps.
    u_base = 8 // math.gcd(8, B)
    chunk = u_base
    while chunk * 2 <= max(u_base, min(T, target_chunk)):
        chunk *= 2
    Tpad = _round_up(T, chunk)
    n_chunks = Tpad // chunk

    # Dense 2D time-major layout: row t*B + b.
    x_tm = jnp.transpose(x, (1, 0, 2)).astype(jnp.float32)          # (T, B, F)
    if Tpad != T:
        x_tm = jnp.pad(x_tm, ((0, Tpad - T), (0, 0), (0, 0)))
    x2d = x_tm.reshape(Tpad * B, F)

    kernel = partial(_encoder_kernel, batch=B, steps=chunk)

    flops = (2 * Tpad * B * F * 3 * P1
             + Tpad * 2 * B * (P1 * 3 * P1 + P1 * 3 * P2 + P2 * 3 * P2))
    transcendentals = Tpad * B * 3 * (P1 + P2)
    bytes_accessed = (x2d.size * 4 + Tpad * B * P2 * 4
                      + (wi1.size + wh1.size + wi2.size + wh2.size) * 2
                      + (bi1.size + bh1n.size + bi2.size + bh2n.size) * 4)

    out2d = pl.pallas_call(
        kernel,
        out_shape=jax.ShapeDtypeStruct((Tpad * B, P2), jnp.float32),
        grid_spec=pltpu.PrefetchScalarGridSpec(
            num_scalar_prefetch=0,
            grid=(n_chunks,),
            in_specs=[
                pl.BlockSpec((chunk * B, F), lambda c: (c, 0)),     # x chunk (pipelined)
                pl.BlockSpec((F, 3 * P1), lambda c: (0, 0)),        # wi1 (resident)
                pl.BlockSpec((P1, 3 * P1), lambda c: (0, 0)),       # wh1
                pl.BlockSpec((1, 3 * P1), lambda c: (0, 0)),        # bi1
                pl.BlockSpec((1, P1), lambda c: (0, 0)),            # bh1 (n slab)
                pl.BlockSpec((P1, 3 * P2), lambda c: (0, 0)),       # wi2
                pl.BlockSpec((P2, 3 * P2), lambda c: (0, 0)),       # wh2
                pl.BlockSpec((1, 3 * P2), lambda c: (0, 0)),        # bi2
                pl.BlockSpec((1, P2), lambda c: (0, 0)),            # bh2 (n slab)
            ],
            out_specs=pl.BlockSpec((chunk * B, P2), lambda c: (c, 0)),
            scratch_shapes=[pltpu.VMEM((B, P1), jnp.float32),       # h1 carry
                            pltpu.VMEM((B, P2), jnp.float32)],      # h2 carry
        ),
        compiler_params=pltpu.CompilerParams(
            dimension_semantics=("arbitrary",),                     # sequential recurrence
            vmem_limit_bytes=32 * 1024 * 1024,
        ),
        cost_estimate=pl.CostEstimate(flops=flops,
                                      transcendentals=transcendentals,
                                      bytes_accessed=bytes_accessed),
    )(x2d, wi1, wh1, bi1, bh1n, wi2, wh2, bi2, bh2n)

    out_tm = out2d.reshape(Tpad, B, P2)[:T, :, :H2]                 # drop pad lanes/steps
    return jnp.transpose(out_tm, (1, 0, 2))                         # (B, T, embedding_dim)


def encoder_reference(x, params):
    """Pure-JAX f32 reference of the 2-layer GRU encoder (PyTorch semantics)."""
    wih1, whh1, bih1, bhh1, wih2, whh2, bih2, bhh2 = params
    B = x.shape[0]
    H1 = whh1.shape[1]
    H2 = whh2.shape[1]

    def cell(x_t, h, wih, whh, bih, bhh, H):
        gi = jnp.dot(x_t, wih.T, precision=lax.Precision.HIGHEST) + bih
        gh = jnp.dot(h, whh.T, precision=lax.Precision.HIGHEST) + bhh
        r = jax.nn.sigmoid(gi[:, :H] + gh[:, :H])
        z = jax.nn.sigmoid(gi[:, H:2 * H] + gh[:, H:2 * H])
        n = jnp.tanh(gi[:, 2 * H:] + r * gh[:, 2 * H:])
        return (1.0 - z) * n + z * h

    def step(carry, x_t):
        h1, h2 = carry
        h1 = cell(x_t, h1, wih1, whh1, bih1, bhh1, H1)
        h2 = cell(h1, h2, wih2, whh2, bih2, bhh2, H2)
        return (h1, h2), h2

    x_tm = jnp.transpose(x, (1, 0, 2))
    init = (jnp.zeros((B, H1), jnp.float32), jnp.zeros((B, H2), jnp.float32))
    _, out_tm = lax.scan(step, init, x_tm)
    return jnp.transpose(out_tm, (1, 0, 2))


def init_params(key, n_features, hidden_dim, embedding_dim):
    """Deterministic PyTorch-style GRU init: U(-1/sqrt(H), 1/sqrt(H))."""
    ks = jax.random.split(key, 8)

    def u(k, shape, H):
        lim = 1.0 / np.sqrt(H)
        return jax.random.uniform(k, shape, jnp.float32, -lim, lim)

    H1, H2 = hidden_dim, embedding_dim
    wih1 = u(ks[0], (3 * H1, n_features), H1)
    whh1 = u(ks[1], (3 * H1, H1), H1)
    bih1 = u(ks[2], (3 * H1,), H1)
    bhh1 = u(ks[3], (3 * H1,), H1)
    wih2 = u(ks[4], (3 * H2, H1), H2)
    whh2 = u(ks[5], (3 * H2, H2), H2)
    bih2 = u(ks[6], (3 * H2,), H2)
    bhh2 = u(ks[7], (3 * H2,), H2)
    return (wih1, whh1, bih1, bhh1, wih2, whh2, bih2, bhh2)


if __name__ == "__main__":
    batch, seq_len, n_features = 2, 8, 4
    embedding_dim = 32
    hidden_dim = embedding_dim * 2

    key = jax.random.PRNGKey(0)
    k_x, k_p = jax.random.split(key)
    x = jax.random.normal(k_x, (batch, seq_len, n_features), jnp.float32)
    params = init_params(k_p, n_features, hidden_dim, embedding_dim)

    out = jax.jit(encoder_forward)(x, params)
    out = jax.block_until_ready(out)

    ref = encoder_reference(x, params)
    # bf16 matmul operands (f32 accumulation) vs f32 HIGHEST reference.
    np.testing.assert_allclose(np.asarray(out), np.asarray(ref), rtol=2.5e-2, atol=2.5e-2)
    assert out.shape == (batch, seq_len, embedding_dim)

    print("KERNEL_OK")
</pallas_src>

<mosaic_0001>
module attributes {stable_mosaic.version = 11 : i64} {
  func.func @_encoder_kernel(%arg0: i32, %arg1: memref<16x4xf32, #tpu.memory_space<vmem>>, %arg2: memref<4x384xbf16, #tpu.memory_space<vmem>>, %arg3: memref<128x384xbf16, #tpu.memory_space<vmem>>, %arg4: memref<1x384xf32, #tpu.memory_space<vmem>>, %arg5: memref<1x128xf32, #tpu.memory_space<vmem>>, %arg6: memref<128x384xbf16, #tpu.memory_space<vmem>>, %arg7: memref<128x384xbf16, #tpu.memory_space<vmem>>, %arg8: memref<1x384xf32, #tpu.memory_space<vmem>>, %arg9: memref<1x128xf32, #tpu.memory_space<vmem>>, %arg10: memref<16x128xf32, #tpu.memory_space<vmem>>, %arg11: memref<2x128xf32, #tpu.memory_space<vmem>>, %arg12: memref<2x128xf32, #tpu.memory_space<vmem>>) attributes {dimension_semantics = [#tpu.dimension_semantics<arbitrary>], iteration_bounds = array<i64: 1>, scalar_prefetch = 0 : i64, scratch_operands = 2 : i64, tpu.core_type = #tpu.core_type<tc>, window_params = [{transform_indices = @transform_0, window_bounds = array<i64: 16, 4>}, {pipeline_mode = #tpu.pipeline_mode<synchronous>, transform_indices = @transform_1, window_bounds = array<i64: 4, 384>}, {pipeline_mode = #tpu.pipeline_mode<synchronous>, transform_indices = @transform_2, window_bounds = array<i64: 128, 384>}, {pipeline_mode = #tpu.pipeline_mode<synchronous>, transform_indices = @transform_3, window_bounds = array<i64: 1, 384>}, {pipeline_mode = #tpu.pipeline_mode<synchronous>, transform_indices = @transform_4, window_bounds = array<i64: 1, 128>}, {pipeline_mode = #tpu.pipeline_mode<synchronous>, transform_indices = @transform_5, window_bounds = array<i64: 128, 384>}, {pipeline_mode = #tpu.pipeline_mode<synchronous>, transform_indices = @transform_6, window_bounds = array<i64: 128, 384>}, {pipeline_mode = #tpu.pipeline_mode<synchronous>, transform_indices = @transform_7, window_bounds = array<i64: 1, 384>}, {pipeline_mode = #tpu.pipeline_mode<synchronous>, transform_indices = @transform_8, window_bounds = array<i64: 1, 128>}, {transform_indices = @transform_9, window_bounds = array<i64: 16, 128>}]} {
    %c0_i32 = arith.constant 0 : i32
    %0 = arith.cmpi eq, %arg0, %c0_i32 : i32
    %1 = arith.extui %0 : i1 to i32
    %c0_i32_0 = arith.constant 0 : i32
    %2 = arith.cmpi ne, %1, %c0_i32_0 : i32
    scf.if %2 {
      %cst_126 = arith.constant 0.000000e+00 : f32
      %513 = vector.broadcast %cst_126 : f32 to vector<2x128xf32>
      %c0_127 = arith.constant 0 : index
      %c0_128 = arith.constant 0 : index
      %514 = vector.load %arg11[%c0_127, %c0_128] : memref<2x128xf32, #tpu.memory_space<vmem>>, vector<2x128xf32>
      tpu.vector_store %arg11[%c0_127, %c0_128], %513 {strides = array<i32>} : memref<2x128xf32, #tpu.memory_space<vmem>>, vector<2x128xf32>,
      %cst_129 = arith.constant 0.000000e+00 : f32
      %515 = vector.broadcast %cst_129 : f32 to vector<2x128xf32>
      %c0_130 = arith.constant 0 : index
      %c0_131 = arith.constant 0 : index
      %516 = vector.load %arg12[%c0_130, %c0_131] : memref<2x128xf32, #tpu.memory_space<vmem>>, vector<2x128xf32>
      tpu.vector_store %arg12[%c0_130, %c0_131], %515 {strides = array<i32>} : memref<2x128xf32, #tpu.memory_space<vmem>>, vector<2x128xf32>,
    } else {
    }
    %c0 = arith.constant 0 : index
    %c0_1 = arith.constant 0 : index
    %3 = vector.load %arg1[%c0, %c0_1] : memref<16x4xf32, #tpu.memory_space<vmem>>, vector<16x4xf32>
    %4 = arith.truncf %3 : vector<16x4xf32> to vector<16x4xbf16>
    %c0_2 = arith.constant 0 : index
    %c0_3 = arith.constant 0 : index
    %5 = vector.load %arg2[%c0_2, %c0_3] : memref<4x384xbf16, #tpu.memory_space<vmem>>, vector<4x384xbf16>
    %cst = arith.constant dense<0.000000e+00> : vector<16x384xf32>
    %6 = tpu.matmul %4, %5, %cst {dimension_numbers = #tpu.dot_dimension_numbers<[1], [0], [0], [1], [0, 0, 1, 1], [], []>} : vector<16x4xbf16>, vector<4x384xbf16>, vector<16x384xf32> -> vector<16x384xf32>
    %c0_4 = arith.constant 0 : index
    %c0_5 = arith.constant 0 : index
    %7 = vector.load %arg4[%c0_4, %c0_5] : memref<1x384xf32, #tpu.memory_space<vmem>>, vector<1x384xf32>
    %8 = vector.broadcast %7 : vector<1x384xf32> to vector<16x384xf32>
    %9 = arith.addf %6, %8 : vector<16x384xf32>
    %c0_6 = arith.constant 0 : index
    %c0_7 = arith.constant 0 : index
    %10 = vector.load %arg5[%c0_6, %c0_7] : memref<1x128xf32, #tpu.memory_space<vmem>>, vector<1x128xf32>
    %11 = vector.shape_cast %10 : vector<1x128xf32> to vector<1x128xf32>
    %12 = vector.broadcast %11 : vector<1x128xf32> to vector<2x128xf32>
    %c0_8 = arith.constant 0 : index
    %c0_9 = arith.constant 0 : index
    %13 = vector.load %arg8[%c0_8, %c0_9] : memref<1x384xf32, #tpu.memory_space<vmem>>, vector<1x384xf32>
    %14 = vector.shape_cast %13 : vector<1x384xf32> to vector<1x384xf32>
    %15 = vector.broadcast %14 : vector<1x384xf32> to vector<2x384xf32>
    %c0_10 = arith.constant 0 : index
    %c0_11 = arith.constant 0 : index
    %16 = vector.load %arg9[%c0_10, %c0_11] : memref<1x128xf32, #tpu.memory_space<vmem>>, vector<1x128xf32>
    %17 = vector.shape_cast %16 : vector<1x128xf32> to vector<1x128xf32>
    %18 = vector.broadcast %17 : vector<1x128xf32> to vector<2x128xf32>
    %c0_12 = arith.constant 0 : index
    %c0_13 = arith.constant 0 : index
    %19 = vector.load %arg11[%c0_12, %c0_13] : memref<2x128xf32, #tpu.memory_space<vmem>>, vector<2x128xf32>
    %c0_14 = arith.constant 0 : index
    %c0_15 = arith.constant 0 : index
    %20 = vector.load %arg12[%c0_14, %c0_15] : memref<2x128xf32, #tpu.memory_space<vmem>>, vector<2x128xf32>
    %21 = vector.extract_strided_slice %9 {offsets = [0, 0], sizes = [2, 384], strides = [1, 1]} : vector<16x384xf32> to vector<2x384xf32>
    %22 = arith.truncf %19 : vector<2x128xf32> to vector<2x128xbf16>
    %c0_16 = arith.constant 0 : index
    %c0_17 = arith.constant 0 : index
    %23 = vector.load %arg3[%c0_16, %c0_17] : memref<128x384xbf16, #tpu.memory_space<vmem>>, vector<128x384xbf16>
    %cst_18 = arith.constant dense<0.000000e+00> : vector<2x384xf32>
    %24 = tpu.matmul %22, %23, %cst_18 {dimension_numbers = #tpu.dot_dimension_numbers<[1], [0], [0], [1], [0, 0, 1, 1], [], []>} : vector<2x128xbf16>, vector<128x384xbf16>, vector<2x384xf32> -> vector<2x384xf32>
    %25 = vector.extract_strided_slice %21 {offsets = [0, 0], sizes = [2, 128], strides = [1, 1]} : vector<2x384xf32> to vector<2x128xf32>
    %26 = vector.extract_strided_slice %24 {offsets = [0, 0], sizes = [2, 128], strides = [1, 1]} : vector<2x384xf32> to vector<2x128xf32>
    %27 = arith.addf %25, %26 : vector<2x128xf32>
    %28 = arith.negf %27 : vector<2x128xf32>
    %29 = math.exp %28 : vector<2x128xf32>
    %cst_19 = arith.constant 1.000000e+00 : f32
    %30 = vector.broadcast %cst_19 : f32 to vector<2x128xf32>
    %31 = arith.addf %30, %29 : vector<2x128xf32>
    %32 = arith.divf %30, %31 : vector<2x128xf32>
    %33 = vector.extract_strided_slice %21 {offsets = [0, 128], sizes = [2, 128], strides = [1, 1]} : vector<2x384xf32> to vector<2x128xf32>
    %34 = vector.extract_strided_slice %24 {offsets = [0, 128], sizes = [2, 128], strides = [1, 1]} : vector<2x384xf32> to vector<2x128xf32>
    %35 = arith.addf %33, %34 : vector<2x128xf32>
    %36 = arith.negf %35 : vector<2x128xf32>
    %37 = math.exp %36 : vector<2x128xf32>
    %cst_20 = arith.constant 1.000000e+00 : f32
    %38 = vector.broadcast %cst_20 : f32 to vector<2x128xf32>
    %39 = arith.addf %38, %37 : vector<2x128xf32>
    %40 = arith.divf %38, %39 : vector<2x128xf32>
    %41 = vector.extract_strided_slice %21 {offsets = [0, 256], sizes = [2, 128], strides = [1, 1]} : vector<2x384xf32> to vector<2x128xf32>
    %42 = vector.extract_strided_slice %24 {offsets = [0, 256], sizes = [2, 128], strides = [1, 1]} : vector<2x384xf32> to vector<2x128xf32>
    %43 = arith.addf %42, %12 : vector<2x128xf32>
    %44 = arith.mulf %32, %43 : vector<2x128xf32>
    %45 = arith.addf %41, %44 : vector<2x128xf32>
    %46 = math.tanh %45 : vector<2x128xf32>
    %47 = arith.subf %19, %46 : vector<2x128xf32>
    %48 = arith.mulf %40, %47 : vector<2x128xf32>
    %49 = arith.addf %46, %48 : vector<2x128xf32>
    %50 = arith.truncf %49 : vector<2x128xf32> to vector<2x128xbf16>
    %c0_21 = arith.constant 0 : index
    %c0_22 = arith.constant 0 : index
    %51 = vector.load %arg6[%c0_21, %c0_22] : memref<128x384xbf16, #tpu.memory_space<vmem>>, vector<128x384xbf16>
    %cst_23 = arith.constant dense<0.000000e+00> : vector<2x384xf32>
    %52 = tpu.matmul %50, %51, %cst_23 {dimension_numbers = #tpu.dot_dimension_numbers<[1], [0], [0], [1], [0, 0, 1, 1], [], []>} : vector<2x128xbf16>, vector<128x384xbf16>, vector<2x384xf32> -> vector<2x384xf32>
    %53 = arith.addf %52, %15 : vector<2x384xf32>
    %54 = arith.truncf %20 : vector<2x128xf32> to vector<2x128xbf16>
    %c0_24 = arith.constant 0 : index
    %c0_25 = arith.constant 0 : index
    %55 = vector.load %arg7[%c0_24, %c0_25] : memref<128x384xbf16, #tpu.memory_space<vmem>>, vector<128x384xbf16>
    %cst_26 = arith.constant dense<0.000000e+00> : vector<2x384xf32>
    %56 = tpu.matmul %54, %55, %cst_26 {dimension_numbers = #tpu.dot_dimension_numbers<[1], [0], [0], [1], [0, 0, 1, 1], [], []>} : vector<2x128xbf16>, vector<128x384xbf16>, vector<2x384xf32> -> vector<2x384xf32>
    %57 = vector.extract_strided_slice %53 {offsets = [0, 0], sizes = [2, 128], strides = [1, 1]} : vector<2x384xf32> to vector<2x128xf32>
    %58 = vector.extract_strided_slice %56 {offsets = [0, 0], sizes = [2, 128], strides = [1, 1]} : vector<2x384xf32> to vector<2x128xf32>
    %59 = arith.addf %57, %58 : vector<2x128xf32>
    %60 = arith.negf %59 : vector<2x128xf32>
    %61 = math.exp %60 : vector<2x128xf32>
    %cst_27 = arith.constant 1.000000e+00 : f32
    %62 = vector.broadcast %cst_27 : f32 to vector<2x128xf32>
    %63 = arith.addf %62, %61 : vector<2x128xf32>
    %64 = arith.divf %62, %63 : vector<2x128xf32>
    %65 = vector.extract_strided_slice %53 {offsets = [0, 128], sizes = [2, 128], strides = [1, 1]} : vector<2x384xf32> to vector<2x128xf32>
    %66 = vector.extract_strided_slice %56 {offsets = [0, 128], sizes = [2, 128], strides = [1, 1]} : vector<2x384xf32> to vector<2x128xf32>
    %67 = arith.addf %65, %66 : vector<2x128xf32>
    %68 = arith.negf %67 : vector<2x128xf32>
    %69 = math.exp %68 : vector<2x128xf32>
    %cst_28 = arith.constant 1.000000e+00 : f32
    %70 = vector.broadcast %cst_28 : f32 to vector<2x128xf32>
    %71 = arith.addf %70, %69 : vector<2x128xf32>
    %72 = arith.divf %70, %71 : vector<2x128xf32>
    %73 = vector.extract_strided_slice %53 {offsets = [0, 256], sizes = [2, 128], strides = [1, 1]} : vector<2x384xf32> to vector<2x128xf32>
    %74 = vector.extract_strided_slice %56 {offsets = [0, 256], sizes = [2, 128], strides = [1, 1]} : vector<2x384xf32> to vector<2x128xf32>
    %75 = arith.addf %74, %18 : vector<2x128xf32>
    %76 = arith.mulf %64, %75 : vector<2x128xf32>
    %77 = arith.addf %73, %76 : vector<2x128xf32>
    %78 = math.tanh %77 : vector<2x128xf32>
    %79 = arith.subf %20, %78 : vector<2x128xf32>
    %80 = arith.mulf %72, %79 : vector<2x128xf32>
    %81 = arith.addf %78, %80 : vector<2x128xf32>
    %82 = vector.extract_strided_slice %9 {offsets = [2, 0], sizes = [2, 384], strides = [1, 1]} : vector<16x384xf32> to vector<2x384xf32>
    %83 = arith.truncf %49 : vector<2x128xf32> to vector<2x128xbf16>
    %c0_29 = arith.constant 0 : index
    %c0_30 = arith.constant 0 : index
    %84 = vector.load %arg3[%c0_29, %c0_30] : memref<128x384xbf16, #tpu.memory_space<vmem>>, vector<128x384xbf16>
    %cst_31 = arith.constant dense<0.000000e+00> : vector<2x384xf32>
    %85 = tpu.matmul %83, %84, %cst_31 {dimension_numbers = #tpu.dot_dimension_numbers<[1], [0], [0], [1], [0, 0, 1, 1], [], []>} : vector<2x128xbf16>, vector<128x384xbf16>, vector<2x384xf32> -> vector<2x384xf32>
    %86 = vector.extract_strided_slice %82 {offsets = [0, 0], sizes = [2, 128], strides = [1, 1]} : vector<2x384xf32> to vector<2x128xf32>
    %87 = vector.extract_strided_slice %85 {offsets = [0, 0], sizes = [2, 128], strides = [1, 1]} : vector<2x384xf32> to vector<2x128xf32>
    %88 = arith.addf %86, %87 : vector<2x128xf32>
    %89 = arith.negf %88 : vector<2x128xf32>
    %90 = math.exp %89 : vector<2x128xf32>
    %cst_32 = arith.constant 1.000000e+00 : f32
    %91 = vector.broadcast %cst_32 : f32 to vector<2x128xf32>
    %92 = arith.addf %91, %90 : vector<2x128xf32>
    %93 = arith.divf %91, %92 : vector<2x128xf32>
    %94 = vector.extract_strided_slice %82 {offsets = [0, 128], sizes = [2, 128], strides = [1, 1]} : vector<2x384xf32> to vector<2x128xf32>
    %95 = vector.extract_strided_slice %85 {offsets = [0, 128], sizes = [2, 128], strides = [1, 1]} : vector<2x384xf32> to vector<2x128xf32>
    %96 = arith.addf %94, %95 : vector<2x128xf32>
    %97 = arith.negf %96 : vector<2x128xf32>
    %98 = math.exp %97 : vector<2x128xf32>
    %cst_33 = arith.constant 1.000000e+00 : f32
    %99 = vector.broadcast %cst_33 : f32 to vector<2x128xf32>
    %100 = arith.addf %99, %98 : vector<2x128xf32>
    %101 = arith.divf %99, %100 : vector<2x128xf32>
    %102 = vector.extract_strided_slice %82 {offsets = [0, 256], sizes = [2, 128], strides = [1, 1]} : vector<2x384xf32> to vector<2x128xf32>
    %103 = vector.extract_strided_slice %85 {offsets = [0, 256], sizes = [2, 128], strides = [1, 1]} : vector<2x384xf32> to vector<2x128xf32>
    %104 = arith.addf %103, %12 : vector<2x128xf32>
    %105 = arith.mulf %93, %104 : vector<2x128xf32>
    %106 = arith.addf %102, %105 : vector<2x128xf32>
    %107 = math.tanh %106 : vector<2x128xf32>
    %108 = arith.subf %49, %107 : vector<2x128xf32>
    %109 = arith.mulf %101, %108 : vector<2x128xf32>
    %110 = arith.addf %107, %109 : vector<2x128xf32>
    %111 = arith.truncf %110 : vector<2x128xf32> to vector<2x128xbf16>
    %c0_34 = arith.constant 0 : index
    %c0_35 = arith.constant 0 : index
    %112 = vector.load %arg6[%c0_34, %c0_35] : memref<128x384xbf16, #tpu.memory_space<vmem>>, vector<128x384xbf16>
    %cst_36 = arith.constant dense<0.000000e+00> : vector<2x384xf32>
    %113 = tpu.matmul %111, %112, %cst_36 {dimension_numbers = #tpu.dot_dimension_numbers<[1], [0], [0], [1], [0, 0, 1, 1], [], []>} : vector<2x128xbf16>, vector<128x384xbf16>, vector<2x384xf32> -> vector<2x384xf32>
    %114 = arith.addf %113, %15 : vector<2x384xf32>
    %115 = arith.truncf %81 : vector<2x128xf32> to vector<2x128xbf16>
    %c0_37 = arith.constant 0 : index
    %c0_38 = arith.constant 0 : index
    %116 = vector.load %arg7[%c0_37, %c0_38] : memref<128x384xbf16, #tpu.memory_space<vmem>>, vector<128x384xbf16>
    %cst_39 = arith.constant dense<0.000000e+00> : vector<2x384xf32>
    %117 = tpu.matmul %115, %116, %cst_39 {dimension_numbers = #tpu.dot_dimension_numbers<[1], [0], [0], [1], [0, 0, 1, 1], [], []>} : vector<2x128xbf16>, vector<128x384xbf16>, vector<2x384xf32> -> vector<2x384xf32>
    %118 = vector.extract_strided_slice %114 {offsets = [0, 0], sizes = [2, 128], strides = [1, 1]} : vector<2x384xf32> to vector<2x128xf32>
    %119 = vector.extract_strided_slice %117 {offsets = [0, 0], sizes = [2, 128], strides = [1, 1]} : vector<2x384xf32> to vector<2x128xf32>
    %120 = arith.addf %118, %119 : vector<2x128xf32>
    %121 = arith.negf %120 : vector<2x128xf32>
    %122 = math.exp %121 : vector<2x128xf32>
    %cst_40 = arith.constant 1.000000e+00 : f32
    %123 = vector.broadcast %cst_40 : f32 to vector<2x128xf32>
    %124 = arith.addf %123, %122 : vector<2x128xf32>
    %125 = arith.divf %123, %124 : vector<2x128xf32>
    %126 = vector.extract_strided_slice %114 {offsets = [0, 128], sizes = [2, 128], strides = [1, 1]} : vector<2x384xf32> to vector<2x128xf32>
    %127 = vector.extract_strided_slice %117 {offsets = [0, 128], sizes = [2, 128], strides = [1, 1]} : vector<2x384xf32> to vector<2x128xf32>
    %128 = arith.addf %126, %127 : vector<2x128xf32>
    %129 = arith.negf %128 : vector<2x128xf32>
    %130 = math.exp %129 : vector<2x128xf32>
    %cst_41 = arith.constant 1.000000e+00 : f32
    %131 = vector.broadcast %cst_41 : f32 to vector<2x128xf32>
    %132 = arith.addf %131, %130 : vector<2x128xf32>
    %133 = arith.divf %131, %132 : vector<2x128xf32>
    %134 = vector.extract_strided_slice %114 {offsets = [0, 256], sizes = [2, 128], strides = [1, 1]} : vector<2x384xf32> to vector<2x128xf32>
    %135 = vector.extract_strided_slice %117 {offsets = [0, 256], sizes = [2, 128], strides = [1, 1]} : vector<2x384xf32> to vector<2x128xf32>
    %136 = arith.addf %135, %18 : vector<2x128xf32>
    %137 = arith.mulf %125, %136 : vector<2x128xf32>
    %138 = arith.addf %134, %137 : vector<2x128xf32>
    %139 = math.tanh %138 : vector<2x128xf32>
    %140 = arith.subf %81, %139 : vector<2x128xf32>
    %141 = arith.mulf %133, %140 : vector<2x128xf32>
    %142 = arith.addf %139, %141 : vector<2x128xf32>
    %143 = vector.extract_strided_slice %9 {offsets = [4, 0], sizes = [2, 384], strides = [1, 1]} : vector<16x384xf32> to vector<2x384xf32>
    %144 = arith.truncf %110 : vector<2x128xf32> to vector<2x128xbf16>
    %c0_42 = arith.constant 0 : index
    %c0_43 = arith.constant 0 : index
    %145 = vector.load %arg3[%c0_42, %c0_43] : memref<128x384xbf16, #tpu.memory_space<vmem>>, vector<128x384xbf16>
    %cst_44 = arith.constant dense<0.000000e+00> : vector<2x384xf32>
    %146 = tpu.matmul %144, %145, %cst_44 {dimension_numbers = #tpu.dot_dimension_numbers<[1], [0], [0], [1], [0, 0, 1, 1], [], []>} : vector<2x128xbf16>, vector<128x384xbf16>, vector<2x384xf32> -> vector<2x384xf32>
    %147 = vector.extract_strided_slice %143 {offsets = [0, 0], sizes = [2, 128], strides = [1, 1]} : vector<2x384xf32> to vector<2x128xf32>
    %148 = vector.extract_strided_slice %146 {offsets = [0, 0], sizes = [2, 128], strides = [1, 1]} : vector<2x384xf32> to vector<2x128xf32>
    %149 = arith.addf %147, %148 : vector<2x128xf32>
    %150 = arith.negf %149 : vector<2x128xf32>
    %151 = math.exp %150 : vector<2x128xf32>
    %cst_45 = arith.constant 1.000000e+00 : f32
    %152 = vector.broadcast %cst_45 : f32 to vector<2x128xf32>
    %153 = arith.addf %152, %151 : vector<2x128xf32>
    %154 = arith.divf %152, %153 : vector<2x128xf32>
    %155 = vector.extract_strided_slice %143 {offsets = [0, 128], sizes = [2, 128], strides = [1, 1]} : vector<2x384xf32> to vector<2x128xf32>
    %156 = vector.extract_strided_slice %146 {offsets = [0, 128], sizes = [2, 128], strides = [1, 1]} : vector<2x384xf32> to vector<2x128xf32>
    %157 = arith.addf %155, %156 : vector<2x128xf32>
    %158 = arith.negf %157 : vector<2x128xf32>
    %159 = math.exp %158 : vector<2x128xf32>
    %cst_46 = arith.constant 1.000000e+00 : f32
    %160 = vector.broadcast %cst_46 : f32 to vector<2x128xf32>
    %161 = arith.addf %160, %159 : vector<2x128xf32>
    %162 = arith.divf %160, %161 : vector<2x128xf32>
    %163 = vector.extract_strided_slice %143 {offsets = [0, 256], sizes = [2, 128], strides = [1, 1]} : vector<2x384xf32> to vector<2x128xf32>
    %164 = vector.extract_strided_slice %146 {offsets = [0, 256], sizes = [2, 128], strides = [1, 1]} : vector<2x384xf32> to vector<2x128xf32>
    %165 = arith.addf %164, %12 : vector<2x128xf32>
    %166 = arith.mulf %154, %165 : vector<2x128xf32>
    %167 = arith.addf %163, %166 : vector<2x128xf32>
    %168 = math.tanh %167 : vector<2x128xf32>
    %169 = arith.subf %110, %168 : vector<2x128xf32>
    %170 = arith.mulf %162, %169 : vector<2x128xf32>
    %171 = arith.addf %168, %170 : vector<2x128xf32>
    %172 = arith.truncf %171 : vector<2x128xf32> to vector<2x128xbf16>
    %c0_47 = arith.constant 0 : index
    %c0_48 = arith.constant 0 : index
    %173 = vector.load %arg6[%c0_47, %c0_48] : memref<128x384xbf16, #tpu.memory_space<vmem>>, vector<128x384xbf16>
    %cst_49 = arith.constant dense<0.000000e+00> : vector<2x384xf32>
    %174 = tpu.matmul %172, %173, %cst_49 {dimension_numbers = #tpu.dot_dimension_numbers<[1], [0], [0], [1], [0, 0, 1, 1], [], []>} : vector<2x128xbf16>, vector<128x384xbf16>, vector<2x384xf32> -> vector<2x384xf32>
    %175 = arith.addf %174, %15 : vector<2x384xf32>
    %176 = arith.truncf %142 : vector<2x128xf32> to vector<2x128xbf16>
    %c0_50 = arith.constant 0 : index
    %c0_51 = arith.constant 0 : index
    %177 = vector.load %arg7[%c0_50, %c0_51] : memref<128x384xbf16, #tpu.memory_space<vmem>>, vector<128x384xbf16>
    %cst_52 = arith.constant dense<0.000000e+00> : vector<2x384xf32>
    %178 = tpu.matmul %176, %177, %cst_52 {dimension_numbers = #tpu.dot_dimension_numbers<[1], [0], [0], [1], [0, 0, 1, 1], [], []>} : vector<2x128xbf16>, vector<128x384xbf16>, vector<2x384xf32> -> vector<2x384xf32>
    %179 = vector.extract_strided_slice %175 {offsets = [0, 0], sizes = [2, 128], strides = [1, 1]} : vector<2x384xf32> to vector<2x128xf32>
    %180 = vector.extract_strided_slice %178 {offsets = [0, 0], sizes = [2, 128], strides = [1, 1]} : vector<2x384xf32> to vector<2x128xf32>
    %181 = arith.addf %179, %180 : vector<2x128xf32>
    %182 = arith.negf %181 : vector<2x128xf32>
    %183 = math.exp %182 : vector<2x128xf32>
    %cst_53 = arith.constant 1.000000e+00 : f32
    %184 = vector.broadcast %cst_53 : f32 to vector<2x128xf32>
    %185 = arith.addf %184, %183 : vector<2x128xf32>
    %186 = arith.divf %184, %185 : vector<2x128xf32>
    %187 = vector.extract_strided_slice %175 {offsets = [0, 128], sizes = [2, 128], strides = [1, 1]} : vector<2x384xf32> to vector<2x128xf32>
    %188 = vector.extract_strided_slice %178 {offsets = [0, 128], sizes = [2, 128], strides = [1, 1]} : vector<2x384xf32> to vector<2x128xf32>
    %189 = arith.addf %187, %188 : vector<2x128xf32>
    %190 = arith.negf %189 : vector<2x128xf32>
    %191 = math.exp %190 : vector<2x128xf32>
    %cst_54 = arith.constant 1.000000e+00 : f32
    %192 = vector.broadcast %cst_54 : f32 to vector<2x128xf32>
    %193 = arith.addf %192, %191 : vector<2x128xf32>
    %194 = arith.divf %192, %193 : vector<2x128xf32>
    %195 = vector.extract_strided_slice %175 {offsets = [0, 256], sizes = [2, 128], strides = [1, 1]} : vector<2x384xf32> to vector<2x128xf32>
    %196 = vector.extract_strided_slice %178 {offsets = [0, 256], sizes = [2, 128], strides = [1, 1]} : vector<2x384xf32> to vector<2x128xf32>
    %197 = arith.addf %196, %18 : vector<2x128xf32>
    %198 = arith.mulf %186, %197 : vector<2x128xf32>
    %199 = arith.addf %195, %198 : vector<2x128xf32>
    %200 = math.tanh %199 : vector<2x128xf32>
    %201 = arith.subf %142, %200 : vector<2x128xf32>
    %202 = arith.mulf %194, %201 : vector<2x128xf32>
    %203 = arith.addf %200, %202 : vector<2x128xf32>
    %204 = vector.extract_strided_slice %9 {offsets = [6, 0], sizes = [2, 384], strides = [1, 1]} : vector<16x384xf32> to vector<2x384xf32>
    %205 = arith.truncf %171 : vector<2x128xf32> to vector<2x128xbf16>
    %c0_55 = arith.constant 0 : index
    %c0_56 = arith.constant 0 : index
    %206 = vector.load %arg3[%c0_55, %c0_56] : memref<128x384xbf16, #tpu.memory_space<vmem>>, vector<128x384xbf16>
    %cst_57 = arith.constant dense<0.000000e+00> : vector<2x384xf32>
    %207 = tpu.matmul %205, %206, %cst_57 {dimension_numbers = #tpu.dot_dimension_numbers<[1], [0], [0], [1], [0, 0, 1, 1], [], []>} : vector<2x128xbf16>, vector<128x384xbf16>, vector<2x384xf32> -> vector<2x384xf32>
    %208 = vector.extract_strided_slice %204 {offsets = [0, 0], sizes = [2, 128], strides = [1, 1]} : vector<2x384xf32> to vector<2x128xf32>
    %209 = vector.extract_strided_slice %207 {offsets = [0, 0], sizes = [2, 128], strides = [1, 1]} : vector<2x384xf32> to vector<2x128xf32>
    %210 = arith.addf %208, %209 : vector<2x128xf32>
    %211 = arith.negf %210 : vector<2x128xf32>
    %212 = math.exp %211 : vector<2x128xf32>
    %cst_58 = arith.constant 1.000000e+00 : f32
    %213 = vector.broadcast %cst_58 : f32 to vector<2x128xf32>
    %214 = arith.addf %213, %212 : vector<2x128xf32>
    %215 = arith.divf %213, %214 : vector<2x128xf32>
    %216 = vector.extract_strided_slice %204 {offsets = [0, 128], sizes = [2, 128], strides = [1, 1]} : vector<2x384xf32> to vector<2x128xf32>
    %217 = vector.extract_strided_slice %207 {offsets = [0, 128], sizes = [2, 128], strides = [1, 1]} : vector<2x384xf32> to vector<2x128xf32>
    %218 = arith.addf %216, %217 : vector<2x128xf32>
    %219 = arith.negf %218 : vector<2x128xf32>
    %220 = math.exp %219 : vector<2x128xf32>
    %cst_59 = arith.constant 1.000000e+00 : f32
    %221 = vector.broadcast %cst_59 : f32 to vector<2x128xf32>
    %222 = arith.addf %221, %220 : vector<2x128xf32>
    %223 = arith.divf %221, %222 : vector<2x128xf32>
    %224 = vector.extract_strided_slice %204 {offsets = [0, 256], sizes = [2, 128], strides = [1, 1]} : vector<2x384xf32> to vector<2x128xf32>
    %225 = vector.extract_strided_slice %207 {offsets = [0, 256], sizes = [2, 128], strides = [1, 1]} : vector<2x384xf32> to vector<2x128xf32>
    %226 = arith.addf %225, %12 : vector<2x128xf32>
    %227 = arith.mulf %215, %226 : vector<2x128xf32>
    %228 = arith.addf %224, %227 : vector<2x128xf32>
    %229 = math.tanh %228 : vector<2x128xf32>
    %230 = arith.subf %171, %229 : vector<2x128xf32>
    %231 = arith.mulf %223, %230 : vector<2x128xf32>
    %232 = arith.addf %229, %231 : vector<2x128xf32>
    %233 = arith.truncf %232 : vector<2x128xf32> to vector<2x128xbf16>
    %c0_60 = arith.constant 0 : index
    %c0_61 = arith.constant 0 : index
    %234 = vector.load %arg6[%c0_60, %c0_61] : memref<128x384xbf16, #tpu.memory_space<vmem>>, vector<128x384xbf16>
    %cst_62 = arith.constant dense<0.000000e+00> : vector<2x384xf32>
    %235 = tpu.matmul %233, %234, %cst_62 {dimension_numbers = #tpu.dot_dimension_numbers<[1], [0], [0], [1], [0, 0, 1, 1], [], []>} : vector<2x128xbf16>, vector<128x384xbf16>, vector<2x384xf32> -> vector<2x384xf32>
    %236 = arith.addf %235, %15 : vector<2x384xf32>
    %237 = arith.truncf %203 : vector<2x128xf32> to vector<2x128xbf16>
    %c0_63 = arith.constant 0 : index
    %c0_64 = arith.constant 0 : index
    %238 = vector.load %arg7[%c0_63, %c0_64] : memref<128x384xbf16, #tpu.memory_space<vmem>>, vector<128x384xbf16>
    %cst_65 = arith.constant dense<0.000000e+00> : vector<2x384xf32>
    %239 = tpu.matmul %237, %238, %cst_65 {dimension_numbers = #tpu.dot_dimension_numbers<[1], [0], [0], [1], [0, 0, 1, 1], [], []>} : vector<2x128xbf16>, vector<128x384xbf16>, vector<2x384xf32> -> vector<2x384xf32>
    %240 = vector.extract_strided_slice %236 {offsets = [0, 0], sizes = [2, 128], strides = [1, 1]} : vector<2x384xf32> to vector<2x128xf32>
    %241 = vector.extract_strided_slice %239 {offsets = [0, 0], sizes = [2, 128], strides = [1, 1]} : vector<2x384xf32> to vector<2x128xf32>
    %242 = arith.addf %240, %241 : vector<2x128xf32>
    %243 = arith.negf %242 : vector<2x128xf32>
    %244 = math.exp %243 : vector<2x128xf32>
    %cst_66 = arith.constant 1.000000e+00 : f32
    %245 = vector.broadcast %cst_66 : f32 to vector<2x128xf32>
    %246 = arith.addf %245, %244 : vector<2x128xf32>
    %247 = arith.divf %245, %246 : vector<2x128xf32>
    %248 = vector.extract_strided_slice %236 {offsets = [0, 128], sizes = [2, 128], strides = [1, 1]} : vector<2x384xf32> to vector<2x128xf32>
    %249 = vector.extract_strided_slice %239 {offsets = [0, 128], sizes = [2, 128], strides = [1, 1]} : vector<2x384xf32> to vector<2x128xf32>
    %250 = arith.addf %248, %249 : vector<2x128xf32>
    %251 = arith.negf %250 : vector<2x128xf32>
    %252 = math.exp %251 : vector<2x128xf32>
    %cst_67 = arith.constant 1.000000e+00 : f32
    %253 = vector.broadcast %cst_67 : f32 to vector<2x128xf32>
    %254 = arith.addf %253, %252 : vector<2x128xf32>
    %255 = arith.divf %253, %254 : vector<2x128xf32>
    %256 = vector.extract_strided_slice %236 {offsets = [0, 256], sizes = [2, 128], strides = [1, 1]} : vector<2x384xf32> to vector<2x128xf32>
    %257 = vector.extract_strided_slice %239 {offsets = [0, 256], sizes = [2, 128], strides = [1, 1]} : vector<2x384xf32> to vector<2x128xf32>
    %258 = arith.addf %257, %18 : vector<2x128xf32>
    %259 = arith.mulf %247, %258 : vector<2x128xf32>
    %260 = arith.addf %256, %259 : vector<2x128xf32>
    %261 = math.tanh %260 : vector<2x128xf32>
    %262 = arith.subf %203, %261 : vector<2x128xf32>
    %263 = arith.mulf %255, %262 : vector<2x128xf32>
    %264 = arith.addf %261, %263 : vector<2x128xf32>
    %265 = vector.extract_strided_slice %9 {offsets = [8, 0], sizes = [2, 384], strides = [1, 1]} : vector<16x384xf32> to vector<2x384xf32>
    %266 = arith.truncf %232 : vector<2x128xf32> to vector<2x128xbf16>
    %c0_68 = arith.constant 0 : index
    %c0_69 = arith.constant 0 : index
    %267 = vector.load %arg3[%c0_68, %c0_69] : memref<128x384xbf16, #tpu.memory_space<vmem>>, vector<128x384xbf16>
    %cst_70 = arith.constant dense<0.000000e+00> : vector<2x384xf32>
    %268 = tpu.matmul %266, %267, %cst_70 {dimension_numbers = #tpu.dot_dimension_numbers<[1], [0], [0], [1], [0, 0, 1, 1], [], []>} : vector<2x128xbf16>, vector<128x384xbf16>, vector<2x384xf32> -> vector<2x384xf32>
    %269 = vector.extract_strided_slice %265 {offsets = [0, 0], sizes = [2, 128], strides = [1, 1]} : vector<2x384xf32> to vector<2x128xf32>
    %270 = vector.extract_strided_slice %268 {offsets = [0, 0], sizes = [2, 128], strides = [1, 1]} : vector<2x384xf32> to vector<2x128xf32>
    %271 = arith.addf %269, %270 : vector<2x128xf32>
    %272 = arith.negf %271 : vector<2x128xf32>
    %273 = math.exp %272 : vector<2x128xf32>
    %cst_71 = arith.constant 1.000000e+00 : f32
    %274 = vector.broadcast %cst_71 : f32 to vector<2x128xf32>
    %275 = arith.addf %274, %273 : vector<2x128xf32>
    %276 = arith.divf %274, %275 : vector<2x128xf32>
    %277 = vector.extract_strided_slice %265 {offsets = [0, 128], sizes = [2, 128], strides = [1, 1]} : vector<2x384xf32> to vector<2x128xf32>
    %278 = vector.extract_strided_slice %268 {offsets = [0, 128], sizes = [2, 128], strides = [1, 1]} : vector<2x384xf32> to vector<2x128xf32>
    %279 = arith.addf %277, %278 : vector<2x128xf32>
    %280 = arith.negf %279 : vector<2x128xf32>
    %281 = math.exp %280 : vector<2x128xf32>
    %cst_72 = arith.constant 1.000000e+00 : f32
    %282 = vector.broadcast %cst_72 : f32 to vector<2x128xf32>
    %283 = arith.addf %282, %281 : vector<2x128xf32>
    %284 = arith.divf %282, %283 : vector<2x128xf32>
    %285 = vector.extract_strided_slice %265 {offsets = [0, 256], sizes = [2, 128], strides = [1, 1]} : vector<2x384xf32> to vector<2x128xf32>
    %286 = vector.extract_strided_slice %268 {offsets = [0, 256], sizes = [2, 128], strides = [1, 1]} : vector<2x384xf32> to vector<2x128xf32>
    %287 = arith.addf %286, %12 : vector<2x128xf32>
    %288 = arith.mulf %276, %287 : vector<2x128xf32>
    %289 = arith.addf %285, %288 : vector<2x128xf32>
    %290 = math.tanh %289 : vector<2x128xf32>
    %291 = arith.subf %232, %290 : vector<2x128xf32>
    %292 = arith.mulf %284, %291 : vector<2x128xf32>
    %293 = arith.addf %290, %292 : vector<2x128xf32>
    %294 = arith.truncf %293 : vector<2x128xf32> to vector<2x128xbf16>
    %c0_73 = arith.constant 0 : index
    %c0_74 = arith.constant 0 : index
    %295 = vector.load %arg6[%c0_73, %c0_74] : memref<128x384xbf16, #tpu.memory_space<vmem>>, vector<128x384xbf16>
    %cst_75 = arith.constant dense<0.000000e+00> : vector<2x384xf32>
    %296 = tpu.matmul %294, %295, %cst_75 {dimension_numbers = #tpu.dot_dimension_numbers<[1], [0], [0], [1], [0, 0, 1, 1], [], []>} : vector<2x128xbf16>, vector<128x384xbf16>, vector<2x384xf32> -> vector<2x384xf32>
    %297 = arith.addf %296, %15 : vector<2x384xf32>
    %298 = arith.truncf %264 : vector<2x128xf32> to vector<2x128xbf16>
    %c0_76 = arith.constant 0 : index
    %c0_77 = arith.constant 0 : index
    %299 = vector.load %arg7[%c0_76, %c0_77] : memref<128x384xbf16, #tpu.memory_space<vmem>>, vector<128x384xbf16>
    %cst_78 = arith.constant dense<0.000000e+00> : vector<2x384xf32>
    %300 = tpu.matmul %298, %299, %cst_78 {dimension_numbers = #tpu.dot_dimension_numbers<[1], [0], [0], [1], [0, 0, 1, 1], [], []>} : vector<2x128xbf16>, vector<128x384xbf16>, vector<2x384xf32> -> vector<2x384xf32>
    %301 = vector.extract_strided_slice %297 {offsets = [0, 0], sizes = [2, 128], strides = [1, 1]} : vector<2x384xf32> to vector<2x128xf32>
    %302 = vector.extract_strided_slice %300 {offsets = [0, 0], sizes = [2, 128], strides = [1, 1]} : vector<2x384xf32> to vector<2x128xf32>
    %303 = arith.addf %301, %302 : vector<2x128xf32>
    %304 = arith.negf %303 : vector<2x128xf32>
    %305 = math.exp %304 : vector<2x128xf32>
    %cst_79 = arith.constant 1.000000e+00 : f32
    %306 = vector.broadcast %cst_79 : f32 to vector<2x128xf32>
    %307 = arith.addf %306, %305 : vector<2x128xf32>
    %308 = arith.divf %306, %307 : vector<2x128xf32>
    %309 = vector.extract_strided_slice %297 {offsets = [0, 128], sizes = [2, 128], strides = [1, 1]} : vector<2x384xf32> to vector<2x128xf32>
    %310 = vector.extract_strided_slice %300 {offsets = [0, 128], sizes = [2, 128], strides = [1, 1]} : vector<2x384xf32> to vector<2x128xf32>
    %311 = arith.addf %309, %310 : vector<2x128xf32>
    %312 = arith.negf %311 : vector<2x128xf32>
    %313 = math.exp %312 : vector<2x128xf32>
    %cst_80 = arith.constant 1.000000e+00 : f32
    %314 = vector.broadcast %cst_80 : f32 to vector<2x128xf32>
    %315 = arith.addf %314, %313 : vector<2x128xf32>
    %316 = arith.divf %314, %315 : vector<2x128xf32>
    %317 = vector.extract_strided_slice %297 {offsets = [0, 256], sizes = [2, 128], strides = [1, 1]} : vector<2x384xf32> to vector<2x128xf32>
    %318 = vector.extract_strided_slice %300 {offsets = [0, 256], sizes = [2, 128], strides = [1, 1]} : vector<2x384xf32> to vector<2x128xf32>
    %319 = arith.addf %318, %18 : vector<2x128xf32>
    %320 = arith.mulf %308, %319 : vector<2x128xf32>
    %321 = arith.addf %317, %320 : vector<2x128xf32>
    %322 = math.tanh %321 : vector<2x128xf32>
    %323 = arith.subf %264, %322 : vector<2x128xf32>
    %324 = arith.mulf %316, %323 : vector<2x128xf32>
    %325 = arith.addf %322, %324 : vector<2x128xf32>
    %326 = vector.extract_strided_slice %9 {offsets = [10, 0], sizes = [2, 384], strides = [1, 1]} : vector<16x384xf32> to vector<2x384xf32>
    %327 = arith.truncf %293 : vector<2x128xf32> to vector<2x128xbf16>
    %c0_81 = arith.constant 0 : index
    %c0_82 = arith.constant 0 : index
    %328 = vector.load %arg3[%c0_81, %c0_82] : memref<128x384xbf16, #tpu.memory_space<vmem>>, vector<128x384xbf16>
    %cst_83 = arith.constant dense<0.000000e+00> : vector<2x384xf32>
    %329 = tpu.matmul %327, %328, %cst_83 {dimension_numbers = #tpu.dot_dimension_numbers<[1], [0], [0], [1], [0, 0, 1, 1], [], []>} : vector<2x128xbf16>, vector<128x384xbf16>, vector<2x384xf32> -> vector<2x384xf32>
    %330 = vector.extract_strided_slice %326 {offsets = [0, 0], sizes = [2, 128], strides = [1, 1]} : vector<2x384xf32> to vector<2x128xf32>
    %331 = vector.extract_strided_slice %329 {offsets = [0, 0], sizes = [2, 128], strides = [1, 1]} : vector<2x384xf32> to vector<2x128xf32>
    %332 = arith.addf %330, %331 : vector<2x128xf32>
    %333 = arith.negf %332 : vector<2x128xf32>
    %334 = math.exp %333 : vector<2x128xf32>
    %cst_84 = arith.constant 1.000000e+00 : f32
    %335 = vector.broadcast %cst_84 : f32 to vector<2x128xf32>
    %336 = arith.addf %335, %334 : vector<2x128xf32>
    %337 = arith.divf %335, %336 : vector<2x128xf32>
    %338 = vector.extract_strided_slice %326 {offsets = [0, 128], sizes = [2, 128], strides = [1, 1]} : vector<2x384xf32> to vector<2x128xf32>
    %339 = vector.extract_strided_slice %329 {offsets = [0, 128], sizes = [2, 128], strides = [1, 1]} : vector<2x384xf32> to vector<2x128xf32>
    %340 = arith.addf %338, %339 : vector<2x128xf32>
    %341 = arith.negf %340 : vector<2x128xf32>
    %342 = math.exp %341 : vector<2x128xf32>
    %cst_85 = arith.constant 1.000000e+00 : f32
    %343 = vector.broadcast %cst_85 : f32 to vector<2x128xf32>
    %344 = arith.addf %343, %342 : vector<2x128xf32>
    %345 = arith.divf %343, %344 : vector<2x128xf32>
    %346 = vector.extract_strided_slice %326 {offsets = [0, 256], sizes = [2, 128], strides = [1, 1]} : vector<2x384xf32> to vector<2x128xf32>
    %347 = vector.extract_strided_slice %329 {offsets = [0, 256], sizes = [2, 128], strides = [1, 1]} : vector<2x384xf32> to vector<2x128xf32>
    %348 = arith.addf %347, %12 : vector<2x128xf32>
    %349 = arith.mulf %337, %348 : vector<2x128xf32>
    %350 = arith.addf %346, %349 : vector<2x128xf32>
    %351 = math.tanh %350 : vector<2x128xf32>
    %352 = arith.subf %293, %351 : vector<2x128xf32>
    %353 = arith.mulf %345, %352 : vector<2x128xf32>
    %354 = arith.addf %351, %353 : vector<2x128xf32>
    %355 = arith.truncf %354 : vector<2x128xf32> to vector<2x128xbf16>
    %c0_86 = arith.constant 0 : index
    %c0_87 = arith.constant 0 : index
    %356 = vector.load %arg6[%c0_86, %c0_87] : memref<128x384xbf16, #tpu.memory_space<vmem>>, vector<128x384xbf16>
    %cst_88 = arith.constant dense<0.000000e+00> : vector<2x384xf32>
    %357 = tpu.matmul %355, %356, %cst_88 {dimension_numbers = #tpu.dot_dimension_numbers<[1], [0], [0], [1], [0, 0, 1, 1], [], []>} : vector<2x128xbf16>, vector<128x384xbf16>, vector<2x384xf32> -> vector<2x384xf32>
    %358 = arith.addf %357, %15 : vector<2x384xf32>
    %359 = arith.truncf %325 : vector<2x128xf32> to vector<2x128xbf16>
    %c0_89 = arith.constant 0 : index
    %c0_90 = arith.constant 0 : index
    %360 = vector.load %arg7[%c0_89, %c0_90] : memref<128x384xbf16, #tpu.memory_space<vmem>>, vector<128x384xbf16>
    %cst_91 = arith.constant dense<0.000000e+00> : vector<2x384xf32>
    %361 = tpu.matmul %359, %360, %cst_91 {dimension_numbers = #tpu.dot_dimension_numbers<[1], [0], [0], [1], [0, 0, 1, 1], [], []>} : vector<2x128xbf16>, vector<128x384xbf16>, vector<2x384xf32> -> vector<2x384xf32>
    %362 = vector.extract_strided_slice %358 {offsets = [0, 0], sizes = [2, 128], strides = [1, 1]} : vector<2x384xf32> to vector<2x128xf32>
    %363 = vector.extract_strided_slice %361 {offsets = [0, 0], sizes = [2, 128], strides = [1, 1]} : vector<2x384xf32> to vector<2x128xf32>
    %364 = arith.addf %362, %363 : vector<2x128xf32>
    %365 = arith.negf %364 : vector<2x128xf32>
    %366 = math.exp %365 : vector<2x128xf32>
    %cst_92 = arith.constant 1.000000e+00 : f32
    %367 = vector.broadcast %cst_92 : f32 to vector<2x128xf32>
    %368 = arith.addf %367, %366 : vector<2x128xf32>
    %369 = arith.divf %367, %368 : vector<2x128xf32>
    %370 = vector.extract_strided_slice %358 {offsets = [0, 128], sizes = [2, 128], strides = [1, 1]} : vector<2x384xf32> to vector<2x128xf32>
    %371 = vector.extract_strided_slice %361 {offsets = [0, 128], sizes = [2, 128], strides = [1, 1]} : vector<2x384xf32> to vector<2x128xf32>
    %372 = arith.addf %370, %371 : vector<2x128xf32>
    %373 = arith.negf %372 : vector<2x128xf32>
    %374 = math.exp %373 : vector<2x128xf32>
    %cst_93 = arith.constant 1.000000e+00 : f32
    %375 = vector.broadcast %cst_93 : f32 to vector<2x128xf32>
    %376 = arith.addf %375, %374 : vector<2x128xf32>
    %377 = arith.divf %375, %376 : vector<2x128xf32>
    %378 = vector.extract_strided_slice %358 {offsets = [0, 256], sizes = [2, 128], strides = [1, 1]} : vector<2x384xf32> to vector<2x128xf32>
    %379 = vector.extract_strided_slice %361 {offsets = [0, 256], sizes = [2, 128], strides = [1, 1]} : vector<2x384xf32> to vector<2x128xf32>
    %380 = arith.addf %379, %18 : vector<2x128xf32>
    %381 = arith.mulf %369, %380 : vector<2x128xf32>
    %382 = arith.addf %378, %381 : vector<2x128xf32>
    %383 = math.tanh %382 : vector<2x128xf32>
    %384 = arith.subf %325, %383 : vector<2x128xf32>
    %385 = arith.mulf %377, %384 : vector<2x128xf32>
    %386 = arith.addf %383, %385 : vector<2x128xf32>
    %387 = vector.extract_strided_slice %9 {offsets = [12, 0], sizes = [2, 384], strides = [1, 1]} : vector<16x384xf32> to vector<2x384xf32>
    %388 = arith.truncf %354 : vector<2x128xf32> to vector<2x128xbf16>
    %c0_94 = arith.constant 0 : index
    %c0_95 = arith.constant 0 : index
    %389 = vector.load %arg3[%c0_94, %c0_95] : memref<128x384xbf16, #tpu.memory_space<vmem>>, vector<128x384xbf16>
    %cst_96 = arith.constant dense<0.000000e+00> : vector<2x384xf32>
    %390 = tpu.matmul %388, %389, %cst_96 {dimension_numbers = #tpu.dot_dimension_numbers<[1], [0], [0], [1], [0, 0, 1, 1], [], []>} : vector<2x128xbf16>, vector<128x384xbf16>, vector<2x384xf32> -> vector<2x384xf32>
    %391 = vector.extract_strided_slice %387 {offsets = [0, 0], sizes = [2, 128], strides = [1, 1]} : vector<2x384xf32> to vector<2x128xf32>
    %392 = vector.extract_strided_slice %390 {offsets = [0, 0], sizes = [2, 128], strides = [1, 1]} : vector<2x384xf32> to vector<2x128xf32>
    %393 = arith.addf %391, %392 : vector<2x128xf32>
    %394 = arith.negf %393 : vector<2x128xf32>
    %395 = math.exp %394 : vector<2x128xf32>
    %cst_97 = arith.constant 1.000000e+00 : f32
    %396 = vector.broadcast %cst_97 : f32 to vector<2x128xf32>
    %397 = arith.addf %396, %395 : vector<2x128xf32>
    %398 = arith.divf %396, %397 : vector<2x128xf32>
    %399 = vector.extract_strided_slice %387 {offsets = [0, 128], sizes = [2, 128], strides = [1, 1]} : vector<2x384xf32> to vector<2x128xf32>
    %400 = vector.extract_strided_slice %390 {offsets = [0, 128], sizes = [2, 128], strides = [1, 1]} : vector<2x384xf32> to vector<2x128xf32>
    %401 = arith.addf %399, %400 : vector<2x128xf32>
    %402 = arith.negf %401 : vector<2x128xf32>
    %403 = math.exp %402 : vector<2x128xf32>
    %cst_98 = arith.constant 1.000000e+00 : f32
    %404 = vector.broadcast %cst_98 : f32 to vector<2x128xf32>
    %405 = arith.addf %404, %403 : vector<2x128xf32>
    %406 = arith.divf %404, %405 : vector<2x128xf32>
    %407 = vector.extract_strided_slice %387 {offsets = [0, 256], sizes = [2, 128], strides = [1, 1]} : vector<2x384xf32> to vector<2x128xf32>
    %408 = vector.extract_strided_slice %390 {offsets = [0, 256], sizes = [2, 128], strides = [1, 1]} : vector<2x384xf32> to vector<2x128xf32>
    %409 = arith.addf %408, %12 : vector<2x128xf32>
    %410 = arith.mulf %398, %409 : vector<2x128xf32>
    %411 = arith.addf %407, %410 : vector<2x128xf32>
    %412 = math.tanh %411 : vector<2x128xf32>
    %413 = arith.subf %354, %412 : vector<2x128xf32>
    %414 = arith.mulf %406, %413 : vector<2x128xf32>
    %415 = arith.addf %412, %414 : vector<2x128xf32>
    %416 = arith.truncf %415 : vector<2x128xf32> to vector<2x128xbf16>
    %c0_99 = arith.constant 0 : index
    %c0_100 = arith.constant 0 : index
    %417 = vector.load %arg6[%c0_99, %c0_100] : memref<128x384xbf16, #tpu.memory_space<vmem>>, vector<128x384xbf16>
    %cst_101 = arith.constant dense<0.000000e+00> : vector<2x384xf32>
    %418 = tpu.matmul %416, %417, %cst_101 {dimension_numbers = #tpu.dot_dimension_numbers<[1], [0], [0], [1], [0, 0, 1, 1], [], []>} : vector<2x128xbf16>, vector<128x384xbf16>, vector<2x384xf32> -> vector<2x384xf32>
    %419 = arith.addf %418, %15 : vector<2x384xf32>
    %420 = arith.truncf %386 : vector<2x128xf32> to vector<2x128xbf16>
    %c0_102 = arith.constant 0 : index
    %c0_103 = arith.constant 0 : index
    %421 = vector.load %arg7[%c0_102, %c0_103] : memref<128x384xbf16, #tpu.memory_space<vmem>>, vector<128x384xbf16>
    %cst_104 = arith.constant dense<0.000000e+00> : vector<2x384xf32>
    %422 = tpu.matmul %420, %421, %cst_104 {dimension_numbers = #tpu.dot_dimension_numbers<[1], [0], [0], [1], [0, 0, 1, 1], [], []>} : vector<2x128xbf16>, vector<128x384xbf16>, vector<2x384xf32> -> vector<2x384xf32>
    %423 = vector.extract_strided_slice %419 {offsets = [0, 0], sizes = [2, 128], strides = [1, 1]} : vector<2x384xf32> to vector<2x128xf32>
    %424 = vector.extract_strided_slice %422 {offsets = [0, 0], sizes = [2, 128], strides = [1, 1]} : vector<2x384xf32> to vector<2x128xf32>
    %425 = arith.addf %423, %424 : vector<2x128xf32>
    %426 = arith.negf %425 : vector<2x128xf32>
    %427 = math.exp %426 : vector<2x128xf32>
    %cst_105 = arith.constant 1.000000e+00 : f32
    %428 = vector.broadcast %cst_105 : f32 to vector<2x128xf32>
    %429 = arith.addf %428, %427 : vector<2x128xf32>
    %430 = arith.divf %428, %429 : vector<2x128xf32>
    %431 = vector.extract_strided_slice %419 {offsets = [0, 128], sizes = [2, 128], strides = [1, 1]} : vector<2x384xf32> to vector<2x128xf32>
    %432 = vector.extract_strided_slice %422 {offsets = [0, 128], sizes = [2, 128], strides = [1, 1]} : vector<2x384xf32> to vector<2x128xf32>
    %433 = arith.addf %431, %432 : vector<2x128xf32>
    %434 = arith.negf %433 : vector<2x128xf32>
    %435 = math.exp %434 : vector<2x128xf32>
    %cst_106 = arith.constant 1.000000e+00 : f32
    %436 = vector.broadcast %cst_106 : f32 to vector<2x128xf32>
    %437 = arith.addf %436, %435 : vector<2x128xf32>
    %438 = arith.divf %436, %437 : vector<2x128xf32>
    %439 = vector.extract_strided_slice %419 {offsets = [0, 256], sizes = [2, 128], strides = [1, 1]} : vector<2x384xf32> to vector<2x128xf32>
    %440 = vector.extract_strided_slice %422 {offsets = [0, 256], sizes = [2, 128], strides = [1, 1]} : vector<2x384xf32> to vector<2x128xf32>
    %441 = arith.addf %440, %18 : vector<2x128xf32>
    %442 = arith.mulf %430, %441 : vector<2x128xf32>
    %443 = arith.addf %439, %442 : vector<2x128xf32>
    %444 = math.tanh %443 : vector<2x128xf32>
    %445 = arith.subf %386, %444 : vector<2x128xf32>
    %446 = arith.mulf %438, %445 : vector<2x128xf32>
    %447 = arith.addf %444, %446 : vector<2x128xf32>
    %448 = vector.extract_strided_slice %9 {offsets = [14, 0], sizes = [2, 384], strides = [1, 1]} : vector<16x384xf32> to vector<2x384xf32>
    %449 = arith.truncf %415 : vector<2x128xf32> to vector<2x128xbf16>
    %c0_107 = arith.constant 0 : index
    %c0_108 = arith.constant 0 : index
    %450 = vector.load %arg3[%c0_107, %c0_108] : memref<128x384xbf16, #tpu.memory_space<vmem>>, vector<128x384xbf16>
    %cst_109 = arith.constant dense<0.000000e+00> : vector<2x384xf32>
    %451 = tpu.matmul %449, %450, %cst_109 {dimension_numbers = #tpu.dot_dimension_numbers<[1], [0], [0], [1], [0, 0, 1, 1], [], []>} : vector<2x128xbf16>, vector<128x384xbf16>, vector<2x384xf32> -> vector<2x384xf32>
    %452 = vector.extract_strided_slice %448 {offsets = [0, 0], sizes = [2, 128], strides = [1, 1]} : vector<2x384xf32> to vector<2x128xf32>
    %453 = vector.extract_strided_slice %451 {offsets = [0, 0], sizes = [2, 128], strides = [1, 1]} : vector<2x384xf32> to vector<2x128xf32>
    %454 = arith.addf %452, %453 : vector<2x128xf32>
    %455 = arith.negf %454 : vector<2x128xf32>
    %456 = math.exp %455 : vector<2x128xf32>
    %cst_110 = arith.constant 1.000000e+00 : f32
    %457 = vector.broadcast %cst_110 : f32 to vector<2x128xf32>
    %458 = arith.addf %457, %456 : vector<2x128xf32>
    %459 = arith.divf %457, %458 : vector<2x128xf32>
    %460 = vector.extract_strided_slice %448 {offsets = [0, 128], sizes = [2, 128], strides = [1, 1]} : vector<2x384xf32> to vector<2x128xf32>
    %461 = vector.extract_strided_slice %451 {offsets = [0, 128], sizes = [2, 128], strides = [1, 1]} : vector<2x384xf32> to vector<2x128xf32>
    %462 = arith.addf %460, %461 : vector<2x128xf32>
    %463 = arith.negf %462 : vector<2x128xf32>
    %464 = math.exp %463 : vector<2x128xf32>
    %cst_111 = arith.constant 1.000000e+00 : f32
    %465 = vector.broadcast %cst_111 : f32 to vector<2x128xf32>
    %466 = arith.addf %465, %464 : vector<2x128xf32>
    %467 = arith.divf %465, %466 : vector<2x128xf32>
    %468 = vector.extract_strided_slice %448 {offsets = [0, 256], sizes = [2, 128], strides = [1, 1]} : vector<2x384xf32> to vector<2x128xf32>
    %469 = vector.extract_strided_slice %451 {offsets = [0, 256], sizes = [2, 128], strides = [1, 1]} : vector<2x384xf32> to vector<2x128xf32>
    %470 = arith.addf %469, %12 : vector<2x128xf32>
    %471 = arith.mulf %459, %470 : vector<2x128xf32>
    %472 = arith.addf %468, %471 : vector<2x128xf32>
    %473 = math.tanh %472 : vector<2x128xf32>
    %474 = arith.subf %415, %473 : vector<2x128xf32>
    %475 = arith.mulf %467, %474 : vector<2x128xf32>
    %476 = arith.addf %473, %475 : vector<2x128xf32>
    %477 = arith.truncf %476 : vector<2x128xf32> to vector<2x128xbf16>
    %c0_112 = arith.constant 0 : index
    %c0_113 = arith.constant 0 : index
    %478 = vector.load %arg6[%c0_112, %c0_113] : memref<128x384xbf16, #tpu.memory_space<vmem>>, vector<128x384xbf16>
    %cst_114 = arith.constant dense<0.000000e+00> : vector<2x384xf32>
    %479 = tpu.matmul %477, %478, %cst_114 {dimension_numbers = #tpu.dot_dimension_numbers<[1], [0], [0], [1], [0, 0, 1, 1], [], []>} : vector<2x128xbf16>, vector<128x384xbf16>, vector<2x384xf32> -> vector<2x384xf32>
    %480 = arith.addf %479, %15 : vector<2x384xf32>
    %481 = arith.truncf %447 : vector<2x128xf32> to vector<2x128xbf16>
    %c0_115 = arith.constant 0 : index
    %c0_116 = arith.constant 0 : index
    %482 = vector.load %arg7[%c0_115, %c0_116] : memref<128x384xbf16, #tpu.memory_space<vmem>>, vector<128x384xbf16>
    %cst_117 = arith.constant dense<0.000000e+00> : vector<2x384xf32>
    %483 = tpu.matmul %481, %482, %cst_117 {dimension_numbers = #tpu.dot_dimension_numbers<[1], [0], [0], [1], [0, 0, 1, 1], [], []>} : vector<2x128xbf16>, vector<128x384xbf16>, vector<2x384xf32> -> vector<2x384xf32>
    %484 = vector.extract_strided_slice %480 {offsets = [0, 0], sizes = [2, 128], strides = [1, 1]} : vector<2x384xf32> to vector<2x128xf32>
    %485 = vector.extract_strided_slice %483 {offsets = [0, 0], sizes = [2, 128], strides = [1, 1]} : vector<2x384xf32> to vector<2x128xf32>
    %486 = arith.addf %484, %485 : vector<2x128xf32>
    %487 = arith.negf %486 : vector<2x128xf32>
    %488 = math.exp %487 : vector<2x128xf32>
    %cst_118 = arith.constant 1.000000e+00 : f32
    %489 = vector.broadcast %cst_118 : f32 to vector<2x128xf32>
    %490 = arith.addf %489, %488 : vector<2x128xf32>
    %491 = arith.divf %489, %490 : vector<2x128xf32>
    %492 = vector.extract_strided_slice %480 {offsets = [0, 128], sizes = [2, 128], strides = [1, 1]} : vector<2x384xf32> to vector<2x128xf32>
    %493 = vector.extract_strided_slice %483 {offsets = [0, 128], sizes = [2, 128], strides = [1, 1]} : vector<2x384xf32> to vector<2x128xf32>
    %494 = arith.addf %492, %493 : vector<2x128xf32>
    %495 = arith.negf %494 : vector<2x128xf32>
    %496 = math.exp %495 : vector<2x128xf32>
    %cst_119 = arith.constant 1.000000e+00 : f32
    %497 = vector.broadcast %cst_119 : f32 to vector<2x128xf32>
    %498 = arith.addf %497, %496 : vector<2x128xf32>
    %499 = arith.divf %497, %498 : vector<2x128xf32>
    %500 = vector.extract_strided_slice %480 {offsets = [0, 256], sizes = [2, 128], strides = [1, 1]} : vector<2x384xf32> to vector<2x128xf32>
    %501 = vector.extract_strided_slice %483 {offsets = [0, 256], sizes = [2, 128], strides = [1, 1]} : vector<2x384xf32> to vector<2x128xf32>
    %502 = arith.addf %501, %18 : vector<2x128xf32>
    %503 = arith.mulf %491, %502 : vector<2x128xf32>
    %504 = arith.addf %500, %503 : vector<2x128xf32>
    %505 = math.tanh %504 : vector<2x128xf32>
    %506 = arith.subf %447, %505 : vector<2x128xf32>
    %507 = arith.mulf %499, %506 : vector<2x128xf32>
    %508 = arith.addf %505, %507 : vector<2x128xf32>
    %509 = tpu.concatenate %81, %142, %203, %264, %325, %386, %447, %508 in 0 : vector<2x128xf32>, vector<2x128xf32>, vector<2x128xf32>, vector<2x128xf32>, vector<2x128xf32>, vector<2x128xf32>, vector<2x128xf32>, vector<2x128xf32> -> vector<16x128xf32>
    %c0_120 = arith.constant 0 : index
    %c0_121 = arith.constant 0 : index
    %510 = vector.load %arg10[%c0_120, %c0_121] : memref<16x128xf32, #tpu.memory_space<vmem>>, vector<16x128xf32>
    tpu.vector_store %arg10[%c0_120, %c0_121], %509 {strides = array<i32>} : memref<16x128xf32, #tpu.memory_space<vmem>>, vector<16x128xf32>,
    %c0_122 = arith.constant 0 : index
    %c0_123 = arith.constant 0 : index
    %511 = vector.load %arg11[%c0_122, %c0_123] : memref<2x128xf32, #tpu.memory_space<vmem>>, vector<2x128xf32>
    tpu.vector_store %arg11[%c0_122, %c0_123], %476 {strides = array<i32>} : memref<2x128xf32, #tpu.memory_space<vmem>>, vector<2x128xf32>,
    %c0_124 = arith.constant 0 : index
    %c0_125 = arith.constant 0 : index
    %512 = vector.load %arg12[%c0_124, %c0_125] : memref<2x128xf32, #tpu.memory_space<vmem>>, vector<2x128xf32>
    tpu.vector_store %arg12[%c0_124, %c0_125], %508 {strides = array<i32>} : memref<2x128xf32, #tpu.memory_space<vmem>>, vector<2x128xf32>,
    return
  }
  func.func @transform_0(%arg0: i32) -> (i32, i32) {
    %c0_i32 = arith.constant 0 : i32
    %c0_i32_0 = arith.constant 0 : i32
    return %arg0, %c0_i32 : i32, i32
  }
  func.func @transform_1(%arg0: i32) -> (i32, i32) {
    %c0_i32 = arith.constant 0 : i32
    %c0_i32_0 = arith.constant 0 : i32
    %c0_i32_1 = arith.constant 0 : i32
    return %c0_i32, %c0_i32_0 : i32, i32
  }
  func.func @transform_2(%arg0: i32) -> (i32, i32) {
    %c0_i32 = arith.constant 0 : i32
    %c0_i32_0 = arith.constant 0 : i32
    %c0_i32_1 = arith.constant 0 : i32
    return %c0_i32, %c0_i32_0 : i32, i32
  }
  func.func @transform_3(%arg0: i32) -> (i32, i32) {
    %c0_i32 = arith.constant 0 : i32
    %c0_i32_0 = arith.constant 0 : i32
    %c0_i32_1 = arith.constant 0 : i32
    return %c0_i32, %c0_i32_0 : i32, i32
  }
  func.func @transform_4(%arg0: i32) -> (i32, i32) {
    %c0_i32 = arith.constant 0 : i32
    %c0_i32_0 = arith.constant 0 : i32
    %c0_i32_1 = arith.constant 0 : i32
    return %c0_i32, %c0_i32_0 : i32, i32
  }
  func.func @transform_5(%arg0: i32) -> (i32, i32) {
    %c0_i32 = arith.constant 0 : i32
    %c0_i32_0 = arith.constant 0 : i32
    %c0_i32_1 = arith.constant 0 : i32
    return %c0_i32, %c0_i32_0 : i32, i32
  }
  func.func @transform_6(%arg0: i32) -> (i32, i32) {
    %c0_i32 = arith.constant 0 : i32
    %c0_i32_0 = arith.constant 0 : i32
    %c0_i32_1 = arith.constant 0 : i32
    return %c0_i32, %c0_i32_0 : i32, i32
  }
  func.func @transform_7(%arg0: i32) -> (i32, i32) {
    %c0_i32 = arith.constant 0 : i32
    %c0_i32_0 = arith.constant 0 : i32
    %c0_i32_1 = arith.constant 0 : i32
    return %c0_i32, %c0_i32_0 : i32, i32
  }
  func.func @transform_8(%arg0: i32) -> (i32, i32) {
    %c0_i32 = arith.constant 0 : i32
    %c0_i32_0 = arith.constant 0 : i32
    %c0_i32_1 = arith.constant 0 : i32
    return %c0_i32, %c0_i32_0 : i32, i32
  }
  func.func @transform_9(%arg0: i32) -> (i32, i32) {
    %c0_i32 = arith.constant 0 : i32
    %c0_i32_0 = arith.constant 0 : i32
    return %arg0, %c0_i32 : i32, i32
  }
}

</mosaic_0001>

<bundles_post_ra>
// kernel: encoder_forward.1
= control target key start
LH: loop header
LB: loop body
LE: loop exit
PB: predicated region body
PF: predicated region fallthrough
CT: control target
= control target key end

     0   :  { %vm60_vm0 = vcmask 1041408   ;;  %v3022_v14 = vmov 0.0   ;;  %vm56_vm1 = vcmask 31744   ;;  %s4555_s2 = inlined_call_operand.vmem [shape: bf16[128,384], index: 2, kind: input, shape index: {}]   ;;  %s4556_s1 = inlined_call_operand.vmem [shape: bf16[4,384], index: 1, kind: input, shape index: {}]   ;;  %s4557_s0 = inlined_call_operand.vmem [shape: f32[16,4], index: 0, kind: input, shape index: {}]   ;;  %s4558_s4 = inlined_call_operand.vmem [shape: f32[1,128], index: 4, kind: input, shape index: {}]   ;;  %s4559_s6 = inlined_call_operand.vmem [shape: bf16[128,384], index: 6, kind: input, shape index: {}]   ;;  %s4560_s5 = inlined_call_operand.vmem [shape: bf16[128,384], index: 5, kind: input, shape index: {}]   ;;  %s4561_s3 = inlined_call_operand.vmem [shape: f32[1,384], index: 3, kind: input, shape index: {}]   ;;  %s4562_s8 = inlined_call_operand.vmem [shape: f32[1,128], index: 8, kind: input, shape index: {}]   ;;  %s4563_s7 = inlined_call_operand.vmem [shape: f32[1,384], index: 7, kind: input, shape index: {}]   ;;  %s4564_s9 = inlined_call_operand.vmem [shape: f32[16,128], index: 9, kind: output, shape index: {}]  }
   0x1   :  { %v2549_v0 = vld [vmem:[%s4555_s2 + $0xa8] sm:$0xf]  ;;  %v2805_v1 = vld [vmem:[%s4555_s2 + $0xb0] sm:$0xf0]  ;;  %v2537_v2 = vld [vmem:[%s4555_s2 + $0x90] sm:$0xf] }
   0x2   :  { %v3082_v3 = vor.u32 %v2805_v1, %v2549_v0  ;;  %v2802_v4 = vld [vmem:[%s4555_s2 + $0x98] sm:$0xf0]  ;;  %v42_v5 = vld [vmem:[%s4556_s1] sm:$0x3f]  ;;  %v2525_v7 = vld [vmem:[%s4555_s2 + $0x78] sm:$0xf] }
   0x3   :  { %52 = vst [vmem:[#allocation1] ss:$4 sm:$0xff] %v42_v5  ;;  %v3091_v6 = vor.u32 %v2802_v4, %v2537_v2  ;;  %v2799_v8 = vld [vmem:[%s4555_s2 + $0x80] sm:$0xf0]  ;;  %v2804_v9 = vld [vmem:[%s4555_s2 + $0xac] sm:$0xf] }
   0x4   :  { %288 = vmatpush.bf16.msra.mxu3 %v3082_v3  ;;  %v2551_v10 = vld [vmem:[%s4555_s2 + $0xb4] sm:$0xf0]  ;;  %v3106_v11 = vor.u32 %v2799_v8, %v2525_v7  ;;  %v39_v12 = vld [vmem:[%s4557_s0] sm:$0xff]  ;;  %v40_v13 = vld [vmem:[%s4557_s0 + $0x8] sm:$0xff]  ;;  %37 = vst [vmem:[#allocation2] sm:$0x3] %v3022_v14 }
   0x5   :  { %v3114_v15 = vor.u32 %v2804_v9, %v2551_v10  ;;  %v2513_v16 = vld [vmem:[%s4555_s2 + $0x60] sm:$0xf]  ;;  %v2796_v17 = vld [vmem:[%s4555_s2 + $0x68] sm:$0xf0]  ;;  %v2801_v18 = vld [vmem:[%s4555_s2 + $0x94] sm:$0xf]  ;;  %v41_v22 = vpack.c.bf16 %v40_v13, %v39_v12 }
   0x6   :  { %v2539_v20 = vld [vmem:[%s4555_s2 + $0x9c] sm:$0xf0]  ;;  %v2557_v24 = vld [vmem:[%s4555_s2 + $0xb0] sm:$0xf]  ;;  %v3133_v25 = vor.u32 %v2796_v17, %v2513_v16  ;;  %v2501_v26 = vld [vmem:[%s4555_s2 + $0x48] sm:$0xf] }
   0x7   :  { %4679 = vst [vmem:[#allocation4_spill] sm:$0xff] %v3114_v15  ;;  %v2806_v28 = vld [vmem:[%s4555_s2 + $0xb8] sm:$0xf0]  ;;  %v3143_v29 = vor.u32 %v2801_v18, %v2539_v20  ;;  %v2793_v30 = vld [vmem:[%s4555_s2 + $0x50] sm:$0xf0] }
   0x8   :  { %289 = vmatpush.bf16.msra.mxu3 %v3091_v6  ;;  %v2798_v31 = vld [vmem:[%s4555_s2 + $0x7c] sm:$0xf]  ;;  %v2527_v32 = vld [vmem:[%s4555_s2 + $0x84] sm:$0xf0]  ;;  %v3154_v33 = vor.u32 %v2806_v28, %v2557_v24  ;;  %v2545_v34 = vld [vmem:[%s4555_s2 + $0x98] sm:$0xf]  ;;  %v3167_v37 = vor.u32 %v2793_v30, %v2501_v26 }
   0x9   :  { %4680 = vst [vmem:[#allocation5_spill] sm:$0xff] %v3143_v29  ;;  %v2803_v35 = vld [vmem:[%s4555_s2 + $0xa0] sm:$0xf0]  ;;  %v2533_v38 = vld [vmem:[%s4555_s2 + $0x80] sm:$0xf]  ;;  %v3177_v40 = vor.u32 %v2798_v31, %v2527_v32 }
   0xa   :  { %v53_v19 = vld.sshfl [vmem:[#allocation1] sm:$0xff pattern:$0x73625140]  ;;  %v54_v23 = vld.sshfl [vmem:[#allocation1 + $0x8] sm:$0xff pattern:$0x73625140]  ;;  %v3164_v36 = vor.u32 %v2803_v35, %v2545_v34 }
   0xb   :  { %v61_v21 = vsel %vm60_vm0, %v53_v19, 0  ;;  %v63_v27 = vsel %vm60_vm0, %v54_v23, 0  ;;  %38 = vst [vmem:[#allocation3] sm:$0x3] %v3022_v14  ;;  %v2800_v39 = vld [vmem:[%s4555_s2 + $0x88] sm:$0xf0] }
   0xc   :  { %74 = vmatpush.bf16.msra.mxu0 %v61_v21  ;;  %290 = vmatpush.bf16.msra.mxu3 %v3106_v11  ;;  %4681 = vst [vmem:[#allocation6_spill] sm:$0xff] %v3167_v37  ;;  %v2489_v41 = vld [vmem:[%s4555_s2 + $0x30] sm:$0xf]  ;;  %v2790_v42 = vld [vmem:[%s4555_s2 + $0x38] sm:$0xf0]  ;;  %v3192_v45 = vor.u32 %v2800_v39, %v2533_v38 }
   0xd   :  { %88 = vmatpush.bf16.msra.mxu1 %v63_v27  ;;  %4682 = vst [vmem:[#allocation7_spill] sm:$0xff] %v3177_v40  ;;  %v2795_v43 = vld [vmem:[%s4555_s2 + $0x64] sm:$0xf]  ;;  %v2515_v44 = vld [vmem:[%s4555_s2 + $0x6c] sm:$0xf0]  ;;  %v3195_v47 = vor.u32 %v2790_v42, %v2489_v41 }
   0xe   :  { %v55_v46 = vld.sshfl [vmem:[#allocation1 + $0x10] sm:$0xff pattern:$0x73625140]  ;;  %v2521_v48 = vld [vmem:[%s4555_s2 + $0x68] sm:$0xf]  ;;  %v3205_v51 = vor.u32 %v2795_v43, %v2515_v44 }
   0xf   :  { %2460 = vmatmul.msk.bf16.vlgmr.msra.gmra.mxu0 %vm56_vm1, %v41_v22  ;;  %4683 = vst [vmem:[#allocation8_spill] sm:$0xff] %v3195_v47  ;;  %v2797_v49 = vld [vmem:[%s4555_s2 + $0x70] sm:$0xf0]  ;;  %v65_v50 = vsel %vm60_vm0, %v55_v46, 0  ;;  %v2477_v52 = vld [vmem:[%s4555_s2 + $0x18] sm:$0xf] }
  0x10   :  { %301 = vmatpush.bf16.msrb.mxu0 %v3114_v15  ;;  %291 = vmatpush.bf16.msra.mxu3 %v3133_v25  ;;  %4684 = vst [vmem:[#allocation9_spill] sm:$0xff] %v3205_v51  ;;  %v2787_v53 = vld [vmem:[%s4555_s2 + $0x20] sm:$0xf0]  ;;  %v2792_v54 = vld [vmem:[%s4555_s2 + $0x4c] sm:$0xf]  ;;  %v3220_v56 = vor.u32 %v2797_v49, %v2521_v48 }
  0x11   :  { %314 = vmatpush.bf16.msrb.mxu1 %v3154_v33  ;;  %102 = vmatpush.bf16.msra.mxu2 %v65_v50  ;;  %v2503_v55 = vld [vmem:[%s4555_s2 + $0x54] sm:$0xf0]  ;;  %v3223_v57 = vor.u32 %v2787_v53, %v2477_v52  ;;  %v2509_v58 = vld [vmem:[%s4555_s2 + $0x50] sm:$0xf]  ;;  %v2794_v59 = vld [vmem:[%s4555_s2 + $0x58] sm:$0xf0] }
  0x12   :  { %2461 = vmatmul.msk.bf16.vlgmr.msra.gmra.mxu1 %vm56_vm1, %v41_v22  ;;  %v3233_v60 = vor.u32 %v2792_v54, %v2503_v55  ;;  %v2465_v61 = vld [vmem:[%s4555_s2] sm:$0xf]  ;;  %v2784_v62 = vld [vmem:[%s4555_s2 + $0x8] sm:$0xf0]  ;;  %v2789_v63 = vld [vmem:[%s4555_s2 + $0x34] sm:$0xf]  ;;  %v3248_v1 = vor.u32 %v2794_v59, %v2509_v58 }
  0x13   :  { %4685 = vst [vmem:[#allocation10_spill] sm:$0xff] %v3223_v57  ;;  %v2491_v0 = vld [vmem:[%s4555_s2 + $0x3c] sm:$0xf0]  ;;  %v3251_v2 = vor.u32 %v2784_v62, %v2465_v61  ;;  %v3253_v4 = vld [vmem:[#allocation2] sm:$0x3] }
  0x14   :  { %302 = vmatpush.bf16.msrb.mxu0 %v3143_v29  ;;  %292 = vmatpush.bf16.msra.mxu3 %v3167_v37  ;;  %4686 = vst [vmem:[#allocation11_spill] sm:$0xff] %v3233_v60  ;;  %v2497_v5 = vld [vmem:[%s4555_s2 + $0x38] sm:$0xf]  ;;  %v2791_v7 = vld [vmem:[%s4555_s2 + $0x40] sm:$0xf0]  ;;  %v3262_v8 = vor.u32 %v2789_v63, %v2491_v0  ;;  %v127_v12 = vpack.c.bf16 %v3253_v4, %v3253_v4 }
  0x15   :  { %315 = vmatpush.bf16.msrb.mxu1 %v3164_v36  ;;  %2462 = vmatmul.msk.bf16.vlgmr.msra.gmra.mxu2 %vm56_vm1, %v41_v22  ;;  %4687 = vst [vmem:[#allocation12_spill] sm:$0xff] %v3251_v2  ;;  %v2786_v9 = vld [vmem:[%s4555_s2 + $0x1c] sm:$0xf]  ;;  %v2479_v10 = vld [vmem:[%s4555_s2 + $0x24] sm:$0xf0]  ;;  %v3273_v13 = vor.u32 %v2791_v7, %v2497_v5 }
  0x16   :  { %4688 = vst [vmem:[#allocation13_spill] sm:$0xff] %v3262_v8  ;;  %v2485_v14 = vld [vmem:[%s4555_s2 + $0x20] sm:$0xf]  ;;  %v2788_v16 = vld [vmem:[%s4555_s2 + $0x28] sm:$0xf0]  ;;  %v3283_v17 = vor.u32 %v2786_v9, %v2479_v10 }
  0x17   :  { %v2783_v18 = vld [vmem:[%s4555_s2 + $0x4] sm:$0xf]  ;;  %v2467_v19 = vld [vmem:[%s4555_s2 + $0xc] sm:$0xf0]  ;;  %v3292_v20 = vor.u32 %v2788_v16, %v2485_v14  ;;  %v2473_v21 = vld [vmem:[%s4555_s2 + $0x8] sm:$0xf] }
  0x18   :  { %303 = vmatpush.bf16.msrb.mxu0 %v3177_v40  ;;  %293 = vmatpush.bf16.msra.mxu3 %v3195_v47  ;;  %4689 = vst [vmem:[#allocation14_spill] sm:$0xff] %v3283_v17  ;;  %v2785_v22 = vld [vmem:[%s4555_s2 + $0x10] sm:$0xf0]  ;;  %v3301_v23 = vor.u32 %v2783_v18, %v2467_v19  ;;  %v2743_v26 = vld [vmem:[%s4559_s6 + $0xa8] sm:$0xf] }
  0x19   :  { %316 = vmatpush.bf16.msrb.mxu1 %v3192_v45  ;;  %v3304_v24 = vor.u32 %v2785_v22, %v2473_v21  ;;  %v2853_v27 = vld [vmem:[%s4559_s6 + $0xb0] sm:$0xf0]  ;;  %v2647_v28 = vld [vmem:[%s4560_s5 + $0xa8] sm:$0xf]  ;;  %v2731_v34 = vld [vmem:[%s4559_s6 + $0x90] sm:$0xf] }
  0x1a   :  { %4690 = vst [vmem:[#allocation15_spill] sm:$0xff] %v3301_v23  ;;  %v3317_v30 = vor.u32 %v2853_v27, %v2743_v26  ;;  %v2829_v31 = vld [vmem:[%s4560_s5 + $0xb0] sm:$0xf0]  ;;  %v2850_v35 = vld [vmem:[%s4559_s6 + $0x98] sm:$0xf0] }
  0x1b   :  { %4691 = vst [vmem:[#allocation16_spill] sm:$0xff] %v3304_v24  ;;  %v3322_v32 = vor.u32 %v2829_v31, %v2647_v28  ;;  %v2635_v38 = vld [vmem:[%s4560_s5 + $0x90] sm:$0xf]  ;;  %v3335_v39 = vor.u32 %v2850_v35, %v2731_v34  ;;  %v2826_v41 = vld [vmem:[%s4560_s5 + $0x98] sm:$0xf0] }
  0x1c   :  { %304 = vmatpush.bf16.msrb.mxu0 %v3205_v51  ;;  %294 = vmatpush.bf16.msra.mxu3 %v3223_v57  ;;  %4692 = vst [vmem:[#allocation17_spill] sm:$0xff] %v3317_v30  ;;  %v2719_v42 = vld [vmem:[%s4559_s6 + $0x78] sm:$0xf]  ;;  %v2847_v43 = vld [vmem:[%s4559_s6 + $0x80] sm:$0xf0]  ;;  %v3346_v44 = vor.u32 %v2826_v41, %v2635_v38 }
  0x1d   :  { %317 = vmatpush.bf16.msrb.mxu1 %v3220_v56  ;;  %535 = vmatpush.bf16.msrb.mxu2 %v3322_v32  ;;  %4693 = vst [vmem:[#allocation18_spill] sm:$0xff] %v3335_v39  ;;  %v3349_v46 = vor.u32 %v2847_v43, %v2719_v42  ;;  %v2623_v48 = vld [vmem:[%s4560_s5 + $0x78] sm:$0xf]  ;;  %v2823_v49 = vld [vmem:[%s4560_s5 + $0x80] sm:$0xf0] }
  0x1e   :  { %v3359_v50 = vor.u32 %v2823_v49, %v2623_v48  ;;  %v2707_v52 = vld [vmem:[%s4559_s6 + $0x60] sm:$0xf]  ;;  %v2844_v53 = vld [vmem:[%s4559_s6 + $0x68] sm:$0xf0]  ;;  %v2655_v61 = vld [vmem:[%s4560_s5 + $0xb0] sm:$0xf] }
  0x1f   :  { %4694 = vst [vmem:[#allocation19_spill] sm:$0xff] %v3349_v46  ;;  %v3367_v54 = vor.u32 %v2844_v53, %v2707_v52  ;;  %v2611_v55 = vld [vmem:[%s4560_s5 + $0x60] sm:$0xf]  ;;  %v2820_v58 = vld [vmem:[%s4560_s5 + $0x68] sm:$0xf0] }
  0x20   :  { %305 = vmatpush.bf16.msrb.mxu0 %v3233_v60  ;;  %295 = vmatpush.bf16.msra.mxu3 %v3251_v2  ;;  %v3377_v59 = vor.u32 %v2820_v58, %v2611_v55  ;;  %v2830_v62 = vld [vmem:[%s4560_s5 + $0xb8] sm:$0xf0]  ;;  %v2695_v63 = vld [vmem:[%s4559_s6 + $0x48] sm:$0xf]  ;;  %v2841_v5 = vld [vmem:[%s4559_s6 + $0x50] sm:$0xf0] }
  0x21   :  { %318 = vmatpush.bf16.msrb.mxu1 %v3248_v1  ;;  %536 = vmatpush.bf16.msrb.mxu2 %v3346_v44  ;;  %4695 = vst [vmem:[#allocation20_spill] sm:$0xff] %v3367_v54  ;;  %v3388_v0 = vor.u32 %v2830_v62, %v2655_v61  ;;  %v3394_v7 = vor.u32 %v2841_v5, %v2695_v63  ;;  %v2599_v9 = vld [vmem:[%s4560_s5 + $0x48] sm:$0xf]  ;;  %v2817_v10 = vld [vmem:[%s4560_s5 + $0x50] sm:$0xf0] }
  0x22   :  { %v2643_v14 = vld [vmem:[%s4560_s5 + $0x98] sm:$0xf]  ;;  %v2827_v16 = vld [vmem:[%s4560_s5 + $0xa0] sm:$0xf0]  ;;  %v2683_v18 = vld [vmem:[%s4559_s6 + $0x30] sm:$0xf] }
  0x23   :  { %296 = vmatmul.bf16.vlgmr.msra.gmra.mxu3 %v127_v12  ;;  %4696 = vst [vmem:[#allocation21_spill] sm:$0xff] %v3388_v0  ;;  %v3415_v19 = vor.u32 %v2827_v16, %v2643_v14  ;;  %v2838_v21 = vld [vmem:[%s4559_s6 + $0x38] sm:$0xf0]  ;;  %v2587_v26 = vld [vmem:[%s4560_s5 + $0x30] sm:$0xf] }
  0x24   :  { %306 = vmatpush.bf16.msrb.mxu0 %v3262_v8  ;;  %4697 = vst [vmem:[#allocation22_spill] sm:$0xff] %v3394_v7  ;;  %v3421_v22 = vor.u32 %v2838_v21, %v2683_v18  ;;  %v2814_v27 = vld [vmem:[%s4560_s5 + $0x38] sm:$0xf0]  ;;  %v2631_v31 = vld [vmem:[%s4560_s5 + $0x80] sm:$0xf] }
  0x25   :  { %319 = vmatpush.bf16.msrb.mxu1 %v3273_v13  ;;  %537 = vmatpush.bf16.msrb.mxu2 %v3359_v50  ;;  %4698 = vst [vmem:[#allocation23_spill] sm:$0xff] %v3415_v19  ;;  %v3431_v28 = vor.u32 %v2814_v27, %v2587_v26  ;;  %v2824_v34 = vld [vmem:[%s4560_s5 + $0x88] sm:$0xf0]  ;;  %v2671_v35 = vld [vmem:[%s4559_s6 + $0x18] sm:$0xf] }
  0x26   :  { %4699 = vst [vmem:[#allocation24_spill] sm:$0xff] %v3421_v22  ;;  %v3442_v38 = vor.u32 %v2824_v34, %v2631_v31  ;;  %v2835_v41 = vld [vmem:[%s4559_s6 + $0x20] sm:$0xf0]  ;;  %v2575_v48 = vld [vmem:[%s4560_s5 + $0x18] sm:$0xf] }
  0x27   :  { %v3448_v42 = vor.u32 %v2835_v41, %v2671_v35  ;;  %v2811_v49 = vld [vmem:[%s4560_s5 + $0x20] sm:$0xf0]  ;;  %v2619_v53 = vld [vmem:[%s4560_s5 + $0x68] sm:$0xf]  ;;  %v2821_v55 = vld [vmem:[%s4560_s5 + $0x70] sm:$0xf0] }
  0x28   :  { %307 = vmatpush.bf16.msrb.mxu0 %v3283_v17  ;;  %4700 = vst [vmem:[#allocation25_spill] sm:$0xff] %v3442_v38  ;;  %v3458_v52 = vor.u32 %v2811_v49, %v2575_v48  ;;  %v2659_v58 = vld [vmem:[%s4559_s6] sm:$0xf]  ;;  %v3469_v61 = vor.u32 %v2821_v55, %v2619_v53  ;;  %v2832_v62 = vld [vmem:[%s4559_s6 + $0x8] sm:$0xf0] }
  0x29   :  { %320 = vmatpush.bf16.msrb.mxu1 %v3292_v20  ;;  %538 = vmatpush.bf16.msrb.mxu2 %v3377_v59  ;;  %4701 = vst [vmem:[#allocation26_spill] sm:$0xff] %v3448_v42  ;;  %v2828_v63 = vld [vmem:[%s4560_s5 + $0xac] sm:$0xf]  ;;  %v2649_v5 = vld [vmem:[%s4560_s5 + $0xb4] sm:$0xf0] }
  0x2a   :  { %v3488_v14 = vld [vmem:[%s4561_s3] sm:$0x7]  ;;  %v2808_v21 = vld [vmem:[%s4560_s5 + $0x8] sm:$0xf0]  ;;  %v2607_v27 = vld [vmem:[%s4560_s5 + $0x50] sm:$0xf] }
  0x2b   :  { %4703 = vst [vmem:[#allocation28_spill] sm:$0xff] %v3488_v14  ;;  %v2563_v18 = vld [vmem:[%s4560_s5] sm:$0xf]  ;;  %v2818_v31 = vld [vmem:[%s4560_s5 + $0x58] sm:$0xf0] }
  0x2c   :  { %308 = vmatpush.bf16.msrb.mxu0 %v3301_v23  ;;  %v3499_v26 = vor.u32 %v2808_v21, %v2563_v18  ;;  %v2852_v34 = vld [vmem:[%s4559_s6 + $0xac] sm:$0xf]  ;;  %v3511_v35 = vor.u32 %v2818_v31, %v2607_v27  ;;  %v2745_v41 = vld [vmem:[%s4559_s6 + $0xb4] sm:$0xf0]  ;;  %v2825_v48 = vld [vmem:[%s4560_s5 + $0x94] sm:$0xf] }
  0x2d   :  { %321 = vmatpush.bf16.msrb.mxu1 %v3304_v24  ;;  %v2637_v49 = vld [vmem:[%s4560_s5 + $0x9c] sm:$0xf0]  ;;  %v3523_v53 = vor.u32 %v2852_v34, %v2745_v41  ;;  %v2822_v31 = vld [vmem:[%s4560_s5 + $0x7c] sm:$0xf]  ;;  %v2625_v34 = vld [vmem:[%s4560_s5 + $0x84] sm:$0xf0] }
  0x2e   :  { %4704 = vst [vmem:[#allocation29_spill] sm:$0xff] %v3499_v26  ;;  %v3525_v55 = vor.u32 %v2825_v48, %v2637_v49  ;;  %v2733_v27 = vld [vmem:[%s4559_s6 + $0x9c] sm:$0xf0]  ;;  %v3556_v48 = vor.u32 %v2822_v31, %v2625_v34  ;;  %v2846_v34 = vld [vmem:[%s4559_s6 + $0x7c] sm:$0xf] }
  0x2f   :  { %309 = vmatmul.bf16.vlgmr.msrb.gmra.mxu0 %v127_v12  ;;  %4705 = vst [vmem:[#allocation30_spill] sm:$0xff] %v3523_v53 }
  0x30   :  { %322 = vmatmul.bf16.vlgmr.msrb.gmra.mxu1 %v127_v12  ;;  %561 = vmatpush.bf16.msra.mxu0 %v3388_v0  ;;  %v3404_v12 = vor.u32 %v2817_v10, %v2599_v9  ;;  %v3481_v9 = vor.u32 %v2832_v62, %v2659_v58  ;;  %v3483_v10 = vor.u32 %v2828_v63, %v2649_v5  ;;  %v4565_v58 = vperm.slane %v3488_v14, 0  ;;  %v2595_v62 = vld [vmem:[%s4560_s5 + $0x38] sm:$0xf]  ;;  %v2815_v63 = vld [vmem:[%s4560_s5 + $0x40] sm:$0xf0] }
  0x31   :  { %735 = vmatpush.bf16.msra.mxu1 %v3317_v30  ;;  %v2849_v5 = vld [vmem:[%s4559_s6 + $0x94] sm:$0xf]  ;;  %v3543_v21 = vor.u32 %v2815_v63, %v2595_v62  ;;  %v2583_v63 = vld [vmem:[%s4560_s5 + $0x20] sm:$0xf]  ;;  %v2721_v62 = vld [vmem:[%s4559_s6 + $0x84] sm:$0xf0] }
  0x32   :  { %539 = vmatpush.bf16.msrb.mxu2 %v3404_v12  ;;  %4702 = vst [vmem:[#allocation27_spill] sm:$0xff] %v3481_v9  ;;  %548 = vmatpush.bf16.msrb.mxu3 %v3483_v10  ;;  %v3554_v41 = vor.u32 %v2849_v5, %v2733_v27  ;;  %v2812_v5 = vld [vmem:[%s4560_s5 + $0x28] sm:$0xf0] }
  0x33   :  { %v3575_v31 = vor.u32 %v2812_v5, %v2583_v63  ;;  %v4711_v5 = vperm.slane %v3488_v14, 1 }
  0x34   :  { %562 = vmatpush.bf16.msra.mxu0 %v3415_v19  ;;  %4707 = vst [vmem:[#allocation32_spill] sm:$0xff] %v3554_v41 }
  0x35   :  { %736 = vmatpush.bf16.msra.mxu1 %v3335_v39 }
  0x36   :  { %540 = vmatpush.bf16.msrb.mxu2 %v3431_v28  ;;  %549 = vmatpush.bf16.msrb.mxu3 %v3525_v55 }
  0x38   :  { %563 = vmatpush.bf16.msra.mxu0 %v3442_v38 }
  0x39   :  { %737 = vmatpush.bf16.msra.mxu1 %v3349_v46 }
  0x3a   :  { %541 = vmatpush.bf16.msrb.mxu2 %v3458_v52  ;;  %550 = vmatpush.bf16.msrb.mxu3 %v3556_v48 }
  0x3c   :  { %564 = vmatpush.bf16.msra.mxu0 %v3469_v61 }
  0x3d   :  { %738 = vmatpush.bf16.msra.mxu1 %v3367_v54 }
  0x3e   :  { %542 = vmatpush.bf16.msrb.mxu2 %v3499_v26 }
  0x40   :  { %565 = vmatpush.bf16.msra.mxu0 %v3511_v35 }
  0x41   :  { %739 = vmatpush.bf16.msra.mxu1 %v3394_v7 }
  0x42   :  { %748 = vmatpush.bf16.msra.mxu2 %v3523_v53 }
  0x44   :  { %566 = vmatpush.bf16.msra.mxu0 %v3543_v21 }
  0x45   :  { %740 = vmatpush.bf16.msra.mxu1 %v3421_v22 }
  0x46   :  { %749 = vmatpush.bf16.msra.mxu2 %v3554_v41 }
  0x48   :  { %567 = vmatpush.bf16.msra.mxu0 %v3575_v31 }
  0x49   :  { %741 = vmatpush.bf16.msra.mxu1 %v3448_v42 }
  0x4d   :  { %742 = vmatpush.bf16.msra.mxu1 %v3481_v9 }
  0x51   :  { %834 = vmatpush.bf16.msrb.mxu1 %v3114_v15  ;;  %v2709_v15 = vld [vmem:[%s4559_s6 + $0x6c] sm:$0xf0] }
  0x55   :  { %835 = vmatpush.bf16.msrb.mxu1 %v3143_v29  ;;  %v3605_v29 = vld [vmem:[#allocation3] sm:$0x3] }
  0x56   :  { %4713 = vst [vmem:[#allocation37_spill] sm:$0xff] %v3605_v29 }
  0x59   :  { %836 = vmatpush.bf16.msrb.mxu1 %v3177_v40 }
  0x5d   :  { %837 = vmatpush.bf16.msrb.mxu1 %v3205_v51 }
  0x61   :  { %838 = vmatpush.bf16.msrb.mxu1 %v3233_v60 }
  0x65   :  { %839 = vmatpush.bf16.msrb.mxu1 %v3262_v8 }
  0x69   :  { %840 = vmatpush.bf16.msrb.mxu1 %v3283_v17 }
  0x6d   :  { %841 = vmatpush.bf16.msrb.mxu1 %v3301_v23 }
  0x8c   :  { %v76_v43 = vpop.f32.mrf.mxu0 }
  0x8d   :  { %v3572_v27 = vadd.f32 %v76_v43, %v4565_v58  ;;  %v2613_v43 = vld [vmem:[%s4560_s5 + $0x6c] sm:$0xf0] }
  0x8f   :  { %v90_v16 = vpop.f32.mrf.mxu1  ;;  %4709 = vst [vmem:[#allocation34_spill] sm:$0xff] %v3572_v27 }
  0x90   :  { %v3596_v58 = vadd.f32 %v90_v16, %v4711_v5  ;;  %v2843_v5 = vld [vmem:[%s4559_s6 + $0x64] sm:$0xf] }
  0x92   :  { %4712 = vst [vmem:[#allocation36_spill] sm:$0xff] %v3596_v58 }
  0x94   :  { %v3540_v18 = vpop.f32.mrf.mxu0 }
  0x95   :  { %4706 = vst [vmem:[#allocation31_spill] sm:$0xff] %v3540_v18  ;;  %v2819_v18 = vld [vmem:[%s4560_s5 + $0x64] sm:$0xf] }
  0x96   :  { %v3592_v63 = vor.u32 %v2819_v18, %v2613_v43  ;;  %v3614_v43 = vpack.c.bf16 %v3605_v29, %v3605_v29 }
  0x97   :  { %v3558_v49 = vpop.f32.mrf.mxu1 }
  0x98   :  { %4708 = vst [vmem:[#allocation33_spill] sm:$0xff] %v3558_v49  ;;  %v3586_v49 = vor.u32 %v2846_v34, %v2721_v62  ;;  %v2571_v62 = vld [vmem:[%s4560_s5 + $0x8] sm:$0xf]  ;;  %v2809_v34 = vld [vmem:[%s4560_s5 + $0x10] sm:$0xf0]  ;;  %551 = vmatpush.bf16.msrb.mxu3 %v3592_v63  ;;  %743 = vmatmul.bf16.vlgmr.msra.gmra.mxu1 %v3614_v43 }
  0x99   :  { %v3610_v16 = vor.u32 %v2809_v34, %v2571_v62  ;;  %v2601_v62 = vld [vmem:[%s4560_s5 + $0x54] sm:$0xf0]  ;;  %952 = vmatpush.bf16.msra.mxu1 %v3388_v0 }
  0x9a   :  { %4710 = vst [vmem:[#allocation35_spill] sm:$0xff] %v3586_v49  ;;  %750 = vmatpush.bf16.msra.mxu2 %v3586_v49 }
  0x9b   :  { %568 = vmatpush.bf16.msra.mxu0 %v3610_v16 }
  0x9d   :  { %953 = vmatpush.bf16.msra.mxu1 %v3415_v19 }
  0x9f   :  { %821 = vmatpush.bf16.msrb.mxu0 %v3082_v3 }
  0xa1   :  { %954 = vmatpush.bf16.msra.mxu1 %v3442_v38 }
  0xa3   :  { %822 = vmatpush.bf16.msrb.mxu0 %v3091_v6 }
  0xa5   :  { %955 = vmatpush.bf16.msra.mxu1 %v3469_v61 }
  0xa6   :  { %v297_v40 = vpop.f32.mrf.mxu3 }
  0xa7   :  { %v327_v18 = vadd.f32 %v297_v40, %v3572_v27  ;;  %v2816_v40 = vld [vmem:[%s4560_s5 + $0x4c] sm:$0xf]  ;;  %v3625_v27 = vor.u32 %v2843_v5, %v2709_v15  ;;  %823 = vmatpush.bf16.msrb.mxu0 %v3106_v11 }
  0xa8   :  { %v3632_v51 = vor.u32 %v2816_v40, %v2601_v62  ;;  %v2840_v15 = vld [vmem:[%s4559_s6 + $0x4c] sm:$0xf]  ;;  %v2813_v40 = vld [vmem:[%s4560_s5 + $0x34] sm:$0xf]  ;;  %v2589_v62 = vld [vmem:[%s4560_s5 + $0x3c] sm:$0xf0] }
  0xa9   :  { %4714 = vst [vmem:[#allocation38_spill] sm:$0xff] %v3625_v27  ;;  %v2559_v34 = vmul.f32 -1.442695, %v327_v18  ;;  %751 = vmatpush.bf16.msra.mxu2 %v3625_v27  ;;  %v2697_v18 = vld [vmem:[%s4559_s6 + $0x54] sm:$0xf0]  ;;  %v3655_v42 = vor.u32 %v2813_v40, %v2589_v62  ;;  %956 = vmatpush.bf16.msra.mxu1 %v3511_v35 }
  0xaa   :  { %552 = vmatpush.bf16.msrb.mxu3 %v3632_v51  ;;  %v2577_v40 = vld [vmem:[%s4560_s5 + $0x24] sm:$0xf0] }
  0xab   :  { %2858 = vpow2.f32 %v2559_v34  ;;  %824 = vmatpush.bf16.msrb.mxu0 %v3133_v25 }
  0xac   :  { %v310_v29 = vpop.f32.mrf.mxu0 }
  0xad   :  { %v347_v9 = vadd.f32 %v310_v29, %v3596_v58  ;;  %v3643_v5 = vpop.f32.mrf.mxu1  ;;  %v3647_v29 = vor.u32 %v2840_v15, %v2697_v18  ;;  %v2837_v15 = vld [vmem:[%s4559_s6 + $0x34] sm:$0xf]  ;;  %v2685_v18 = vld [vmem:[%s4559_s6 + $0x3c] sm:$0xf0]  ;;  %957 = vmatpush.bf16.msra.mxu1 %v3543_v21 }
  0xae   :  { %v299_v34 = vpop.f32.mrf.mxu3  ;;  %553 = vmatpush.bf16.msrb.mxu3 %v3655_v42 }
  0xaf   :  { %4715 = vst [vmem:[#allocation39_spill] sm:$0xff] %v3647_v29  ;;  %v2560_v58 = vmul.f32 -1.442695, %v347_v9  ;;  %752 = vmatpush.bf16.msra.mxu2 %v3647_v29  ;;  %v3667_v9 = vor.u32 %v2837_v15, %v2685_v18  ;;  %v2834_v15 = vld [vmem:[%s4559_s6 + $0x1c] sm:$0xf]  ;;  %825 = vmatpush.bf16.msrb.mxu0 %v3167_v37 }
  0xb0   :  { %v2673_v18 = vld [vmem:[%s4559_s6 + $0x24] sm:$0xf0]  ;;  %v2831_v29 = vld [vmem:[%s4559_s6 + $0x4] sm:$0xf] }
  0xb1   :  { %2860 = vpow2.f32 %v2560_v58  ;;  %4716 = vst [vmem:[#allocation40_spill] sm:$0xff] %v3667_v9  ;;  %v2810_v58 = vld [vmem:[%s4560_s5 + $0x1c] sm:$0xf]  ;;  %v2859_v34 = vpop.eup %2858  ;;  %958 = vmatpush.bf16.msra.mxu1 %v3575_v31 }
  0xb2   :  { %v3675_v62 = vor.u32 %v2810_v58, %v2577_v40  ;;  %v3677_v22 = vadd.f32 1.0, %v2859_v34  ;;  %v2807_v58 = vld [vmem:[%s4560_s5 + $0x4] sm:$0xf]  ;;  %v2565_v40 = vld [vmem:[%s4560_s5 + $0xc] sm:$0xf0] }
  0xb3   :  { %753 = vmatpush.bf16.msra.mxu2 %v3667_v9  ;;  %v3703_v17 = vor.u32 %v2807_v58, %v2565_v40  ;;  %v2739_v40 = vld [vmem:[%s4559_s6 + $0x98] sm:$0xf]  ;;  %826 = vmatpush.bf16.msrb.mxu0 %v3195_v47 }
  0xb4   :  { %v312_v60 = vpop.f32.mrf.mxu0  ;;  %554 = vmatpush.bf16.msrb.mxu3 %v3675_v62  ;;  %2862 = vrcp.f32 %v3677_v22  ;;  %v343_v7 = vand.u32 2147483648, %v3677_v22  ;;  %vm337_vm3 = vweird.f32 %v3677_v22 }
  0xb5   :  { %v325_v8 = vpop.f32.mrf.mxu1  ;;  %v3689_v60 = vor.u32 %v2834_v15, %v2673_v18  ;;  %4718 = vst [vmem:[#allocation42_spill] sm:$0xff] %v3703_v17  ;;  %v2854_v15 = vld [vmem:[%s4559_s6 + $0xb8] sm:$0xf0]  ;;  %959 = vmatpush.bf16.msra.mxu1 %v3610_v16 }
  0xb6   :  { %v2751_v8 = vld [vmem:[%s4559_s6 + $0xb0] sm:$0xf]  ;;  %v344_v54 = vor.u32 1.1754944e-38, %v343_v7 }
  0xb7   :  { %4717 = vst [vmem:[#allocation41_spill] sm:$0xff] %v3689_v60  ;;  %v2861_v34 = vpop.eup %2860  ;;  %754 = vmatpush.bf16.msra.mxu2 %v3689_v60  ;;  %v3710_v18 = vor.u32 %v2854_v15, %v2751_v8  ;;  %v2851_v8 = vld [vmem:[%s4559_s6 + $0xa0] sm:$0xf0]  ;;  %827 = vmatpush.bf16.msrb.mxu0 %v3223_v57  ;;  %v2703_v7 = vld [vmem:[%s4559_s6 + $0x50] sm:$0xf] }
  0xb8   :  { %v3701_v9 = vadd.f32 1.0, %v2861_v34  ;;  %v2661_v34 = vld [vmem:[%s4559_s6 + $0xc] sm:$0xf0]  ;;  %555 = vmatpush.bf16.msrb.mxu3 %v3703_v17  ;;  %v3733_v23 = vor.u32 %v2851_v8, %v2739_v40  ;;  %v2848_v40 = vld [vmem:[%s4559_s6 + $0x88] sm:$0xf0] }
  0xb9   :  { %4719 = vst [vmem:[#allocation43_spill] sm:$0xff] %v3710_v18  ;;  %v3722_v58 = vor.u32 %v2831_v29, %v2661_v34  ;;  %v3739_v34 = vld [vmem:[%s4558_s4] ss:$0 sm:$0xff] }
  0xba   :  { %2864 = vrcp.f32 %v3701_v9  ;;  %v2863_v15 = vpop.eup %2862  ;;  %4721 = vst [vmem:[#allocation45_spill] sm:$0xff] %v3733_v23  ;;  %v367_v46 = vadd.f32 %v3739_v34, %v3643_v5  ;;  %v4725_v5 = vperm.slane %v3488_v14, 2  ;;  %vm357_vm6 = vweird.f32 %v3701_v9  ;;  %v4744_v14 = vld [vmem:[#allocation4_spill] sm:$0xff] }
  0xbb   :  { %4720 = vst [vmem:[#allocation44_spill] sm:$0xff] %v3722_v58  ;;  %755 = vmatpush.bf16.msra.mxu2 %v3722_v58  ;;  %v333_v29 = vmul.f32 %v2863_v15, %v3677_v22  ;;  %v2727_v58 = vld [vmem:[%s4559_s6 + $0x80] sm:$0xf]  ;;  %vm338_vm2 = vweird.f32 %v2863_v15  ;;  %828 = vmatpush.bf16.msrb.mxu0 %v3251_v2 }
  0xbc   :  { %761 = vmatpush.bf16.msra.mxu3 %v3710_v18  ;;  %4722 = vst [vmem:[#allocation46_spill] sm:$0xff] %v3739_v34  ;;  %v3755_v27 = vor.u32 %v2848_v40, %v2727_v58  ;;  %v2715_v58 = vld [vmem:[%s4559_s6 + $0x68] sm:$0xf]  ;;  %vm339_vm4 = vmor %vm337_vm3, %vm338_vm2 }
  0xbd   :  { %v334_v60 = vsub.f32 1.0, %v333_v29  ;;  %v341_v29 = vand.u32 2147483647, %v3677_v22 }
  0xbe   :  { %4723 = vst [vmem:[#allocation47_spill] sm:$0xff] %v3755_v27 }
  0xbf   :  { %v335_v19 = vmul.f32 %v2863_v15, %v334_v60  ;;  %v2845_v60 = vld [vmem:[%s4559_s6 + $0x70] sm:$0xf0]  ;;  %vm342_vm5 = vcmp.eq.f32.partialorder %v341_v29, 8.507059e+37 }
  0xc0   :  { %762 = vmatpush.bf16.msra.mxu3 %v3733_v23  ;;  %v3743_v0 = vpop.eup %2864 }
  0xc1   :  { %v353_v8 = vmul.f32 %v3743_v0, %v3701_v9  ;;  %v336_v49 = vadd.f32 %v2863_v15, %v335_v19  ;;  %v3771_v19 = vor.u32 %v2845_v60, %v2715_v58  ;;  %vm358_vm7 = vweird.f32 %v3743_v0 }
  0xc2   :  { %v361_v58 = vand.u32 2147483647, %v3701_v9  ;;  %vm359_vm8 = vmor %vm357_vm6, %vm358_vm7 }
  0xc3   :  { %v354_v40 = vsub.f32 1.0, %v353_v8  ;;  %4724 = vst [vmem:[#allocation48_spill] sm:$0xff] %v3771_v19  ;;  %v340_v22 = vsel %vm339_vm4, %v2863_v15, %v336_v49  ;;  %v2842_v8 = vld [vmem:[%s4559_s6 + $0x58] sm:$0xf0]  ;;  %v2691_v15 = vld [vmem:[%s4559_s6 + $0x38] sm:$0xf] }
  0xc4   :  { %763 = vmatpush.bf16.msra.mxu3 %v3755_v27  ;;  %v104_v27 = vpop.f32.mrf.mxu2  ;;  %v345_v34 = vsel %vm342_vm5, %v344_v54, %v340_v22  ;;  %v2836_v22 = vld [vmem:[%s4559_s6 + $0x28] sm:$0xf0]  ;;  %vm362_vm9 = vcmp.eq.f32.partialorder %v361_v58, 8.507059e+37  ;;  %v4732_v58 = vld [vmem:[#allocation35_spill] sm:$0xff] }
  0xc5   :  { %v3775_v38 = vadd.f32 %v104_v27, %v4725_v5  ;;  %v368_v23 = vmul.f32 %v367_v46, %v345_v34  ;;  %v355_v49 = vmul.f32 %v3743_v0, %v354_v40  ;;  %v3787_v27 = vor.u32 %v2842_v8, %v2703_v7  ;;  %v2839_v34 = vld [vmem:[%s4559_s6 + $0x40] sm:$0xf0]  ;;  %v2679_v40 = vld [vmem:[%s4559_s6 + $0x20] sm:$0xf] }
  0xc6   :  { %v363_v46 = vand.u32 2147483648, %v3701_v9  ;;  %v3814_v7 = vor.u32 %v2836_v22, %v2679_v40  ;;  %v4734_v40 = vld [vmem:[#allocation20_spill] sm:$0xff]  ;;  %v4735_v22 = vld [vmem:[#allocation38_spill] sm:$0xff] }
  0xc7   :  { %4726 = vst [vmem:[#allocation49_spill] sm:$0xff] %v3787_v27  ;;  %v369_v54 = vadd.f32 %v368_v23, %v3775_v38  ;;  %v356_v29 = vadd.f32 %v3743_v0, %v355_v49  ;;  %v3802_v23 = vor.u32 %v2839_v34, %v2691_v15 }
  0xc8   :  { %764 = vmatpush.bf16.msra.mxu3 %v3771_v19  ;;  %v364_v60 = vor.u32 1.1754944e-38, %v363_v46  ;;  %4728 = vst [vmem:[#allocation51_spill] sm:$0xff] %v3814_v7  ;;  %v2833_v46 = vld [vmem:[%s4559_s6 + $0x10] sm:$0xf0] }
  0xc9   :  { %2866 = vtanh.f32 %v369_v54  ;;  %4727 = vst [vmem:[#allocation50_spill] sm:$0xff] %v3802_v23  ;;  %v360_v5 = vsel %vm359_vm8, %v3743_v0, %v356_v29  ;;  %v2667_v54 = vld [vmem:[%s4559_s6 + $0x8] sm:$0xf] }
  0xca   :  { %v365_v49 = vsel %vm362_vm9, %v364_v60, %v360_v5  ;;  %v3825_v15 = vor.u32 %v2833_v46, %v2667_v54  ;;  %v4731_v29 = vld [vmem:[#allocation19_spill] sm:$0xff]  ;;  %v4736_v5 = vld [vmem:[#allocation22_spill] sm:$0xff]  ;;  %v4741_v46 = vld [vmem:[#allocation41_spill] sm:$0xff] }
  0xcb   :  { %v4733_v60 = vld [vmem:[#allocation47_spill] sm:$0xff]  ;;  %v4740_v54 = vld [vmem:[#allocation26_spill] sm:$0xff] }
  0xcc   :  { %765 = vmatpush.bf16.msra.mxu3 %v3787_v27  ;;  %4729 = vst [vmem:[#allocation52_spill] sm:$0xff] %v3825_v15 }
  0xcf   :  { %v2867_v8 = vpop.eup %2866 }
  0xd0   :  { %766 = vmatpush.bf16.msra.mxu3 %v3802_v23  ;;  %v371_v9 = vsub.f32 %v3253_v4, %v2867_v8 }
  0xd2   :  { %v372_v0 = vmul.f32 %v371_v9, %v365_v49  ;;  %v4738_v9 = vld [vmem:[#allocation24_spill] sm:$0xff] }
  0xd3   :  { %v4739_v49 = vld [vmem:[#allocation40_spill] sm:$0xff] }
  0xd4   :  { %767 = vmatpush.bf16.msra.mxu3 %v3814_v7  ;;  %v3827_v34 = vadd.f32 %v2867_v8, %v372_v0  ;;  %v4737_v8 = vld [vmem:[#allocation39_spill] sm:$0xff] }
  0xd5   :  { %v4742_v0 = vld [vmem:[#allocation27_spill] sm:$0xff] }
  0xd6   :  { %v374_v4 = vpack.c.bf16 %v3827_v34, %v3827_v34 }
  0xd8   :  { %768 = vmatpush.bf16.msra.mxu3 %v3825_v15  ;;  %543 = vmatmul.bf16.vlgmr.msrb.gmra.mxu2 %v374_v4 }
  0xd9   :  { %556 = vmatmul.bf16.vlgmr.msrb.gmra.mxu3 %v374_v4  ;;  %569 = vmatmul.bf16.vlgmr.msra.gmra.mxu0 %v374_v4 }
  0xda   :  { %842 = vmatmul.bf16.vlgmr.msrb.gmra.mxu1 %v374_v4  ;;  %847 = vmatpush.bf16.msrb.mxu2 %v3154_v33 }
  0xdb   :  { %939 = vmatpush.bf16.msra.mxu0 %v3483_v10  ;;  %1052 = vmatpush.bf16.msrb.mxu1 %v3082_v3 }
  0xdc   :  { %926 = vmatpush.bf16.msrb.mxu3 %v3322_v32 }
  0xde   :  { %848 = vmatpush.bf16.msrb.mxu2 %v3164_v36 }
  0xdf   :  { %940 = vmatpush.bf16.msra.mxu0 %v3525_v55  ;;  %1053 = vmatpush.bf16.msrb.mxu1 %v3091_v6 }
  0xe0   :  { %927 = vmatpush.bf16.msrb.mxu3 %v3346_v44 }
  0xe2   :  { %849 = vmatpush.bf16.msrb.mxu2 %v3192_v45 }
  0xe3   :  { %941 = vmatpush.bf16.msra.mxu0 %v3556_v48  ;;  %1054 = vmatpush.bf16.msrb.mxu1 %v3106_v11 }
  0xe4   :  { %928 = vmatpush.bf16.msrb.mxu3 %v3359_v50 }
  0xe6   :  { %850 = vmatpush.bf16.msrb.mxu2 %v3220_v56 }
  0xe7   :  { %942 = vmatpush.bf16.msra.mxu0 %v3592_v63  ;;  %1055 = vmatpush.bf16.msrb.mxu1 %v3133_v25 }
  0xe8   :  { %929 = vmatpush.bf16.msrb.mxu3 %v3377_v59  ;;  %756 = vmatmul.bf16.vlgmr.msra.gmra.mxu2 %v3614_v43 }
  0xe9   :  { %769 = vmatmul.bf16.vlgmr.msra.gmra.mxu3 %v3614_v43  ;;  %829 = vmatmul.bf16.vlgmr.msrb.gmra.mxu0 %v374_v4  ;;  %v4730_v43 = vld [vmem:[#allocation45_spill] sm:$0xff] }
  0xea   :  { %851 = vmatpush.bf16.msrb.mxu2 %v3248_v1 }
  0xeb   :  { %943 = vmatpush.bf16.msra.mxu0 %v3632_v51  ;;  %1056 = vmatpush.bf16.msrb.mxu1 %v3167_v37 }
  0xec   :  { %930 = vmatpush.bf16.msrb.mxu3 %v3404_v12 }
  0xee   :  { %852 = vmatpush.bf16.msrb.mxu2 %v3273_v13 }
  0xef   :  { %944 = vmatpush.bf16.msra.mxu0 %v3655_v42  ;;  %1057 = vmatpush.bf16.msrb.mxu1 %v3195_v47 }
  0xf0   :  { %931 = vmatpush.bf16.msrb.mxu3 %v3431_v28 }
  0xf2   :  { %853 = vmatpush.bf16.msrb.mxu2 %v3292_v20 }
  0xf3   :  { %945 = vmatpush.bf16.msra.mxu0 %v3675_v62  ;;  %1058 = vmatpush.bf16.msrb.mxu1 %v3223_v57 }
  0xf4   :  { %932 = vmatpush.bf16.msrb.mxu3 %v3458_v52 }
  0xf6   :  { %854 = vmatpush.bf16.msrb.mxu2 %v3304_v24 }
  0xf7   :  { %946 = vmatpush.bf16.msra.mxu0 %v3703_v17  ;;  %1059 = vmatpush.bf16.msrb.mxu1 %v3251_v2 }
  0xf8   :  { %933 = vmatpush.bf16.msrb.mxu3 %v3499_v26 }
  0xf9   :  { %855 = vmatmul.bf16.vlgmr.msrb.gmra.mxu2 %v374_v4  ;;  %v4743_v4 = vld [vmem:[#allocation44_spill] sm:$0xff] }
  0xfa   :  { %966 = vmatpush.bf16.msra.mxu2 %v3317_v30 }
  0xfb   :  { %992 = vmatpush.bf16.msrb.mxu0 %v3710_v18 }
  0xfc   :  { %979 = vmatpush.bf16.msra.mxu3 %v3523_v53 }
  0xfe   :  { %967 = vmatpush.bf16.msra.mxu2 %v3335_v39 }
  0xff   :  { %993 = vmatpush.bf16.msrb.mxu0 %v4730_v43 }
 0x100   :  { %980 = vmatpush.bf16.msra.mxu3 %v3554_v41  ;;  %v4756_v41 = vld [vmem:[#allocation34_spill] sm:$0xff] }
 0x102   :  { %968 = vmatpush.bf16.msra.mxu2 %v4731_v29 }
 0x103   :  { %994 = vmatpush.bf16.msrb.mxu0 %v4733_v60 }
 0x104   :  { %981 = vmatpush.bf16.msra.mxu3 %v4732_v58 }
 0x106   :  { %969 = vmatpush.bf16.msra.mxu2 %v4734_v40 }
 0x107   :  { %995 = vmatpush.bf16.msrb.mxu0 %v3771_v19 }
 0x108   :  { %982 = vmatpush.bf16.msra.mxu3 %v4735_v22  ;;  %v4754_v22 = vld [vmem:[#allocation36_spill] sm:$0xff] }
 0x10a   :  { %970 = vmatpush.bf16.msra.mxu2 %v4736_v5 }
 0x10b   :  { %996 = vmatpush.bf16.msrb.mxu0 %v3787_v27  ;;  %v4745_v27 = vld [vmem:[#allocation5_spill] sm:$0xff] }
 0x10c   :  { %983 = vmatpush.bf16.msra.mxu3 %v4737_v8  ;;  %v4751_v8 = vld [vmem:[#allocation15_spill] sm:$0xff] }
 0x10e   :  { %971 = vmatpush.bf16.msra.mxu2 %v4738_v9  ;;  %v4746_v9 = vld [vmem:[#allocation7_spill] sm:$0xff] }
 0x10f   :  { %997 = vmatpush.bf16.msrb.mxu0 %v3802_v23  ;;  %v4748_v23 = vld [vmem:[#allocation11_spill] sm:$0xff] }
 0x110   :  { %984 = vmatpush.bf16.msra.mxu3 %v4739_v49  ;;  %v4747_v49 = vld [vmem:[#allocation9_spill] sm:$0xff] }
 0x112   :  { %972 = vmatpush.bf16.msra.mxu2 %v4740_v54 }
 0x113   :  { %998 = vmatpush.bf16.msrb.mxu0 %v3814_v7  ;;  %v4750_v7 = vld [vmem:[#allocation14_spill] sm:$0xff] }
 0x114   :  { %985 = vmatpush.bf16.msra.mxu3 %v4741_v46  ;;  %v4749_v46 = vld [vmem:[#allocation13_spill] sm:$0xff] }
 0x115   :  { %v744_v54 = vpop.f32.mrf.mxu1 }
 0x116   :  { %973 = vmatpush.bf16.msra.mxu2 %v4742_v0 }
 0x117   :  { %999 = vmatpush.bf16.msrb.mxu0 %v3825_v15 }
 0x118   :  { %986 = vmatpush.bf16.msra.mxu3 %v4743_v4  ;;  %v3899_v4 = vpop.f32.mrf.mxu2 }
 0x119   :  { %4752 = vst [vmem:[#allocation53_spill] sm:$0xff] %v3899_v4 }
 0x11a   :  { %1065 = vmatpush.bf16.msrb.mxu2 %v4744_v14 }
 0x11d   :  { %v746_v0 = vpop.f32.mrf.mxu1 }
 0x11e   :  { %1066 = vmatpush.bf16.msrb.mxu2 %v4745_v27 }
 0x122   :  { %1067 = vmatpush.bf16.msrb.mxu2 %v4746_v9  ;;  %v113_v9 = vld [vmem:[%s4563_s7] sm:$0x7] }
 0x123   :  { %v3910_v57 = vperm.slane %v113_v9, 1 }
 0x125   :  { %4755 = vst [vmem:[#allocation55_spill] sm:$0xff] %v3910_v57 }
 0x126   :  { %1068 = vmatpush.bf16.msrb.mxu2 %v4747_v49  ;;  %v3906_v49 = vperm.slane %v113_v9, 0 }
 0x128   :  { %4753 = vst [vmem:[#allocation54_spill] sm:$0xff] %v3906_v49 }
 0x12a   :  { %1069 = vmatpush.bf16.msrb.mxu2 %v4748_v23 }
 0x12e   :  { %1070 = vmatpush.bf16.msrb.mxu2 %v4749_v46 }
 0x132   :  { %1071 = vmatpush.bf16.msrb.mxu2 %v4750_v7 }
 0x136   :  { %1072 = vmatpush.bf16.msrb.mxu2 %v4751_v8 }
 0x156   :  { %v3901_v14 = vpop.f32.mrf.mxu0 }
 0x157   :  { %v843_v15 = vpop.f32.mrf.mxu1 }
 0x158   :  { %v884_v2 = vrot.slane %v843_v15, 6 }
 0x15a   :  { %v886_v40 = vadd.f32 %v884_v2, %v4754_v22 }
 0x15b   :  { %v544_v23 = vpop.f32.mrf.mxu2 }
 0x15c   :  { %v557_v27 = vpop.f32.mrf.mxu3  ;;  %v545_v46 = vadd.f32 %v544_v23, %v3906_v49  ;;  %v2756_v47 = vmul.f32 -1.442695, %v886_v40 }
 0x15d   :  { %v558_v23 = vadd.f32 %v557_v27, %v3910_v57  ;;  %v3917_v27 = vld [vmem:[%s4562_s8] ss:$0 sm:$0xff] }
 0x15e   :  { %v774_v5 = vadd.f32 %v744_v54, %v545_v46  ;;  %v572_v7 = vpop.f32.mrf.mxu0  ;;  %4757 = vst [vmem:[#allocation56_spill] sm:$0xff] %v3917_v27 }
 0x15f   :  { %v845_v0 = vpop.f32.mrf.mxu1 }
 0x160   :  { %v2753_v8 = vmul.f32 -1.442695, %v774_v5 }
 0x162   :  { %2868 = vpow2.f32 %v2753_v8 }
 0x163   :  { %v546_v4 = vpop.f32.mrf.mxu2 }
 0x164   :  { %v559_v19 = vpop.f32.mrf.mxu3 }
 0x166   :  { %v830_v60 = vpop.f32.mrf.mxu0 }
 0x167   :  { %v861_v58 = vrot.slane %v830_v60, 6 }
 0x168   :  { %v2869_v29 = vpop.eup %2868 }
 0x169   :  { %v778_v43 = vadd.f32 1.0, %v2869_v29  ;;  %v863_v39 = vadd.f32 %v861_v58, %v4756_v41 }
 0x16b   :  { %2870 = vrcp.f32 %v778_v43  ;;  %v2755_v7 = vmul.f32 -1.442695, %v863_v39  ;;  %v757_v15 = vpop.f32.mrf.mxu2  ;;  %vm784_vm11 = vweird.f32 %v778_v43 }
 0x16c   :  { %v770_v5 = vpop.f32.mrf.mxu3  ;;  %2872 = vpow2.f32 %v2756_v47  ;;  %v794_v8 = vadd.f32 %v757_v15, %v558_v23  ;;  %v790_v47 = vand.u32 2147483648, %v778_v43  ;;  %v788_v15 = vand.u32 2147483647, %v778_v43 }
 0x16d   :  { %2874 = vpow2.f32 %v2755_v7 }
 0x16e   :  { %v2754_v19 = vmul.f32 -1.442695, %v794_v8  ;;  %v832_v2 = vpop.f32.mrf.mxu0  ;;  %vm789_vm13 = vcmp.eq.f32.partialorder %v788_v15, 8.507059e+37 }
 0x170   :  { %2876 = vpow2.f32 %v2754_v19  ;;  %v3921_v19 = vperm.slane %v113_v9, 2 }
 0x171   :  { %v2871_v54 = vpop.eup %2870 }
 0x172   :  { %v2873_v46 = vpop.eup %2872  ;;  %v780_v60 = vmul.f32 %v2871_v54, %v778_v43  ;;  %vm785_vm10 = vweird.f32 %v2871_v54  ;;  %4758 = vst [vmem:[#allocation57_spill] sm:$0xff] %v3921_v19 }
 0x173   :  { %v2875_v4 = vpop.eup %2874  ;;  %v759_v40 = vpop.f32.mrf.mxu2  ;;  %v3919_v58 = vadd.f32 1.0, %v2873_v46  ;;  %vm786_vm12 = vmor %vm784_vm11, %vm785_vm10 }
 0x174   :  { %v772_v29 = vpop.f32.mrf.mxu3  ;;  %v867_v0 = vadd.f32 1.0, %v2875_v4  ;;  %v781_v39 = vsub.f32 1.0, %v780_v60  ;;  %v814_v4 = vadd.f32 %v3917_v27, %v770_v5  ;;  %v791_v40 = vor.u32 1.1754944e-38, %v790_v47 }
 0x175   :  { %vm896_vm8 = vweird.f32 %v3919_v58 }
 0x176   :  { %v2877_v23 = vpop.eup %2876  ;;  %2878 = vrcp.f32 %v867_v0  ;;  %v782_v7 = vmul.f32 %v2871_v54, %v781_v39  ;;  %v571_v39 = vadd.f32 %v3901_v14, %v3921_v19  ;;  %v879_v27 = vand.u32 2147483648, %v867_v0 }
 0x177   :  { %v798_v8 = vadd.f32 1.0, %v2877_v23  ;;  %v877_v49 = vand.u32 2147483647, %v867_v0  ;;  %vm873_vm15 = vweird.f32 %v867_v0 }
 0x178   :  { %v783_v2 = vadd.f32 %v2871_v54, %v782_v7 }
 0x179   :  { %2880 = vrcp.f32 %v798_v8  ;;  %vm878_vm3 = vcmp.eq.f32.partialorder %v877_v49, 8.507059e+37  ;;  %vm804_vm4 = vweird.f32 %v798_v8 }
 0x17a   :  { %2882 = vrcp.f32 %v3919_v58  ;;  %v787_v46 = vsel %vm786_vm12, %v2871_v54, %v783_v2  ;;  %v4759_v54 = vld [vmem:[#allocation46_spill] sm:$0xff] }
 0x17b   :  { %v792_v60 = vsel %vm789_vm13, %v791_v40, %v787_v46  ;;  %v810_v46 = vand.u32 2147483648, %v798_v8 }
 0x17c   :  { %v2879_v29 = vpop.eup %2878  ;;  %v815_v57 = vmul.f32 %v814_v4, %v792_v60  ;;  %v856_v23 = vpop.f32.mrf.mxu2  ;;  %v880_v60 = vor.u32 1.1754944e-38, %v879_v27 }
 0x17d   :  { %v869_v9 = vmul.f32 %v2879_v29, %v867_v0  ;;  %vm874_vm14 = vweird.f32 %v2879_v29  ;;  %v906_v15 = vadd.f32 %v4759_v54, %v856_v23  ;;  %v811_v23 = vor.u32 1.1754944e-38, %v810_v46 }
 0x17e   :  { %v816_v41 = vadd.f32 %v815_v57, %v571_v39  ;;  %v808_v57 = vand.u32 2147483647, %v798_v8  ;;  %vm875_vm2 = vmor %vm873_vm15, %vm874_vm14 }
 0x17f   :  { %v2881_v7 = vpop.eup %2880  ;;  %v870_v43 = vsub.f32 1.0, %v869_v9 }
 0x180   :  { %v2883_v22 = vpop.eup %2882  ;;  %v800_v5 = vmul.f32 %v2881_v7, %v798_v8  ;;  %2884 = vtanh.f32 %v816_v41  ;;  %vm805_vm1 = vweird.f32 %v2881_v7  ;;  %v908_v41 = vrot.slane %v906_v15, 6 }
 0x181   :  { %v871_v47 = vmul.f32 %v2879_v29, %v870_v43  ;;  %v892_v40 = vmul.f32 %v2883_v22, %v3919_v58  ;;  %vm806_vm5 = vmor %vm804_vm4, %vm805_vm1  ;;  %vm809_vm6 = vcmp.eq.f32.partialorder %v808_v57, 8.507059e+37  ;;  %vm897_vm7 = vweird.f32 %v2883_v22 }
 0x182   :  { %v801_v2 = vsub.f32 1.0, %v800_v5  ;;  %v4760_v5 = vld [vmem:[#allocation37_spill] sm:$0xff]  ;;  %vm898_vm9 = vmor %vm896_vm8, %vm897_vm7 }
 0x183   :  { %v872_v14 = vadd.f32 %v2879_v29, %v871_v47  ;;  %v893_v47 = vsub.f32 1.0, %v892_v40  ;;  %v4762_v40 = vld [vmem:[#allocation21_spill] sm:$0xff] }
 0x184   :  { %v802_v4 = vmul.f32 %v2881_v7, %v801_v2  ;;  %v858_v39 = vpop.f32.mrf.mxu2 }
 0x185   :  { %v876_v9 = vsel %vm875_vm2, %v2879_v29, %v872_v14  ;;  %v894_v29 = vmul.f32 %v2883_v22, %v893_v47  ;;  %v4763_v14 = vld [vmem:[#allocation23_spill] sm:$0xff]  ;;  %v4764_v39 = vld [vmem:[#allocation25_spill] sm:$0xff] }
 0x186   :  { %v2885_v43 = vpop.eup %2884  ;;  %v803_v19 = vadd.f32 %v2881_v7, %v802_v4  ;;  %v881_v37 = vsel %vm878_vm3, %v880_v60, %v876_v9  ;;  %v4770_v47 = vld [vmem:[#allocation45_spill] sm:$0xff] }
 0x187   :  { %v818_v54 = vsub.f32 %v4760_v5, %v2885_v43  ;;  %v910_v18 = vmul.f32 %v908_v41, %v881_v37  ;;  %v895_v15 = vadd.f32 %v2883_v22, %v894_v29  ;;  %v902_v37 = vand.u32 2147483648, %v3919_v58  ;;  %v4769_v5 = vld [vmem:[#allocation32_spill] sm:$0xff]  ;;  %v4774_v29 = vld [vmem:[#allocation47_spill] sm:$0xff] }
 0x188   :  { %v807_v0 = vsel %vm806_vm5, %v2881_v7, %v803_v19 }
 0x189   :  { %v911_v2 = vadd.f32 %v910_v18, %v3775_v38  ;;  %v812_v17 = vsel %vm809_vm6, %v811_v23, %v807_v0  ;;  %v900_v18 = vand.u32 2147483647, %v3919_v58  ;;  %v899_v19 = vsel %vm898_vm9, %v2883_v22, %v895_v15  ;;  %v4766_v22 = vld [vmem:[#allocation43_spill] sm:$0xff]  ;;  %v4768_v23 = vld [vmem:[#allocation18_spill] sm:$0xff]  ;;  %v4771_v0 = vld [vmem:[#allocation8_spill] sm:$0xff] }
 0x18a   :  { %v819_v27 = vmul.f32 %v818_v54, %v812_v17  ;;  %v903_v54 = vor.u32 1.1754944e-38, %v902_v37  ;;  %v4776_v15 = vld [vmem:[#allocation20_spill] sm:$0xff] }
 0x18b   :  { %2886 = vtanh.f32 %v911_v2  ;;  %vm901_vm10 = vcmp.eq.f32.partialorder %v900_v18, 8.507059e+37  ;;  %v4772_v2 = vld [vmem:[#allocation19_spill] sm:$0xff]  ;;  %v4778_v37 = vld [vmem:[#allocation48_spill] sm:$0xff] }
 0x18c   :  { %v3931_v49 = vadd.f32 %v2885_v43, %v819_v27  ;;  %v904_v57 = vsel %vm901_vm10, %v903_v54, %v899_v19  ;;  %v4767_v43 = vld [vmem:[#allocation6_spill] sm:$0xff]  ;;  %v4773_v27 = vld [vmem:[#allocation35_spill] sm:$0xff]  ;;  %v4779_v18 = vld [vmem:[#allocation12_spill] sm:$0xff] }
 0x18d   :  { %v4781_v19 = vld [vmem:[#allocation39_spill] sm:$0xff]  ;;  %v4783_v54 = vld [vmem:[#allocation24_spill] sm:$0xff] }
 0x18e   :  { %4761 = vst [vmem:[#allocation37_spill] sm:$0xff] %v3931_v49  ;;  %v965_v8 = vpack.c.bf16 %v3931_v49, %v3931_v49 }
 0x190   :  { %974 = vmatmul.bf16.vlgmr.msra.gmra.mxu2 %v965_v8 }
 0x191   :  { %v2887_v46 = vpop.eup %2886  ;;  %1183 = vmatpush.bf16.msra.mxu2 %v4762_v40 }
 0x192   :  { %v914_v17 = vrot.slane %v2887_v46, 2 }
 0x194   :  { %v916_v7 = vsub.f32 %v3827_v34, %v914_v17  ;;  %v4765_v34 = vld [vmem:[#allocation42_spill] sm:$0xff] }
 0x195   :  { %1184 = vmatpush.bf16.msra.mxu2 %v4763_v14  ;;  %v4780_v17 = vld [vmem:[#allocation22_spill] sm:$0xff] }
 0x196   :  { %v918_v4 = vrot.slane %v916_v7, 6  ;;  %v4782_v7 = vld [vmem:[#allocation49_spill] sm:$0xff] }
 0x198   :  { %v920_v60 = vmul.f32 %v918_v4, %v904_v57  ;;  %v4784_v4 = vld [vmem:[#allocation40_spill] sm:$0xff]  ;;  %v4785_v57 = vld [vmem:[#allocation50_spill] sm:$0xff] }
 0x199   :  { %1185 = vmatpush.bf16.msra.mxu2 %v4764_v39 }
 0x19a   :  { %v3942_v9 = vadd.f32 %v2887_v46, %v920_v60  ;;  %v4777_v46 = vld [vmem:[#allocation38_spill] sm:$0xff] }
 0x19b   :  { %v4786_v60 = vld [vmem:[#allocation26_spill] sm:$0xff] }
 0x19c   :  { %v922_v41 = vpack.c.bf16 %v3942_v9, %v3942_v9 }
 0x19d   :  { %1186 = vmatpush.bf16.msra.mxu2 %v3469_v61 }
 0x19e   :  { %v924_v58 = vrot.slane %v922_v41, 1  ;;  %v4787_v41 = vld [vmem:[#allocation41_spill] sm:$0xff] }
 0x1a0   :  { %934 = vmatmul.bf16.vlgmr.msrb.gmra.mxu3 %v924_v58  ;;  %947 = vmatmul.bf16.vlgmr.msra.gmra.mxu0 %v924_v58 }
 0x1a1   :  { %960 = vmatmul.bf16.vlgmr.msra.gmra.mxu1 %v924_v58  ;;  %1073 = vmatmul.bf16.vlgmr.msrb.gmra.mxu2 %v924_v58 }
 0x1a2   :  { %1078 = vmatpush.bf16.msrb.mxu3 %v3154_v33  ;;  %1157 = vmatpush.bf16.msra.mxu0 %v3322_v32 }
 0x1a3   :  { %1170 = vmatpush.bf16.msra.mxu1 %v3483_v10  ;;  %1187 = vmatpush.bf16.msra.mxu2 %v3511_v35 }
 0x1a6   :  { %1079 = vmatpush.bf16.msrb.mxu3 %v3164_v36  ;;  %1158 = vmatpush.bf16.msra.mxu0 %v3346_v44 }
 0x1a7   :  { %1171 = vmatpush.bf16.msra.mxu1 %v3525_v55  ;;  %1188 = vmatpush.bf16.msra.mxu2 %v3543_v21 }
 0x1aa   :  { %1080 = vmatpush.bf16.msrb.mxu3 %v3192_v45  ;;  %1159 = vmatpush.bf16.msra.mxu0 %v3359_v50 }
 0x1ab   :  { %1172 = vmatpush.bf16.msra.mxu1 %v3556_v48  ;;  %1189 = vmatpush.bf16.msra.mxu2 %v3575_v31 }
 0x1ae   :  { %1081 = vmatpush.bf16.msrb.mxu3 %v3220_v56  ;;  %1160 = vmatpush.bf16.msra.mxu0 %v3377_v59 }
 0x1af   :  { %1173 = vmatpush.bf16.msra.mxu1 %v3592_v63  ;;  %1190 = vmatpush.bf16.msra.mxu2 %v3610_v16 }
 0x1b0   :  { %987 = vmatmul.bf16.vlgmr.msra.gmra.mxu3 %v965_v8  ;;  %1000 = vmatmul.bf16.vlgmr.msrb.gmra.mxu0 %v965_v8  ;;  %v4775_v8 = vld [vmem:[#allocation10_spill] sm:$0xff] }
 0x1b1   :  { %1060 = vmatmul.bf16.vlgmr.msrb.gmra.mxu1 %v924_v58 }
 0x1b2   :  { %1082 = vmatpush.bf16.msrb.mxu3 %v3248_v1  ;;  %1161 = vmatpush.bf16.msra.mxu0 %v3404_v12 }
 0x1b3   :  { %1283 = vmatpush.bf16.msrb.mxu2 %v3082_v3  ;;  %1174 = vmatpush.bf16.msra.mxu1 %v3632_v51 }
 0x1b6   :  { %1083 = vmatpush.bf16.msrb.mxu3 %v3273_v13  ;;  %1162 = vmatpush.bf16.msra.mxu0 %v3431_v28 }
 0x1b7   :  { %1284 = vmatpush.bf16.msrb.mxu2 %v3091_v6  ;;  %1175 = vmatpush.bf16.msra.mxu1 %v3655_v42 }
 0x1ba   :  { %1084 = vmatpush.bf16.msrb.mxu3 %v3292_v20  ;;  %1163 = vmatpush.bf16.msra.mxu0 %v3458_v52 }
 0x1bb   :  { %1285 = vmatpush.bf16.msrb.mxu2 %v3106_v11  ;;  %1176 = vmatpush.bf16.msra.mxu1 %v3675_v62 }
 0x1be   :  { %1085 = vmatpush.bf16.msrb.mxu3 %v3304_v24  ;;  %1164 = vmatpush.bf16.msra.mxu0 %v3499_v26 }
 0x1bf   :  { %1286 = vmatpush.bf16.msrb.mxu2 %v3133_v25  ;;  %1177 = vmatpush.bf16.msra.mxu1 %v4765_v34  ;;  %v4803_v34 = vld [vmem:[#allocation55_spill] sm:$0xff] }
 0x1c1   :  { %1086 = vmatmul.bf16.vlgmr.msrb.gmra.mxu3 %v924_v58  ;;  %v4788_v58 = vld [vmem:[#allocation51_spill] sm:$0xff] }
 0x1c2   :  { %1197 = vmatpush.bf16.msra.mxu3 %v3317_v30  ;;  %1210 = vmatpush.bf16.msrb.mxu0 %v3523_v53 }
 0x1c3   :  { %1223 = vmatpush.bf16.msrb.mxu1 %v4766_v22  ;;  %1287 = vmatpush.bf16.msrb.mxu2 %v4767_v43  ;;  %v4802_v43 = vld [vmem:[#allocation34_spill] sm:$0xff] }
 0x1c6   :  { %1198 = vmatpush.bf16.msra.mxu3 %v4768_v23  ;;  %1211 = vmatpush.bf16.msrb.mxu0 %v4769_v5  ;;  %v4801_v5 = vld [vmem:[#allocation36_spill] sm:$0xff] }
 0x1c7   :  { %1224 = vmatpush.bf16.msrb.mxu1 %v4770_v47  ;;  %1288 = vmatpush.bf16.msrb.mxu2 %v4771_v0 }
 0x1ca   :  { %1199 = vmatpush.bf16.msra.mxu3 %v4772_v2  ;;  %1212 = vmatpush.bf16.msrb.mxu0 %v4773_v27 }
 0x1cb   :  { %1225 = vmatpush.bf16.msrb.mxu1 %v4774_v29  ;;  %1289 = vmatpush.bf16.msrb.mxu2 %v4775_v8 }
 0x1ce   :  { %1200 = vmatpush.bf16.msra.mxu3 %v4776_v15  ;;  %1213 = vmatpush.bf16.msrb.mxu0 %v4777_v46 }
 0x1cf   :  { %1226 = vmatpush.bf16.msrb.mxu1 %v4778_v37  ;;  %1290 = vmatpush.bf16.msrb.mxu2 %v4779_v18  ;;  %v4789_v37 = vld [vmem:[#allocation27_spill] sm:$0xff]  ;;  %v4790_v18 = vld [vmem:[#allocation44_spill] sm:$0xff] }
 0x1d2   :  { %1201 = vmatpush.bf16.msra.mxu3 %v4780_v17  ;;  %1214 = vmatpush.bf16.msrb.mxu0 %v4781_v19  ;;  %v4791_v17 = vld [vmem:[#allocation4_spill] sm:$0xff] }
 0x1d3   :  { %1227 = vmatpush.bf16.msrb.mxu1 %v4782_v7  ;;  %v4792_v19 = vld [vmem:[#allocation52_spill] sm:$0xff]  ;;  %v4793_v7 = vld [vmem:[#allocation5_spill] sm:$0xff] }
 0x1d6   :  { %1202 = vmatpush.bf16.msra.mxu3 %v4783_v54  ;;  %1215 = vmatpush.bf16.msrb.mxu0 %v4784_v4  ;;  %v4794_v54 = vld [vmem:[#allocation7_spill] sm:$0xff]  ;;  %v4795_v4 = vld [vmem:[#allocation9_spill] sm:$0xff] }
 0x1d7   :  { %1228 = vmatpush.bf16.msrb.mxu1 %v4785_v57  ;;  %v4796_v57 = vld [vmem:[#allocation11_spill] sm:$0xff] }
 0x1da   :  { %1203 = vmatpush.bf16.msra.mxu3 %v4786_v60  ;;  %1216 = vmatpush.bf16.msrb.mxu0 %v4787_v41  ;;  %v4797_v60 = vld [vmem:[#allocation13_spill] sm:$0xff]  ;;  %v4798_v41 = vld [vmem:[#allocation14_spill] sm:$0xff] }
 0x1db   :  { %1229 = vmatpush.bf16.msrb.mxu1 %v4788_v58  ;;  %v4799_v58 = vld [vmem:[#allocation15_spill] sm:$0xff] }
 0x1de   :  { %1204 = vmatpush.bf16.msra.mxu3 %v4789_v37  ;;  %1217 = vmatpush.bf16.msrb.mxu0 %v4790_v18 }
 0x1df   :  { %1230 = vmatpush.bf16.msrb.mxu1 %v4792_v19  ;;  %v4800_v19 = vld [vmem:[#allocation54_spill] sm:$0xff] }
 0x1e2   :  { %1296 = vmatpush.bf16.msrb.mxu3 %v4791_v17 }
 0x1e6   :  { %1297 = vmatpush.bf16.msrb.mxu3 %v4793_v7 }
 0x1ea   :  { %1298 = vmatpush.bf16.msrb.mxu3 %v4794_v54 }
 0x1ee   :  { %1299 = vmatpush.bf16.msrb.mxu3 %v4795_v4 }
 0x1f2   :  { %1300 = vmatpush.bf16.msrb.mxu3 %v4796_v57 }
 0x1f6   :  { %1301 = vmatpush.bf16.msrb.mxu3 %v4797_v60 }
 0x1fa   :  { %1302 = vmatpush.bf16.msrb.mxu3 %v4798_v41 }
 0x1fe   :  { %1303 = vmatpush.bf16.msrb.mxu3 %v4799_v58 }
 0x213   :  { %v975_v37 = vpop.f32.mrf.mxu2 }
 0x21b   :  { %v977_v18 = vpop.f32.mrf.mxu2 }
 0x21d   :  { %v948_v46 = vpop.f32.mrf.mxu0 }
 0x21e   :  { %v961_v17 = vpop.f32.mrf.mxu1 }
 0x223   :  { %v935_v15 = vpop.f32.mrf.mxu3 }
 0x224   :  { %v936_v8 = vadd.f32 %v935_v15, %v4800_v19  ;;  %v1074_v7 = vpop.f32.mrf.mxu2  ;;  %v949_v15 = vadd.f32 %v948_v46, %v4803_v34 }
 0x225   :  { %v950_v29 = vpop.f32.mrf.mxu0  ;;  %v1115_v2 = vrot.slane %v1074_v7, 4 }
 0x226   :  { %v1005_v54 = vadd.f32 %v975_v37, %v936_v8  ;;  %v963_v27 = vpop.f32.mrf.mxu1 }
 0x227   :  { %v1117_v18 = vadd.f32 %v1115_v2, %v4801_v5 }
 0x228   :  { %v2757_v4 = vmul.f32 -1.442695, %v1005_v54 }
 0x229   :  { %v2760_v8 = vmul.f32 -1.442695, %v1117_v18 }
 0x22a   :  { %2888 = vpow2.f32 %v2757_v4 }
 0x22b   :  { %v937_v57 = vpop.f32.mrf.mxu3 }
 0x22c   :  { %v1076_v60 = vpop.f32.mrf.mxu2 }
 0x22d   :  { %v1001_v0 = vpop.f32.mrf.mxu0 }
 0x22e   :  { %v1061_v41 = vpop.f32.mrf.mxu1 }
 0x22f   :  { %v1092_v47 = vrot.slane %v1061_v41, 4 }
 0x230   :  { %v2889_v58 = vpop.eup %2888 }
 0x231   :  { %v1009_v23 = vadd.f32 1.0, %v2889_v58  ;;  %v1094_v22 = vadd.f32 %v1092_v47, %v4802_v43 }
 0x233   :  { %2890 = vrcp.f32 %v1009_v23  ;;  %v988_v29 = vpop.f32.mrf.mxu3  ;;  %v2759_v27 = vmul.f32 -1.442695, %v1094_v22  ;;  %v1021_v5 = vand.u32 2147483648, %v1009_v23  ;;  %v1019_v46 = vand.u32 2147483647, %v1009_v23 }
 0x234   :  { %v1025_v37 = vadd.f32 %v988_v29, %v949_v15  ;;  %vm1015_vm12 = vweird.f32 %v1009_v23 }
 0x235   :  { %v1003_v54 = vpop.f32.mrf.mxu0  ;;  %2892 = vpow2.f32 %v2759_v27  ;;  %vm1020_vm14 = vcmp.eq.f32.partialorder %v1019_v46, 8.507059e+37 }
 0x236   :  { %v1063_v4 = vpop.f32.mrf.mxu1  ;;  %v2758_v7 = vmul.f32 -1.442695, %v1025_v37  ;;  %2894 = vpow2.f32 %v2760_v8  ;;  %v1022_v8 = vor.u32 1.1754944e-38, %v1021_v5  ;;  %v4804_v37 = vld [vmem:[#allocation56_spill] sm:$0xff] }
 0x237   :  { %v1045_v54 = vadd.f32 %v4804_v37, %v1001_v0 }
 0x238   :  { %2896 = vpow2.f32 %v2758_v7  ;;  %v4805_v7 = vld [vmem:[#allocation57_spill] sm:$0xff] }
 0x239   :  { %v2891_v57 = vpop.eup %2890 }
 0x23a   :  { %v1011_v60 = vmul.f32 %v2891_v57, %v1009_v23  ;;  %vm1016_vm11 = vweird.f32 %v2891_v57 }
 0x23b   :  { %v990_v41 = vpop.f32.mrf.mxu3  ;;  %v2893_v58 = vpop.eup %2892  ;;  %vm1017_vm13 = vmor %vm1015_vm12, %vm1016_vm11 }
 0x23c   :  { %v1012_v2 = vsub.f32 1.0, %v1011_v60  ;;  %v2895_v47 = vpop.eup %2894  ;;  %v1098_v34 = vadd.f32 1.0, %v2893_v58  ;;  %v962_v60 = vadd.f32 %v961_v17, %v4805_v7 }
 0x23d   :  { %v4019_v29 = vadd.f32 1.0, %v2895_v47 }
 0x23e   :  { %v1013_v43 = vmul.f32 %v2891_v57, %v1012_v2  ;;  %v2897_v18 = vpop.eup %2896  ;;  %2898 = vrcp.f32 %v1098_v34  ;;  %v1108_v5 = vand.u32 2147483647, %v1098_v34  ;;  %vm1104_vm1 = vweird.f32 %v1098_v34 }
 0x23f   :  { %v1029_v15 = vadd.f32 1.0, %v2897_v18  ;;  %vm1127_vm9 = vweird.f32 %v4019_v29 }
 0x240   :  { %v1014_v22 = vadd.f32 %v2891_v57, %v1013_v43  ;;  %vm1109_vm5 = vcmp.eq.f32.partialorder %v1108_v5, 8.507059e+37 }
 0x241   :  { %2900 = vrcp.f32 %v1029_v15  ;;  %v1041_v17 = vand.u32 2147483648, %v1029_v15  ;;  %v1039_v7 = vand.u32 2147483647, %v1029_v15  ;;  %vm1035_vm3 = vweird.f32 %v1029_v15 }
 0x242   :  { %v1018_v27 = vsel %vm1017_vm13, %v2891_v57, %v1014_v22  ;;  %2902 = vrcp.f32 %v4019_v29  ;;  %v1110_v57 = vand.u32 2147483648, %v1098_v34 }
 0x243   :  { %v1023_v4 = vsel %vm1020_vm14, %v1022_v8, %v1018_v27  ;;  %v4806_v8 = vld [vmem:[#allocation46_spill] sm:$0xff]  ;;  %vm1040_vm7 = vcmp.eq.f32.partialorder %v1039_v7, 8.507059e+37  ;;  %v1131_v7 = vand.u32 2147483647, %v4019_v29 }
 0x244   :  { %v1046_v41 = vmul.f32 %v1045_v54, %v1023_v4  ;;  %v1087_v2 = vpop.f32.mrf.mxu3  ;;  %v2899_v43 = vpop.eup %2898 }
 0x245   :  { %v1100_v58 = vmul.f32 %v2899_v43, %v1098_v34  ;;  %vm1105_vm15 = vweird.f32 %v2899_v43  ;;  %v1137_v27 = vadd.f32 %v4806_v8, %v1087_v2  ;;  %v1042_v2 = vor.u32 1.1754944e-38, %v1041_v17 }
 0x246   :  { %v1047_v23 = vadd.f32 %v1046_v41, %v962_v60  ;;  %vm1106_vm4 = vmor %vm1104_vm1, %vm1105_vm15  ;;  %vm1132_vm11 = vcmp.eq.f32.partialorder %v1131_v7, 8.507059e+37  ;;  %v4823_v7 = vld [vmem:[#allocation48_spill] sm:$0xff] }
 0x247   :  { %v2901_v18 = vpop.eup %2900  ;;  %v1101_v19 = vsub.f32 1.0, %v1100_v58  ;;  %v1111_v58 = vor.u32 1.1754944e-38, %v1110_v57  ;;  %v1139_v53 = vrot.slane %v1137_v27, 4 }
 0x248   :  { %2904 = vtanh.f32 %v1047_v23  ;;  %v1031_v47 = vmul.f32 %v2901_v18, %v1029_v15  ;;  %v2903_v46 = vpop.eup %2902  ;;  %vm1036_vm2 = vweird.f32 %v2901_v18 }
 0x249   :  { %v1102_v0 = vmul.f32 %v2899_v43, %v1101_v19  ;;  %v1123_v23 = vmul.f32 %v2903_v46, %v4019_v29  ;;  %vm1037_vm6 = vmor %vm1035_vm3, %vm1036_vm2  ;;  %vm1128_vm8 = vweird.f32 %v2903_v46 }
 0x24a   :  { %v1032_v22 = vsub.f32 1.0, %v1031_v47  ;;  %vm1129_vm10 = vmor %vm1127_vm9, %vm1128_vm8 }
 0x24b   :  { %v1103_v60 = vadd.f32 %v2899_v43, %v1102_v0 }
 0x24c   :  { %v1089_v54 = vpop.f32.mrf.mxu3  ;;  %v1033_v4 = vmul.f32 %v2901_v18, %v1032_v22 }
 0x24d   :  { %v1107_v37 = vsel %vm1106_vm4, %v2899_v43, %v1103_v60  ;;  %v1124_v54 = vsub.f32 1.0, %v1123_v23 }
 0x24e   :  { %v2905_v41 = vpop.eup %2904  ;;  %v1034_v19 = vadd.f32 %v2901_v18, %v1033_v4  ;;  %v1112_v34 = vsel %vm1109_vm5, %v1111_v58, %v1107_v37  ;;  %v4809_v58 = vld [vmem:[#allocation30_spill] sm:$0xff] }
 0x24f   :  { %v1049_v47 = vsub.f32 %v3931_v49, %v2905_v41  ;;  %v1141_v22 = vmul.f32 %v1139_v53, %v1112_v34  ;;  %v1125_v5 = vmul.f32 %v2903_v46, %v1124_v54  ;;  %v1133_v53 = vand.u32 2147483648, %v4019_v29  ;;  %v4813_v34 = vld [vmem:[#allocation18_spill] sm:$0xff]  ;;  %v4816_v54 = vld [vmem:[#allocation8_spill] sm:$0xff]  ;;  %v4833_v49 = vld [vmem:[#allocation51_spill] sm:$0xff] }
 0x250   :  { %v1038_v8 = vsel %vm1037_vm6, %v2901_v18, %v1034_v19  ;;  %v4811_v19 = vld [vmem:[#allocation43_spill] sm:$0xff] }
 0x251   :  { %v1043_v0 = vsel %vm1040_vm7, %v1042_v2, %v1038_v8  ;;  %v1142_v30 = vadd.f32 %v1141_v22, %v3775_v38  ;;  %v1126_v43 = vadd.f32 %v2903_v46, %v1125_v5  ;;  %v1134_v27 = vor.u32 1.1754944e-38, %v1133_v53  ;;  %v4812_v2 = vld [vmem:[#allocation6_spill] sm:$0xff]  ;;  %v4814_v22 = vld [vmem:[#allocation32_spill] sm:$0xff]  ;;  %v4815_v8 = vld [vmem:[#allocation45_spill] sm:$0xff] }
 0x252   :  { %v1050_v26 = vmul.f32 %v1049_v47, %v1043_v0  ;;  %v4810_v47 = vld [vmem:[#allocation42_spill] sm:$0xff]  ;;  %v4817_v0 = vld [vmem:[#allocation19_spill] sm:$0xff] }
 0x253   :  { %2906 = vtanh.f32 %v1142_v30  ;;  %v1130_v30 = vsel %vm1129_vm10, %v2903_v46, %v1126_v43  ;;  %v4808_v46 = vld [vmem:[#allocation17_spill] sm:$0xff]  ;;  %v4818_v5 = vld [vmem:[#allocation35_spill] sm:$0xff]  ;;  %v4820_v43 = vld [vmem:[#allocation10_spill] sm:$0xff] }
 0x254   :  { %v4028_v15 = vadd.f32 %v2905_v41, %v1050_v26  ;;  %v1135_v4 = vsel %vm1132_vm11, %v1134_v27, %v1130_v30  ;;  %v4822_v53 = vld [vmem:[#allocation38_spill] sm:$0xff]  ;;  %v4827_v27 = vld [vmem:[#allocation49_spill] sm:$0xff] }
 0x255   :  { %v4825_v30 = vld [vmem:[#allocation22_spill] sm:$0xff] }
 0x256   :  { %v1196_v57 = vpack.c.bf16 %v4028_v15, %v4028_v15 }
 0x258   :  { %1205 = vmatmul.bf16.vlgmr.msra.gmra.mxu3 %v1196_v57 }
 0x259   :  { %1414 = vmatpush.bf16.msra.mxu3 %v4762_v40  ;;  %v2907_v37 = vpop.eup %2906 }
 0x25a   :  { %v1145_v18 = vrot.slane %v2907_v37, 2 }
 0x25c   :  { %v1147_v26 = vsub.f32 %v3942_v9, %v1145_v18  ;;  %v4807_v9 = vld [vmem:[#allocation29_spill] sm:$0xff]  ;;  %v4824_v18 = vld [vmem:[#allocation12_spill] sm:$0xff] }
 0x25d   :  { %1415 = vmatpush.bf16.msra.mxu3 %v4763_v14 }
 0x25e   :  { %v1149_v17 = vrot.slane %v1147_v26, 6  ;;  %v4826_v26 = vld [vmem:[#allocation39_spill] sm:$0xff] }
 0x260   :  { %v1151_v60 = vmul.f32 %v1149_v17, %v1135_v4  ;;  %v4828_v17 = vld [vmem:[#allocation24_spill] sm:$0xff] }
 0x261   :  { %1416 = vmatpush.bf16.msra.mxu3 %v4764_v39  ;;  %v4829_v4 = vld [vmem:[#allocation40_spill] sm:$0xff] }
 0x262   :  { %v4039_v41 = vadd.f32 %v2907_v37, %v1151_v60  ;;  %v4821_v37 = vld [vmem:[#allocation20_spill] sm:$0xff]  ;;  %v4830_v60 = vld [vmem:[#allocation50_spill] sm:$0xff] }
 0x264   :  { %v1153_v23 = vpack.c.bf16 %v4039_v41, %v4039_v41 }
 0x265   :  { %1417 = vmatpush.bf16.msra.mxu3 %v3469_v61 }
 0x266   :  { %v1155_v29 = vrot.slane %v1153_v23, 2  ;;  %v4831_v23 = vld [vmem:[#allocation26_spill] sm:$0xff] }
 0x268   :  { %1165 = vmatmul.bf16.vlgmr.msra.gmra.mxu0 %v1155_v29  ;;  %1178 = vmatmul.bf16.vlgmr.msra.gmra.mxu1 %v1155_v29 }
 0x269   :  { %1191 = vmatmul.bf16.vlgmr.msra.gmra.mxu2 %v1155_v29  ;;  %1304 = vmatmul.bf16.vlgmr.msrb.gmra.mxu3 %v1155_v29 }
 0x26a   :  { %1309 = vmatpush.bf16.msra.mxu0 %v3154_v33  ;;  %1388 = vmatpush.bf16.msra.mxu1 %v3322_v32 }
 0x26b   :  { %1401 = vmatpush.bf16.msra.mxu2 %v3483_v10  ;;  %1418 = vmatpush.bf16.msra.mxu3 %v3511_v35 }
 0x26e   :  { %1310 = vmatpush.bf16.msra.mxu0 %v3164_v36  ;;  %1389 = vmatpush.bf16.msra.mxu1 %v3346_v44 }
 0x26f   :  { %1402 = vmatpush.bf16.msra.mxu2 %v3525_v55  ;;  %1419 = vmatpush.bf16.msra.mxu3 %v3543_v21 }
 0x272   :  { %1311 = vmatpush.bf16.msra.mxu0 %v3192_v45  ;;  %1390 = vmatpush.bf16.msra.mxu1 %v3359_v50 }
 0x273   :  { %1403 = vmatpush.bf16.msra.mxu2 %v3556_v48  ;;  %1420 = vmatpush.bf16.msra.mxu3 %v3575_v31 }
 0x276   :  { %1312 = vmatpush.bf16.msra.mxu0 %v3220_v56  ;;  %1391 = vmatpush.bf16.msra.mxu1 %v3377_v59 }
 0x277   :  { %1404 = vmatpush.bf16.msra.mxu2 %v3592_v63  ;;  %1421 = vmatpush.bf16.msra.mxu3 %v3610_v16 }
 0x278   :  { %1218 = vmatmul.bf16.vlgmr.msrb.gmra.mxu0 %v1196_v57  ;;  %1231 = vmatmul.bf16.vlgmr.msrb.gmra.mxu1 %v1196_v57  ;;  %v4819_v57 = vld [vmem:[#allocation47_spill] sm:$0xff] }
 0x279   :  { %1291 = vmatmul.bf16.vlgmr.msrb.gmra.mxu2 %v1155_v29 }
 0x27a   :  { %1313 = vmatpush.bf16.msra.mxu0 %v3248_v1  ;;  %1392 = vmatpush.bf16.msra.mxu1 %v3404_v12 }
 0x27b   :  { %1514 = vmatpush.bf16.msrb.mxu3 %v3082_v3  ;;  %1405 = vmatpush.bf16.msra.mxu2 %v3632_v51 }
 0x27e   :  { %1314 = vmatpush.bf16.msra.mxu0 %v3273_v13  ;;  %1393 = vmatpush.bf16.msra.mxu1 %v3431_v28 }
 0x27f   :  { %1515 = vmatpush.bf16.msrb.mxu3 %v3091_v6  ;;  %1406 = vmatpush.bf16.msra.mxu2 %v3655_v42 }
 0x282   :  { %1315 = vmatpush.bf16.msra.mxu0 %v3292_v20  ;;  %1394 = vmatpush.bf16.msra.mxu1 %v3458_v52 }
 0x283   :  { %1516 = vmatpush.bf16.msrb.mxu3 %v3106_v11  ;;  %1407 = vmatpush.bf16.msra.mxu2 %v3675_v62 }
 0x286   :  { %1316 = vmatpush.bf16.msra.mxu0 %v3304_v24  ;;  %1395 = vmatpush.bf16.msra.mxu1 %v4807_v9 }
 0x287   :  { %1517 = vmatpush.bf16.msrb.mxu3 %v3133_v25  ;;  %1408 = vmatpush.bf16.msra.mxu2 %v4810_v47 }
 0x289   :  { %1317 = vmatmul.bf16.vlgmr.msra.gmra.mxu0 %v1155_v29  ;;  %v4832_v29 = vld [vmem:[#allocation41_spill] sm:$0xff] }
 0x28a   :  { %1428 = vmatpush.bf16.msrb.mxu0 %v4808_v46  ;;  %1441 = vmatpush.bf16.msrb.mxu1 %v4809_v58  ;;  %v4848_v46 = vld [vmem:[#allocation34_spill] sm:$0xff] }
 0x28b   :  { %1454 = vmatpush.bf16.msrb.mxu2 %v4811_v19  ;;  %1518 = vmatpush.bf16.msrb.mxu3 %v4812_v2 }
 0x28e   :  { %1429 = vmatpush.bf16.msrb.mxu0 %v4813_v34  ;;  %1442 = vmatpush.bf16.msrb.mxu1 %v4814_v22 }
 0x28f   :  { %1455 = vmatpush.bf16.msrb.mxu2 %v4815_v8  ;;  %1519 = vmatpush.bf16.msrb.mxu3 %v4816_v54 }
 0x292   :  { %1430 = vmatpush.bf16.msrb.mxu0 %v4817_v0  ;;  %1443 = vmatpush.bf16.msrb.mxu1 %v4818_v5 }
 0x293   :  { %1456 = vmatpush.bf16.msrb.mxu2 %v4819_v57  ;;  %1520 = vmatpush.bf16.msrb.mxu3 %v4820_v43  ;;  %v4845_v57 = vld [vmem:[#allocation54_spill] sm:$0xff] }
 0x296   :  { %1431 = vmatpush.bf16.msrb.mxu0 %v4821_v37  ;;  %1444 = vmatpush.bf16.msrb.mxu1 %v4822_v53  ;;  %v4835_v53 = vld [vmem:[#allocation44_spill] sm:$0xff] }
 0x297   :  { %1457 = vmatpush.bf16.msrb.mxu2 %v4823_v7  ;;  %1521 = vmatpush.bf16.msrb.mxu3 %v4824_v18  ;;  %v4834_v7 = vld [vmem:[#allocation27_spill] sm:$0xff] }
 0x29a   :  { %1432 = vmatpush.bf16.msrb.mxu0 %v4825_v30  ;;  %1445 = vmatpush.bf16.msrb.mxu1 %v4826_v26  ;;  %v4836_v30 = vld [vmem:[#allocation4_spill] sm:$0xff] }
 0x29b   :  { %1458 = vmatpush.bf16.msrb.mxu2 %v4827_v27  ;;  %v4837_v26 = vld [vmem:[#allocation52_spill] sm:$0xff]  ;;  %v4838_v27 = vld [vmem:[#allocation5_spill] sm:$0xff] }
 0x29e   :  { %1433 = vmatpush.bf16.msrb.mxu0 %v4828_v17  ;;  %1446 = vmatpush.bf16.msrb.mxu1 %v4829_v4  ;;  %v4839_v17 = vld [vmem:[#allocation7_spill] sm:$0xff]  ;;  %v4840_v4 = vld [vmem:[#allocation9_spill] sm:$0xff] }
 0x29f   :  { %1459 = vmatpush.bf16.msrb.mxu2 %v4830_v60  ;;  %v4841_v60 = vld [vmem:[#allocation11_spill] sm:$0xff] }
 0x2a2   :  { %1434 = vmatpush.bf16.msrb.mxu0 %v4831_v23  ;;  %1447 = vmatpush.bf16.msrb.mxu1 %v4832_v29  ;;  %v4842_v23 = vld [vmem:[#allocation13_spill] sm:$0xff]  ;;  %v4843_v29 = vld [vmem:[#allocation14_spill] sm:$0xff] }
 0x2a3   :  { %1460 = vmatpush.bf16.msrb.mxu2 %v4833_v49  ;;  %v4844_v49 = vld [vmem:[#allocation15_spill] sm:$0xff] }
 0x2a6   :  { %1435 = vmatpush.bf16.msrb.mxu0 %v4834_v7  ;;  %1448 = vmatpush.bf16.msrb.mxu1 %v4835_v53 }
 0x2a7   :  { %1461 = vmatpush.bf16.msrb.mxu2 %v4837_v26 }
 0x2aa   :  { %1527 = vmatpush.bf16.msra.mxu0 %v4836_v30 }
 0x2ae   :  { %1528 = vmatpush.bf16.msra.mxu0 %v4838_v27 }
 0x2b2   :  { %1529 = vmatpush.bf16.msra.mxu0 %v4839_v17 }
 0x2b6   :  { %1530 = vmatpush.bf16.msra.mxu0 %v4840_v4 }
 0x2ba   :  { %1531 = vmatpush.bf16.msra.mxu0 %v4841_v60 }
 0x2be   :  { %1532 = vmatpush.bf16.msra.mxu0 %v4842_v23  ;;  %v4846_v23 = vld [vmem:[#allocation55_spill] sm:$0xff] }
 0x2c2   :  { %1533 = vmatpush.bf16.msra.mxu0 %v4843_v29 }
 0x2c6   :  { %1534 = vmatpush.bf16.msra.mxu0 %v4844_v49 }
 0x2db   :  { %v1206_v7 = vpop.f32.mrf.mxu3 }
 0x2e3   :  { %v1208_v53 = vpop.f32.mrf.mxu3 }
 0x2e5   :  { %v1166_v37 = vpop.f32.mrf.mxu0  ;;  %v1179_v30 = vpop.f32.mrf.mxu1 }
 0x2e6   :  { %v1167_v26 = vadd.f32 %v1166_v37, %v4845_v57  ;;  %v1180_v34 = vadd.f32 %v1179_v30, %v4846_v23 }
 0x2e8   :  { %v1236_v5 = vadd.f32 %v1206_v7, %v1167_v26 }
 0x2ea   :  { %v2761_v27 = vmul.f32 -1.442695, %v1236_v5  ;;  %v4847_v5 = vld [vmem:[#allocation36_spill] sm:$0xff] }
 0x2ec   :  { %2908 = vpow2.f32 %v2761_v27  ;;  %v1192_v17 = vpop.f32.mrf.mxu2  ;;  %v1305_v0 = vpop.f32.mrf.mxu3 }
 0x2ed   :  { %v1168_v4 = vpop.f32.mrf.mxu0  ;;  %v1181_v8 = vpop.f32.mrf.mxu1  ;;  %v1346_v47 = vrot.slane %v1305_v0, 2 }
 0x2ef   :  { %v1348_v7 = vadd.f32 %v1346_v47, %v4847_v5 }
 0x2f2   :  { %v2909_v60 = vpop.eup %2908 }
 0x2f3   :  { %v1240_v22 = vadd.f32 1.0, %v2909_v60 }
 0x2f4   :  { %v1194_v29 = vpop.f32.mrf.mxu2  ;;  %v1307_v18 = vpop.f32.mrf.mxu3 }
 0x2f5   :  { %2910 = vrcp.f32 %v1240_v22  ;;  %v1219_v49 = vpop.f32.mrf.mxu0  ;;  %v1232_v53 = vpop.f32.mrf.mxu1  ;;  %v2764_v18 = vmul.f32 -1.442695, %v1348_v7  ;;  %v1252_v24 = vand.u32 2147483648, %v1240_v22  ;;  %vm1246_vm13 = vweird.f32 %v1240_v22 }
 0x2f6   :  { %v1256_v19 = vadd.f32 %v1219_v49, %v1180_v34 }
 0x2f7   :  { %v1253_v34 = vor.u32 1.1754944e-38, %v1252_v24 }
 0x2f8   :  { %v2762_v58 = vmul.f32 -1.442695, %v1256_v19  ;;  %v1250_v19 = vand.u32 2147483647, %v1240_v22 }
 0x2fa   :  { %2912 = vpow2.f32 %v2762_v58  ;;  %vm1251_vm15 = vcmp.eq.f32.partialorder %v1250_v19, 8.507059e+37 }
 0x2fb   :  { %v2911_v37 = vpop.eup %2910 }
 0x2fc   :  { %v1292_v26 = vpop.f32.mrf.mxu2  ;;  %v1242_v27 = vmul.f32 %v2911_v37, %v1240_v22  ;;  %vm1247_vm12 = vweird.f32 %v2911_v37 }
 0x2fd   :  { %v1323_v4 = vrot.slane %v1292_v26, 2  ;;  %v1221_v8 = vpop.f32.mrf.mxu0  ;;  %v1234_v57 = vpop.f32.mrf.mxu1  ;;  %vm1248_vm14 = vmor %vm1246_vm13, %vm1247_vm12  ;;  %v4850_v26 = vld [vmem:[#allocation57_spill] sm:$0xff] }
 0x2fe   :  { %v1243_v60 = vsub.f32 1.0, %v1242_v27  ;;  %v4849_v57 = vld [vmem:[#allocation56_spill] sm:$0xff]  ;;  %v1193_v27 = vadd.f32 %v1192_v17, %v4850_v26 }
 0x2ff   :  { %v1325_v30 = vadd.f32 %v1323_v4, %v4848_v46  ;;  %v1276_v46 = vadd.f32 %v4849_v57, %v1232_v53 }
 0x300   :  { %v2913_v29 = vpop.eup %2912  ;;  %v1244_v9 = vmul.f32 %v2911_v37, %v1243_v60 }
 0x301   :  { %v1260_v23 = vadd.f32 1.0, %v2913_v29  ;;  %v2763_v49 = vmul.f32 -1.442695, %v1325_v30 }
 0x302   :  { %v1245_v58 = vadd.f32 %v2911_v37, %v1244_v9 }
 0x303   :  { %2914 = vrcp.f32 %v1260_v23  ;;  %v1270_v19 = vand.u32 2147483647, %v1260_v23  ;;  %vm1266_vm2 = vweird.f32 %v1260_v23 }
 0x304   :  { %2916 = vpow2.f32 %v2763_v49  ;;  %v1294_v47 = vpop.f32.mrf.mxu2  ;;  %v1249_v0 = vsel %vm1248_vm14, %v2911_v37, %v1245_v58 }
 0x305   :  { %2918 = vpow2.f32 %v2764_v18  ;;  %v1254_v7 = vsel %vm1251_vm15, %v1253_v34, %v1249_v0  ;;  %v1272_v18 = vand.u32 2147483648, %v1260_v23  ;;  %vm1271_vm4 = vcmp.eq.f32.partialorder %v1270_v19, 8.507059e+37 }
 0x306   :  { %v1318_v5 = vpop.f32.mrf.mxu0  ;;  %v1277_v4 = vmul.f32 %v1276_v46, %v1254_v7 }
 0x307   :  { %v1273_v17 = vor.u32 1.1754944e-38, %v1272_v18 }
 0x308   :  { %v1278_v29 = vadd.f32 %v1277_v4, %v1193_v27 }
 0x309   :  { %v2915_v8 = vpop.eup %2914 }
 0x30a   :  { %v2917_v60 = vpop.eup %2916  ;;  %v1262_v30 = vmul.f32 %v2915_v8, %v1260_v23  ;;  %2920 = vtanh.f32 %v1278_v29  ;;  %vm1267_vm1 = vweird.f32 %v2915_v8 }
 0x30b   :  { %v2919_v9 = vpop.eup %2918  ;;  %v1329_v22 = vadd.f32 1.0, %v2917_v60  ;;  %vm1268_vm3 = vmor %vm1266_vm2, %vm1267_vm1 }
 0x30c   :  { %v1263_v49 = vsub.f32 1.0, %v1262_v30  ;;  %v1352_v24 = vadd.f32 1.0, %v2919_v9 }
 0x30d   :  { %2922 = vrcp.f32 %v1329_v22  ;;  %v1341_v60 = vand.u32 2147483648, %v1329_v22  ;;  %v1339_v23 = vand.u32 2147483647, %v1329_v22  ;;  %vm1335_vm6 = vweird.f32 %v1329_v22 }
 0x30e   :  { %v1264_v37 = vmul.f32 %v2915_v8, %v1263_v49  ;;  %v1320_v53 = vpop.f32.mrf.mxu0  ;;  %2924 = vrcp.f32 %v1352_v24  ;;  %v4124_v49 = vld [vmem:[%s4558_s4] ss:$0 sm:$0xff]  ;;  %vm1358_vm10 = vweird.f32 %v1352_v24 }
 0x30f   :  { %v1342_v53 = vor.u32 1.1754944e-38, %v1341_v60  ;;  %vm1340_vm8 = vcmp.eq.f32.partialorder %v1339_v23, 8.507059e+37 }
 0x310   :  { %v1265_v58 = vadd.f32 %v2915_v8, %v1264_v37  ;;  %v2921_v47 = vpop.eup %2920 }
 0x311   :  { %v1280_v57 = vsub.f32 %v4028_v15, %v2921_v47 }
 0x312   :  { %v1269_v34 = vsel %vm1268_vm3, %v2915_v8, %v1265_v58  ;;  %v1368_v8 = vadd.f32 %v4124_v49, %v1318_v5 }
 0x313   :  { %v2923_v0 = vpop.eup %2922  ;;  %v1274_v46 = vsel %vm1271_vm4, %v1273_v17, %v1269_v34 }
 0x314   :  { %v1331_v7 = vmul.f32 %v2923_v0, %v1329_v22  ;;  %v1281_v27 = vmul.f32 %v1280_v57, %v1274_v46  ;;  %v2925_v29 = vpop.eup %2924  ;;  %vm1336_vm5 = vweird.f32 %v2923_v0  ;;  %v1370_v17 = vrot.slane %v1368_v8, 2 }
 0x315   :  { %v1354_v19 = vmul.f32 %v2925_v29, %v1352_v24  ;;  %vm1337_vm7 = vmor %vm1335_vm6, %vm1336_vm5  ;;  %vm1359_vm9 = vweird.f32 %v2925_v29  ;;  %vm2445_vm6 = vcmask 1043456  }
 0x316   :  { %v1332_v4 = vsub.f32 1.0, %v1331_v7  ;;  %v4119_v30 = vadd.f32 %v2921_v47, %v1281_v27  ;;  %v1364_v27 = vand.u32 2147483648, %v1352_v24  ;;  %vm1360_vm11 = vmor %vm1358_vm10, %vm1359_vm9 }
 0x317   :  { %v1355_v57 = vsub.f32 1.0, %v1354_v19 }
 0x318   :  { %v1333_v9 = vmul.f32 %v2923_v0, %v1332_v4  ;;  %v1427_v18 = vpack.c.bf16 %v4119_v30, %v4119_v30 }
 0x319   :  { %v1356_v5 = vmul.f32 %v2925_v29, %v1355_v57  ;;  %v4858_v57 = vld [vmem:[#allocation18_spill] sm:$0xff] }
 0x31a   :  { %v1334_v37 = vadd.f32 %v2923_v0, %v1333_v9  ;;  %1436 = vmatmul.bf16.vlgmr.msrb.gmra.mxu0 %v1427_v18 }
 0x31b   :  { %1633 = vmatpush.bf16.msrb.mxu0 %v4762_v40  ;;  %v1357_v22 = vadd.f32 %v2925_v29, %v1356_v5  ;;  %v4860_v5 = vld [vmem:[#allocation45_spill] sm:$0xff] }
 0x31c   :  { %v1338_v58 = vsel %vm1337_vm7, %v2923_v0, %v1334_v37  ;;  %v1362_v0 = vand.u32 2147483647, %v1352_v24 }
 0x31d   :  { %v1343_v47 = vsel %vm1340_vm8, %v1342_v53, %v1338_v58  ;;  %v1361_v60 = vsel %vm1360_vm11, %v2925_v29, %v1357_v22  ;;  %v4852_v29 = vld [vmem:[#allocation29_spill] sm:$0xff]  ;;  %v4854_v58 = vld [vmem:[#allocation30_spill] sm:$0xff]  ;;  %v4861_v22 = vld [vmem:[#allocation19_spill] sm:$0xff]  ;;  %vm2447_vm8 = vcmask 1045504  }
 0x31e   :  { %v1372_v34 = vmul.f32 %v1370_v17, %v1343_v47  ;;  %vm1363_vm12 = vcmp.eq.f32.partialorder %v1362_v0, 8.507059e+37  ;;  %v4855_v17 = vld [vmem:[#allocation42_spill] sm:$0xff]  ;;  %v4856_v47 = vld [vmem:[#allocation43_spill] sm:$0xff]  ;;  %v4864_v0 = vld [vmem:[#allocation20_spill] sm:$0xff] }
 0x31f   :  { %1634 = vmatpush.bf16.msrb.mxu0 %v4763_v14 }
 0x320   :  { %v1373_v46 = vadd.f32 %v1372_v34, %v3775_v38  ;;  %v1365_v38 = vor.u32 1.1754944e-38, %v1364_v27  ;;  %v4857_v34 = vld [vmem:[#allocation12_spill] sm:$0xff]  ;;  %v4863_v27 = vld [vmem:[#allocation47_spill] sm:$0xff] }
 0x322   :  { %2926 = vtanh.f32 %v1373_v46  ;;  %v1366_v8 = vsel %vm1363_vm12, %v1365_v38, %v1361_v60  ;;  %v4859_v46 = vld [vmem:[#allocation32_spill] sm:$0xff]  ;;  %v4868_v38 = vld [vmem:[#allocation39_spill] sm:$0xff] }
 0x323   :  { %1635 = vmatpush.bf16.msrb.mxu0 %v4764_v39  ;;  %v4866_v60 = vld [vmem:[#allocation48_spill] sm:$0xff] }
 0x327   :  { %1636 = vmatpush.bf16.msrb.mxu0 %v3469_v61 }
 0x328   :  { %v2927_v7 = vpop.eup %2926 }
 0x329   :  { %v1376_v4 = vrot.slane %v2927_v7, 2 }
 0x32b   :  { %v1378_v9 = vsub.f32 %v4039_v41, %v1376_v4  ;;  %1637 = vmatpush.bf16.msrb.mxu0 %v3511_v35  ;;  %v4851_v41 = vld [vmem:[#allocation16_spill] sm:$0xff]  ;;  %v4865_v4 = vld [vmem:[#allocation38_spill] sm:$0xff] }
 0x32d   :  { %v1380_v23 = vrot.slane %v1378_v9, 6  ;;  %v4867_v9 = vld [vmem:[#allocation22_spill] sm:$0xff] }
 0x32f   :  { %v1382_v37 = vmul.f32 %v1380_v23, %v1366_v8  ;;  %1638 = vmatpush.bf16.msrb.mxu0 %v3543_v21  ;;  %v4869_v23 = vld [vmem:[#allocation49_spill] sm:$0xff]  ;;  %v4870_v8 = vld [vmem:[#allocation24_spill] sm:$0xff] }
 0x331   :  { %v4137_v19 = vadd.f32 %v2927_v7, %v1382_v37  ;;  %v4862_v7 = vld [vmem:[#allocation35_spill] sm:$0xff]  ;;  %v4871_v37 = vld [vmem:[#allocation40_spill] sm:$0xff] }
 0x333   :  { %v1384_v53 = vpack.c.bf16 %v4137_v19, %v4137_v19  ;;  %1639 = vmatpush.bf16.msrb.mxu0 %v3575_v31 }
 0x335   :  { %v1386_v24 = vrot.slane %v1384_v53, 3  ;;  %v4872_v53 = vld [vmem:[#allocation50_spill] sm:$0xff] }
 0x337   :  { %1396 = vmatmul.bf16.vlgmr.msra.gmra.mxu1 %v1386_v24  ;;  %1409 = vmatmul.bf16.vlgmr.msra.gmra.mxu2 %v1386_v24 }
 0x338   :  { %1422 = vmatmul.bf16.vlgmr.msra.gmra.mxu3 %v1386_v24  ;;  %1535 = vmatmul.bf16.vlgmr.msra.gmra.mxu0 %v1386_v24 }
 0x339   :  { %1540 = vmatpush.bf16.msra.mxu1 %v3154_v33  ;;  %1607 = vmatpush.bf16.msra.mxu2 %v3322_v32 }
 0x33a   :  { %1620 = vmatpush.bf16.msra.mxu3 %v3483_v10  ;;  %1640 = vmatpush.bf16.msrb.mxu0 %v3610_v16 }
 0x33d   :  { %1541 = vmatpush.bf16.msra.mxu1 %v3164_v36  ;;  %1608 = vmatpush.bf16.msra.mxu2 %v3346_v44 }
 0x33e   :  { %1733 = vmatpush.bf16.msra.mxu0 %v3082_v3  ;;  %1621 = vmatpush.bf16.msra.mxu3 %v3525_v55 }
 0x341   :  { %1542 = vmatpush.bf16.msra.mxu1 %v3192_v45  ;;  %1609 = vmatpush.bf16.msra.mxu2 %v3359_v50 }
 0x342   :  { %1734 = vmatpush.bf16.msra.mxu0 %v3091_v6  ;;  %1622 = vmatpush.bf16.msra.mxu3 %v3556_v48 }
 0x345   :  { %1543 = vmatpush.bf16.msra.mxu1 %v3220_v56  ;;  %1610 = vmatpush.bf16.msra.mxu2 %v3377_v59 }
 0x346   :  { %1735 = vmatpush.bf16.msra.mxu0 %v3106_v11  ;;  %1623 = vmatpush.bf16.msra.mxu3 %v3592_v63 }
 0x347   :  { %1449 = vmatmul.bf16.vlgmr.msrb.gmra.mxu1 %v1427_v18  ;;  %1462 = vmatmul.bf16.vlgmr.msrb.gmra.mxu2 %v1427_v18  ;;  %v4853_v18 = vld [vmem:[#allocation17_spill] sm:$0xff] }
 0x348   :  { %1522 = vmatmul.bf16.vlgmr.msrb.gmra.mxu3 %v1386_v24 }
 0x349   :  { %1544 = vmatpush.bf16.msra.mxu1 %v3248_v1  ;;  %1611 = vmatpush.bf16.msra.mxu2 %v3404_v12 }
 0x34a   :  { %1736 = vmatpush.bf16.msra.mxu0 %v3133_v25  ;;  %1624 = vmatpush.bf16.msra.mxu3 %v3632_v51 }
 0x34d   :  { %1545 = vmatpush.bf16.msra.mxu1 %v3273_v13  ;;  %1612 = vmatpush.bf16.msra.mxu2 %v3431_v28 }
 0x34e   :  { %1737 = vmatpush.bf16.msra.mxu0 %v4812_v2  ;;  %1625 = vmatpush.bf16.msra.mxu3 %v3655_v42 }
 0x351   :  { %1546 = vmatpush.bf16.msra.mxu1 %v3292_v20  ;;  %1613 = vmatpush.bf16.msra.mxu2 %v3458_v52 }
 0x352   :  { %1738 = vmatpush.bf16.msra.mxu0 %v4816_v54  ;;  %1626 = vmatpush.bf16.msra.mxu3 %v3675_v62 }
 0x355   :  { %1547 = vmatpush.bf16.msra.mxu1 %v4851_v41  ;;  %1614 = vmatpush.bf16.msra.mxu2 %v4852_v29 }
 0x356   :  { %1739 = vmatpush.bf16.msra.mxu0 %v4820_v43  ;;  %1627 = vmatpush.bf16.msra.mxu3 %v4855_v17  ;;  %v4888_v43 = vld [vmem:[#allocation55_spill] sm:$0xff]  ;;  %v4889_v17 = vld [vmem:[#allocation28_spill] sm:$0xff] }
 0x358   :  { %1548 = vmatmul.bf16.vlgmr.msra.gmra.mxu1 %v1386_v24  ;;  %v4873_v24 = vld [vmem:[#allocation26_spill] sm:$0xff] }
 0x359   :  { %1647 = vmatpush.bf16.msrb.mxu1 %v4853_v18  ;;  %1660 = vmatpush.bf16.msrb.mxu2 %v4854_v58  ;;  %v4890_v58 = vperm.slane %v4889_v17, 1 }
 0x35a   :  { %1673 = vmatpush.bf16.msrb.mxu3 %v4856_v47  ;;  %1740 = vmatpush.bf16.msra.mxu0 %v4857_v34 }
 0x35d   :  { %1648 = vmatpush.bf16.msrb.mxu1 %v4858_v57  ;;  %1661 = vmatpush.bf16.msrb.mxu2 %v4859_v46 }
 0x35e   :  { %1674 = vmatpush.bf16.msrb.mxu3 %v4860_v5 }
 0x361   :  { %1649 = vmatpush.bf16.msrb.mxu1 %v4861_v22  ;;  %1662 = vmatpush.bf16.msrb.mxu2 %v4862_v7 }
 0x362   :  { %1675 = vmatpush.bf16.msrb.mxu3 %v4863_v27  ;;  %v4874_v27 = vld [vmem:[#allocation41_spill] sm:$0xff] }
 0x365   :  { %1650 = vmatpush.bf16.msrb.mxu1 %v4864_v0  ;;  %1663 = vmatpush.bf16.msrb.mxu2 %v4865_v4  ;;  %v4875_v0 = vld [vmem:[#allocation51_spill] sm:$0xff] }
 0x366   :  { %1676 = vmatpush.bf16.msrb.mxu3 %v4866_v60  ;;  %v4876_v4 = vld [vmem:[#allocation27_spill] sm:$0xff]  ;;  %v4877_v60 = vld [vmem:[#allocation44_spill] sm:$0xff] }
 0x369   :  { %1651 = vmatpush.bf16.msrb.mxu1 %v4867_v9  ;;  %1664 = vmatpush.bf16.msrb.mxu2 %v4868_v38  ;;  %v4878_v9 = vld [vmem:[#allocation4_spill] sm:$0xff] }
 0x36a   :  { %1677 = vmatpush.bf16.msrb.mxu3 %v4869_v23  ;;  %v4879_v38 = vld [vmem:[#allocation52_spill] sm:$0xff]  ;;  %v4880_v23 = vld [vmem:[#allocation5_spill] sm:$0xff] }
 0x36d   :  { %1652 = vmatpush.bf16.msrb.mxu1 %v4870_v8  ;;  %1665 = vmatpush.bf16.msrb.mxu2 %v4871_v37  ;;  %v4881_v8 = vld [vmem:[#allocation7_spill] sm:$0xff]  ;;  %v4882_v37 = vld [vmem:[#allocation9_spill] sm:$0xff] }
 0x36e   :  { %1678 = vmatpush.bf16.msrb.mxu3 %v4872_v53  ;;  %v4883_v53 = vld [vmem:[#allocation11_spill] sm:$0xff] }
 0x371   :  { %1653 = vmatpush.bf16.msrb.mxu1 %v4873_v24  ;;  %1666 = vmatpush.bf16.msrb.mxu2 %v4874_v27  ;;  %v4884_v24 = vld [vmem:[#allocation13_spill] sm:$0xff]  ;;  %v4885_v27 = vld [vmem:[#allocation14_spill] sm:$0xff] }
 0x372   :  { %1679 = vmatpush.bf16.msrb.mxu3 %v4875_v0  ;;  %v4886_v0 = vld [vmem:[#allocation15_spill] sm:$0xff] }
 0x375   :  { %1654 = vmatpush.bf16.msrb.mxu1 %v4876_v4  ;;  %1667 = vmatpush.bf16.msrb.mxu2 %v4877_v60 }
 0x376   :  { %1680 = vmatpush.bf16.msrb.mxu3 %v4879_v38 }
 0x379   :  { %1746 = vmatpush.bf16.msra.mxu1 %v4878_v9  ;;  %v4887_v9 = vld [vmem:[#allocation54_spill] sm:$0xff] }
 0x37d   :  { %1747 = vmatpush.bf16.msra.mxu1 %v4880_v23 }
 0x381   :  { %1748 = vmatpush.bf16.msra.mxu1 %v4881_v8 }
 0x385   :  { %1749 = vmatpush.bf16.msra.mxu1 %v4882_v37 }
 0x389   :  { %1750 = vmatpush.bf16.msra.mxu1 %v4883_v53 }
 0x38d   :  { %1751 = vmatpush.bf16.msra.mxu1 %v4884_v24 }
 0x391   :  { %1752 = vmatpush.bf16.msra.mxu1 %v4885_v27 }
 0x395   :  { %1753 = vmatpush.bf16.msra.mxu1 %v4886_v0 }
 0x397   :  { %v1437_v4 = vpop.f32.mrf.mxu0 }
 0x39f   :  { %v1439_v60 = vpop.f32.mrf.mxu0 }
 0x3b4   :  { %v1397_v7 = vpop.f32.mrf.mxu1 }
 0x3b5   :  { %v1398_v22 = vadd.f32 %v1397_v7, %v4887_v9  ;;  %v1536_v38 = vpop.f32.mrf.mxu0  ;;  %v4891_v7 = vld [vmem:[#allocation33_spill] sm:$0xff] }
 0x3b6   :  { %v4212_v9 = vadd.f32 %v4891_v7, %v4890_v58 }
 0x3b7   :  { %v1467_v34 = vadd.f32 %v1437_v4, %v1398_v22 }
 0x3b8   :  { %4892 = vst [vmem:[#allocation21_spill] sm:$0xff] %v4212_v9  ;;  %v1573_v22 = vadd.f32 %v1536_v38, %v4212_v9 }
 0x3b9   :  { %v2765_v23 = vmul.f32 -1.442695, %v1467_v34 }
 0x3ba   :  { %v1410_v5 = vpop.f32.mrf.mxu2 }
 0x3bb   :  { %2928 = vpow2.f32 %v2765_v23  ;;  %v1423_v8 = vpop.f32.mrf.mxu3  ;;  %v1411_v27 = vadd.f32 %v1410_v5, %v4888_v43  ;;  %v4894_v23 = vld [vmem:[#allocation31_spill] sm:$0xff] }
 0x3bc   :  { %v1399_v37 = vpop.f32.mrf.mxu1 }
 0x3bd   :  { %v1538_v46 = vpop.f32.mrf.mxu0 }
 0x3be   :  { %v4893_v46 = vperm.slane %v4889_v17, 0 }
 0x3c0   :  { %v4218_v37 = vadd.f32 %v4894_v23, %v4893_v46 }
 0x3c1   :  { %v2929_v53 = vpop.eup %2928 }
 0x3c2   :  { %v1471_v57 = vadd.f32 1.0, %v2929_v53  ;;  %v1412_v24 = vpop.f32.mrf.mxu2  ;;  %4895 = vst [vmem:[#allocation23_spill] sm:$0xff] %v4218_v37 }
 0x3c3   :  { %v1425_v47 = vpop.f32.mrf.mxu3  ;;  %v2768_v24 = vmul.f32 -1.442695, %v1573_v22  ;;  %v4224_v22 = vld [vmem:[%s4562_s8] ss:$0 sm:$0xff] }
 0x3c4   :  { %2930 = vrcp.f32 %v1471_v57  ;;  %v1450_v0 = vpop.f32.mrf.mxu1  ;;  %v1483_v58 = vand.u32 2147483648, %v1471_v57  ;;  %v1481_v38 = vand.u32 2147483647, %v1471_v57  ;;  %vm1477_vm14 = vweird.f32 %v1471_v57  ;;  %4896 = vst [vmem:[#allocation25_spill] sm:$0xff] %v4224_v22 }
 0x3c5   :  { %v1487_v60 = vadd.f32 %v1450_v0, %v1411_v27 }
 0x3c6   :  { %v1484_v46 = vor.u32 1.1754944e-38, %v1483_v58  ;;  %vm1482_vm1 = vcmp.eq.f32.partialorder %v1481_v38, 8.507059e+37 }
 0x3c7   :  { %v2766_v34 = vmul.f32 -1.442695, %v1487_v60 }
 0x3c9   :  { %2932 = vpow2.f32 %v2766_v34 }
 0x3ca   :  { %v2931_v4 = vpop.eup %2930  ;;  %v1463_v5 = vpop.f32.mrf.mxu2 }
 0x3cb   :  { %v1473_v47 = vmul.f32 %v2931_v4, %v1471_v57  ;;  %v1523_v53 = vpop.f32.mrf.mxu3  ;;  %vm1478_vm13 = vweird.f32 %v2931_v4 }
 0x3cc   :  { %v1553_v27 = vadd.f32 %v1523_v53, %v4218_v37  ;;  %v1452_v0 = vpop.f32.mrf.mxu1  ;;  %vm1479_vm15 = vmor %vm1477_vm14, %vm1478_vm13 }
 0x3cd   :  { %v1474_v43 = vsub.f32 1.0, %v1473_v47 }
 0x3ce   :  { %v2767_v7 = vmul.f32 -1.442695, %v1553_v27  ;;  %v1424_v27 = vadd.f32 %v1423_v8, %v4850_v26 }
 0x3cf   :  { %v2933_v60 = vpop.eup %2932  ;;  %v1475_v18 = vmul.f32 %v2931_v4, %v1474_v43  ;;  %v1507_v43 = vadd.f32 %v4224_v22, %v1463_v5 }
 0x3d0   :  { %v1491_v34 = vadd.f32 1.0, %v2933_v60  ;;  %2934 = vpow2.f32 %v2767_v7 }
 0x3d1   :  { %2936 = vpow2.f32 %v2768_v24  ;;  %v1476_v9 = vadd.f32 %v2931_v4, %v1475_v18 }
 0x3d2   :  { %2938 = vrcp.f32 %v1491_v34  ;;  %v1465_v23 = vpop.f32.mrf.mxu2  ;;  %v1501_v5 = vand.u32 2147483647, %v1491_v34  ;;  %vm1497_vm3 = vweird.f32 %v1491_v34 }
 0x3d3   :  { %v1480_v29 = vsel %vm1479_vm15, %v2931_v4, %v1476_v9  ;;  %v1525_v47 = vpop.f32.mrf.mxu3  ;;  %v1503_v23 = vand.u32 2147483648, %v1491_v34 }
 0x3d4   :  { %v1485_v53 = vsel %vm1482_vm1, %v1484_v46, %v1480_v29  ;;  %vm1502_vm5 = vcmp.eq.f32.partialorder %v1501_v5, 8.507059e+37 }
 0x3d5   :  { %v1508_v0 = vmul.f32 %v1507_v43, %v1485_v53  ;;  %v1549_v18 = vpop.f32.mrf.mxu1  ;;  %v1504_v47 = vor.u32 1.1754944e-38, %v1503_v23  ;;  %v4897_v23 = vld [vmem:[#allocation37_spill] sm:$0xff] }
 0x3d6   :  { %v2935_v57 = vpop.eup %2934 }
 0x3d7   :  { %v2937_v24 = vpop.eup %2936  ;;  %v1509_v7 = vadd.f32 %v1508_v0, %v1424_v27  ;;  %v1557_v58 = vadd.f32 1.0, %v2935_v57  ;;  %v2427_v57 = vrot.slane %v4028_v15, 6 }
 0x3d8   :  { %v2939_v60 = vpop.eup %2938  ;;  %v4228_v4 = vadd.f32 1.0, %v2937_v24 }
 0x3d9   :  { %v1493_v9 = vmul.f32 %v2939_v60, %v1491_v34  ;;  %2940 = vtanh.f32 %v1509_v7  ;;  %vm1498_vm2 = vweird.f32 %v2939_v60  ;;  %v1567_v34 = vand.u32 2147483647, %v1557_v58 }
 0x3da   :  { %2942 = vrcp.f32 %v1557_v58  ;;  %vm1499_vm4 = vmor %vm1497_vm3, %vm1498_vm2  ;;  %v2444_v5 = vsel %vm60_vm0, %v4897_v23, %v2427_v57  ;;  %vm1563_vm9 = vweird.f32 %v1557_v58  ;;  %v4898_v57 = vperm.slane %v4889_v17, 2 }
 0x3db   :  { %v1494_v38 = vsub.f32 1.0, %v1493_v9  ;;  %2944 = vrcp.f32 %v4228_v4  ;;  %vm1568_vm11 = vcmp.eq.f32.partialorder %v1567_v34, 8.507059e+37  ;;  %v1589_v34 = vand.u32 2147483648, %v4228_v4 }
 0x3dc   :  { %vm1583_vm13 = vweird.f32 %v4228_v4  ;;  %v1587_v17 = vand.u32 2147483647, %v4228_v4 }
 0x3dd   :  { %v1495_v37 = vmul.f32 %v2939_v60, %v1494_v38  ;;  %v1551_v29 = vpop.f32.mrf.mxu1  ;;  %v2430_v38 = vrot.slane %v4119_v30, 4 }
 0x3de   :  { %v1569_v29 = vand.u32 2147483648, %v1557_v58  ;;  %vm1588_vm15 = vcmp.eq.f32.partialorder %v1587_v17, 8.507059e+37  ;;  %v4915_v17 = vld [vmem:[#allocation48_spill] sm:$0xff] }
 0x3df   :  { %v2941_v46 = vpop.eup %2940  ;;  %v1496_v8 = vadd.f32 %v2939_v60, %v1495_v37 }
 0x3e0   :  { %v2943_v43 = vpop.eup %2942  ;;  %v1511_v53 = vsub.f32 %v4119_v30, %v2941_v46 }
 0x3e1   :  { %v1559_v27 = vmul.f32 %v2943_v43, %v1557_v58  ;;  %v1500_v0 = vsel %vm1499_vm4, %v2939_v60, %v1496_v8  ;;  %v2945_v26 = vpop.eup %2944  ;;  %vm1564_vm7 = vweird.f32 %v2943_v43  ;;  %v2446_v8 = vsel %vm2445_vm6, %v2444_v5, %v2430_v38 }
 0x3e2   :  { %v1505_v24 = vsel %vm1502_vm5, %v1504_v47, %v1500_v0  ;;  %v1579_v47 = vmul.f32 %v2945_v26, %v4228_v4  ;;  %vm1565_vm10 = vmor %vm1563_vm9, %vm1564_vm7  ;;  %vm1584_vm12 = vweird.f32 %v2945_v26 }
 0x3e3   :  { %v1560_v7 = vsub.f32 1.0, %v1559_v27  ;;  %v1512_v9 = vmul.f32 %v1511_v53, %v1505_v24  ;;  %v1570_v53 = vor.u32 1.1754944e-38, %v1569_v29  ;;  %v1593_v27 = vadd.f32 %v4124_v49, %v1549_v18  ;;  %v4899_v24 = vld [vmem:[#allocation53_spill] sm:$0xff]  ;;  %vm1585_vm14 = vmor %vm1583_vm13, %vm1584_vm12 }
 0x3e5   :  { %v1561_v37 = vmul.f32 %v2943_v43, %v1560_v7  ;;  %v4234_v22 = vadd.f32 %v2941_v46, %v1512_v9  ;;  %v4255_v7 = vadd.f32 %v4899_v24, %v4898_v57  ;;  %v1580_v9 = vsub.f32 1.0, %v1579_v47  ;;  %v4906_v57 = vld [vmem:[#allocation18_spill] sm:$0xff]  ;;  %v4907_v24 = vld [vmem:[#allocation32_spill] sm:$0xff] }
 0x3e7   :  { %v1562_v60 = vadd.f32 %v2943_v43, %v1561_v37  ;;  %v4240_v15 = vpack.c.bf16 %v4234_v22, %v4234_v22  ;;  %v2433_v30 = vrot.slane %v4234_v22, 2  ;;  %v1581_v38 = vmul.f32 %v2945_v26, %v1580_v9  ;;  %v4909_v9 = vld [vmem:[#allocation12_spill] sm:$0xff] }
 0x3e9   :  { %v1566_v46 = vsel %vm1565_vm10, %v2943_v43, %v1562_v60  ;;  %1655 = vmatmul.bf16.vlgmr.msrb.gmra.mxu1 %v4240_v15  ;;  %v2448_v58 = vsel %vm2447_vm8, %v2446_v8, %v2433_v30  ;;  %v1582_v29 = vadd.f32 %v2945_v26, %v1581_v38  ;;  %v1590_v30 = vor.u32 1.1754944e-38, %v1589_v34  ;;  %v4911_v38 = vld [vmem:[#allocation35_spill] sm:$0xff]  ;;  %v4914_v34 = vld [vmem:[#allocation38_spill] sm:$0xff] }
 0x3ea   :  { %v1571_v0 = vsel %vm1568_vm11, %v1570_v53, %v1566_v46  ;;  %1864 = vmatpush.bf16.msrb.mxu1 %v4762_v40  ;;  %2452 = vst [vmem:[%s4564_s9] sm:$0xff] %v2448_v58  ;;  %v4904_v58 = vld [vmem:[#allocation43_spill] sm:$0xff] }
 0x3eb   :  { %v1594_v43 = vmul.f32 %v1593_v27, %v1571_v0  ;;  %v1586_v5 = vsel %vm1585_vm14, %v2945_v26, %v1582_v29  ;;  %v4900_v26 = vld [vmem:[#allocation29_spill] sm:$0xff]  ;;  %v4903_v27 = vld [vmem:[#allocation42_spill] sm:$0xff]  ;;  %v4912_v29 = vld [vmem:[#allocation47_spill] sm:$0xff] }
 0x3ec   :  { %v1591_v47 = vsel %vm1588_vm15, %v1590_v30, %v1586_v5  ;;  %v4905_v0 = vld [vmem:[#allocation10_spill] sm:$0xff]  ;;  %v4917_v5 = vld [vmem:[#allocation39_spill] sm:$0xff]  ;;  %v4919_v30 = vld [vmem:[#allocation24_spill] sm:$0xff] }
 0x3ed   :  { %v1595_v18 = vadd.f32 %v1594_v43, %v4255_v7  ;;  %v4908_v43 = vld [vmem:[#allocation45_spill] sm:$0xff] }
 0x3ee   :  { %1865 = vmatpush.bf16.msrb.mxu1 %v4763_v14 }
 0x3ef   :  { %2946 = vtanh.f32 %v1595_v18  ;;  %v4910_v18 = vld [vmem:[#allocation19_spill] sm:$0xff] }
 0x3f2   :  { %1866 = vmatpush.bf16.msrb.mxu1 %v4764_v39 }
 0x3f5   :  { %v2947_v37 = vpop.eup %2946 }
 0x3f6   :  { %v1598_v23 = vrot.slane %v2947_v37, 2  ;;  %1867 = vmatpush.bf16.msrb.mxu1 %v3469_v61 }
 0x3f8   :  { %v1600_v60 = vsub.f32 %v4137_v19, %v1598_v23  ;;  %v4901_v19 = vld [vmem:[#allocation17_spill] sm:$0xff]  ;;  %v4916_v23 = vld [vmem:[#allocation22_spill] sm:$0xff] }
 0x3fa   :  { %v1602_v8 = vrot.slane %v1600_v60, 6  ;;  %1868 = vmatpush.bf16.msrb.mxu1 %v3511_v35  ;;  %v4918_v60 = vld [vmem:[#allocation49_spill] sm:$0xff] }
 0x3fc   :  { %v1604_v53 = vmul.f32 %v1602_v8, %v1591_v47  ;;  %v4920_v8 = vld [vmem:[#allocation40_spill] sm:$0xff]  ;;  %v4921_v47 = vld [vmem:[#allocation50_spill] sm:$0xff] }
 0x3fe   :  { %v4266_v46 = vadd.f32 %v2947_v37, %v1604_v53  ;;  %1869 = vmatpush.bf16.msrb.mxu1 %v3543_v21  ;;  %v4913_v37 = vld [vmem:[#allocation20_spill] sm:$0xff]  ;;  %v4922_v53 = vld [vmem:[#allocation26_spill] sm:$0xff] }
 0x400   :  { %v1606_v4 = vpack.c.bf16 %v4266_v46, %v4266_v46 }
 0x402   :  { %1615 = vmatmul.bf16.vlgmr.msra.gmra.mxu2 %v1606_v4  ;;  %1628 = vmatmul.bf16.vlgmr.msra.gmra.mxu3 %v1606_v4 }
 0x403   :  { %1641 = vmatmul.bf16.vlgmr.msrb.gmra.mxu0 %v1606_v4  ;;  %1754 = vmatmul.bf16.vlgmr.msra.gmra.mxu1 %v1606_v4 }
 0x404   :  { %1759 = vmatpush.bf16.msra.mxu2 %v3154_v33  ;;  %1838 = vmatpush.bf16.msra.mxu3 %v3322_v32 }
 0x405   :  { %1851 = vmatpush.bf16.msrb.mxu0 %v3483_v10  ;;  %1870 = vmatpush.bf16.msrb.mxu1 %v3575_v31 }
 0x408   :  { %1760 = vmatpush.bf16.msra.mxu2 %v3164_v36  ;;  %1839 = vmatpush.bf16.msra.mxu3 %v3346_v44 }
 0x409   :  { %1852 = vmatpush.bf16.msrb.mxu0 %v3525_v55  ;;  %1871 = vmatpush.bf16.msrb.mxu1 %v3610_v16 }
 0x40c   :  { %1761 = vmatpush.bf16.msra.mxu2 %v3192_v45  ;;  %1840 = vmatpush.bf16.msra.mxu3 %v3359_v50 }
 0x40d   :  { %1964 = vmatpush.bf16.msra.mxu1 %v3082_v3  ;;  %1853 = vmatpush.bf16.msrb.mxu0 %v3556_v48 }
 0x410   :  { %1762 = vmatpush.bf16.msra.mxu2 %v3220_v56  ;;  %1841 = vmatpush.bf16.msra.mxu3 %v3377_v59 }
 0x411   :  { %1965 = vmatpush.bf16.msra.mxu1 %v3091_v6  ;;  %1854 = vmatpush.bf16.msrb.mxu0 %v3592_v63 }
 0x412   :  { %1668 = vmatmul.bf16.vlgmr.msrb.gmra.mxu2 %v4240_v15  ;;  %1681 = vmatmul.bf16.vlgmr.msrb.gmra.mxu3 %v4240_v15  ;;  %v4902_v15 = vld [vmem:[#allocation30_spill] sm:$0xff] }
 0x413   :  { %1741 = vmatmul.bf16.vlgmr.msra.gmra.mxu0 %v1606_v4 }
 0x414   :  { %1763 = vmatpush.bf16.msra.mxu2 %v3248_v1  ;;  %1842 = vmatpush.bf16.msra.mxu3 %v3404_v12 }
 0x415   :  { %1966 = vmatpush.bf16.msra.mxu1 %v3106_v11  ;;  %1855 = vmatpush.bf16.msrb.mxu0 %v3632_v51 }
 0x418   :  { %1764 = vmatpush.bf16.msra.mxu2 %v3273_v13  ;;  %1843 = vmatpush.bf16.msra.mxu3 %v3431_v28 }
 0x419   :  { %1967 = vmatpush.bf16.msra.mxu1 %v3133_v25  ;;  %1856 = vmatpush.bf16.msrb.mxu0 %v3655_v42 }
 0x41c   :  { %1765 = vmatpush.bf16.msra.mxu2 %v3292_v20  ;;  %1844 = vmatpush.bf16.msra.mxu3 %v3458_v52 }
 0x41d   :  { %1968 = vmatpush.bf16.msra.mxu1 %v4812_v2  ;;  %1857 = vmatpush.bf16.msrb.mxu0 %v3675_v62 }
 0x420   :  { %1766 = vmatpush.bf16.msra.mxu2 %v4851_v41  ;;  %1845 = vmatpush.bf16.msra.mxu3 %v4900_v26 }
 0x421   :  { %1969 = vmatpush.bf16.msra.mxu1 %v4816_v54  ;;  %1858 = vmatpush.bf16.msrb.mxu0 %v4903_v27 }
 0x423   :  { %1767 = vmatmul.bf16.vlgmr.msra.gmra.mxu2 %v1606_v4  ;;  %v4923_v4 = vld [vmem:[#allocation41_spill] sm:$0xff] }
 0x424   :  { %1878 = vmatpush.bf16.msrb.mxu2 %v4901_v19  ;;  %1891 = vmatpush.bf16.msrb.mxu3 %v4902_v15  ;;  %v4939_v15 = vld [vmem:[#allocation55_spill] sm:$0xff] }
 0x425   :  { %1904 = vmatpush.bf16.msra.mxu0 %v4904_v58  ;;  %1970 = vmatpush.bf16.msra.mxu1 %v4905_v0  ;;  %v4938_v58 = vld [vmem:[#allocation23_spill] sm:$0xff] }
 0x428   :  { %1879 = vmatpush.bf16.msrb.mxu2 %v4906_v57  ;;  %1892 = vmatpush.bf16.msrb.mxu3 %v4907_v24 }
 0x429   :  { %1905 = vmatpush.bf16.msra.mxu0 %v4908_v43  ;;  %1971 = vmatpush.bf16.msra.mxu1 %v4909_v9  ;;  %v4924_v9 = vld [vmem:[#allocation51_spill] sm:$0xff]  ;;  %v4937_v43 = vld [vmem:[#allocation21_spill] sm:$0xff] }
 0x42c   :  { %1880 = vmatpush.bf16.msrb.mxu2 %v4910_v18  ;;  %1893 = vmatpush.bf16.msrb.mxu3 %v4911_v38 }
 0x42d   :  { %1906 = vmatpush.bf16.msra.mxu0 %v4912_v29  ;;  %v4936_v29 = vld [vmem:[#allocation54_spill] sm:$0xff] }
 0x430   :  { %1881 = vmatpush.bf16.msrb.mxu2 %v4913_v37  ;;  %1894 = vmatpush.bf16.msrb.mxu3 %v4914_v34  ;;  %v4925_v34 = vld [vmem:[#allocation27_spill] sm:$0xff] }
 0x431   :  { %1907 = vmatpush.bf16.msra.mxu0 %v4915_v17  ;;  %v4926_v17 = vld [vmem:[#allocation44_spill] sm:$0xff] }
 0x434   :  { %1882 = vmatpush.bf16.msrb.mxu2 %v4916_v23  ;;  %1895 = vmatpush.bf16.msrb.mxu3 %v4917_v5  ;;  %v4927_v23 = vld [vmem:[#allocation4_spill] sm:$0xff] }
 0x435   :  { %1908 = vmatpush.bf16.msra.mxu0 %v4918_v60  ;;  %v4928_v5 = vld [vmem:[#allocation52_spill] sm:$0xff]  ;;  %v4929_v60 = vld [vmem:[#allocation5_spill] sm:$0xff] }
 0x438   :  { %1883 = vmatpush.bf16.msrb.mxu2 %v4919_v30  ;;  %1896 = vmatpush.bf16.msrb.mxu3 %v4920_v8  ;;  %v4930_v30 = vld [vmem:[#allocation7_spill] sm:$0xff]  ;;  %v4931_v8 = vld [vmem:[#allocation9_spill] sm:$0xff] }
 0x439   :  { %1909 = vmatpush.bf16.msra.mxu0 %v4921_v47  ;;  %v4932_v47 = vld [vmem:[#allocation11_spill] sm:$0xff] }
 0x43c   :  { %1884 = vmatpush.bf16.msrb.mxu2 %v4922_v53  ;;  %1897 = vmatpush.bf16.msrb.mxu3 %v4923_v4  ;;  %v4933_v53 = vld [vmem:[#allocation13_spill] sm:$0xff]  ;;  %v4934_v4 = vld [vmem:[#allocation14_spill] sm:$0xff] }
 0x43d   :  { %1910 = vmatpush.bf16.msra.mxu0 %v4924_v9  ;;  %v4935_v9 = vld [vmem:[#allocation15_spill] sm:$0xff] }
 0x440   :  { %1885 = vmatpush.bf16.msrb.mxu2 %v4925_v34  ;;  %1898 = vmatpush.bf16.msrb.mxu3 %v4926_v17 }
 0x441   :  { %1911 = vmatpush.bf16.msra.mxu0 %v4928_v5 }
 0x444   :  { %1977 = vmatpush.bf16.msra.mxu2 %v4927_v23 }
 0x448   :  { %1978 = vmatpush.bf16.msra.mxu2 %v4929_v60 }
 0x44c   :  { %1979 = vmatpush.bf16.msra.mxu2 %v4930_v30 }
 0x450   :  { %1980 = vmatpush.bf16.msra.mxu2 %v4931_v8 }
 0x454   :  { %1981 = vmatpush.bf16.msra.mxu2 %v4932_v47 }
 0x458   :  { %1982 = vmatpush.bf16.msra.mxu2 %v4933_v53 }
 0x45c   :  { %1983 = vmatpush.bf16.msra.mxu2 %v4934_v4 }
 0x460   :  { %1984 = vmatpush.bf16.msra.mxu2 %v4935_v9 }
 0x466   :  { %v1656_v34 = vpop.f32.mrf.mxu1 }
 0x46e   :  { %v1658_v17 = vpop.f32.mrf.mxu1 }
 0x480   :  { %v1642_v37 = vpop.f32.mrf.mxu0  ;;  %v1755_v23 = vpop.f32.mrf.mxu1 }
 0x481   :  { %v1796_v8 = vrot.slane %v1755_v23, 6 }
 0x483   :  { %v1798_v4 = vadd.f32 %v1796_v8, %v4937_v43 }
 0x485   :  { %v1616_v0 = vpop.f32.mrf.mxu2  ;;  %v1629_v5 = vpop.f32.mrf.mxu3  ;;  %v2772_v17 = vmul.f32 -1.442695, %v1798_v4 }
 0x486   :  { %v1617_v60 = vadd.f32 %v1616_v0, %v4936_v29  ;;  %v1630_v19 = vadd.f32 %v1629_v5, %v4939_v15 }
 0x488   :  { %v1686_v38 = vadd.f32 %v1656_v34, %v1617_v60  ;;  %v1644_v30 = vpop.f32.mrf.mxu0  ;;  %v1757_v18 = vpop.f32.mrf.mxu1 }
 0x48a   :  { %v2769_v54 = vmul.f32 -1.442695, %v1686_v38 }
 0x48c   :  { %2948 = vpow2.f32 %v2769_v54 }
 0x48d   :  { %v1618_v47 = vpop.f32.mrf.mxu2  ;;  %v1631_v53 = vpop.f32.mrf.mxu3 }
 0x490   :  { %v1742_v24 = vpop.f32.mrf.mxu0 }
 0x491   :  { %v1773_v9 = vrot.slane %v1742_v24, 6 }
 0x492   :  { %v2949_v57 = vpop.eup %2948 }
 0x493   :  { %v1690_v2 = vadd.f32 1.0, %v2949_v57  ;;  %v1775_v27 = vadd.f32 %v1773_v9, %v4938_v58 }
 0x495   :  { %2950 = vrcp.f32 %v1690_v2  ;;  %v2771_v0 = vmul.f32 -1.442695, %v1775_v27  ;;  %v1669_v34 = vpop.f32.mrf.mxu2  ;;  %v1682_v18 = vpop.f32.mrf.mxu3  ;;  %v1702_v5 = vand.u32 2147483648, %v1690_v2  ;;  %vm1696_vm2 = vweird.f32 %v1690_v2 }
 0x496   :  { %2952 = vpow2.f32 %v2772_v17  ;;  %v1706_v38 = vadd.f32 %v1669_v34, %v1630_v19  ;;  %v1700_v19 = vand.u32 2147483647, %v1690_v2 }
 0x497   :  { %2954 = vpow2.f32 %v2771_v0  ;;  %v1703_v34 = vor.u32 1.1754944e-38, %v1702_v5 }
 0x498   :  { %v2770_v54 = vmul.f32 -1.442695, %v1706_v38  ;;  %v1744_v23 = vpop.f32.mrf.mxu0  ;;  %vm1701_vm4 = vcmp.eq.f32.partialorder %v1700_v19, 8.507059e+37 }
 0x49a   :  { %2956 = vpow2.f32 %v2770_v54  ;;  %v4940_v54 = vld [vmem:[#allocation25_spill] sm:$0xff] }
 0x49b   :  { %v2951_v60 = vpop.eup %2950  ;;  %v1726_v23 = vadd.f32 %v4940_v54, %v1682_v18 }
 0x49c   :  { %v2953_v30 = vpop.eup %2952  ;;  %v1692_v24 = vmul.f32 %v2951_v60, %v1690_v2  ;;  %vm1697_vm1 = vweird.f32 %v2951_v60 }
 0x49d   :  { %v2955_v8 = vpop.eup %2954  ;;  %v1671_v47 = vpop.f32.mrf.mxu2  ;;  %v4343_v4 = vadd.f32 1.0, %v2953_v30  ;;  %vm1698_vm3 = vmor %vm1696_vm2, %vm1697_vm1 }
 0x49e   :  { %v1684_v57 = vpop.f32.mrf.mxu3  ;;  %v1779_v53 = vadd.f32 1.0, %v2955_v8  ;;  %v1693_v9 = vsub.f32 1.0, %v1692_v24  ;;  %v4941_v8 = vld [vmem:[#allocation57_spill] sm:$0xff] }
 0x49f   :  { %v1643_v47 = vadd.f32 %v1642_v37, %v4941_v8  ;;  %vm1808_vm1 = vweird.f32 %v4343_v4 }
 0x4a0   :  { %v2957_v27 = vpop.eup %2956  ;;  %2958 = vrcp.f32 %v1779_v53  ;;  %v1694_v15 = vmul.f32 %v2951_v60, %v1693_v9  ;;  %v1791_v5 = vand.u32 2147483648, %v1779_v53  ;;  %vm1785_vm7 = vweird.f32 %v1779_v53 }
 0x4a1   :  { %v1710_v17 = vadd.f32 1.0, %v2957_v27 }
 0x4a2   :  { %v1695_v0 = vadd.f32 %v2951_v60, %v1694_v15 }
 0x4a3   :  { %2960 = vrcp.f32 %v1710_v17  ;;  %vm1716_vm12 = vweird.f32 %v1710_v17 }
 0x4a4   :  { %2962 = vrcp.f32 %v4343_v4  ;;  %v1699_v38 = vsel %vm1698_vm3, %v2951_v60, %v1695_v0  ;;  %v1789_v60 = vand.u32 2147483647, %v1779_v53 }
 0x4a5   :  { %v1704_v30 = vsel %vm1701_vm4, %v1703_v34, %v1699_v38  ;;  %v1722_v34 = vand.u32 2147483648, %v1710_v17 }
 0x4a6   :  { %v2959_v24 = vpop.eup %2958  ;;  %v1727_v57 = vmul.f32 %v1726_v23, %v1704_v30  ;;  %v1768_v9 = vpop.f32.mrf.mxu2  ;;  %v1720_v23 = vand.u32 2147483647, %v1710_v17  ;;  %vm1790_vm11 = vcmp.eq.f32.partialorder %v1789_v60, 8.507059e+37 }
 0x4a7   :  { %v1781_v58 = vmul.f32 %v2959_v24, %v1779_v53  ;;  %vm1786_vm5 = vweird.f32 %v2959_v24  ;;  %v1818_v19 = vadd.f32 %v4124_v49, %v1768_v9  ;;  %v1723_v49 = vor.u32 1.1754944e-38, %v1722_v34 }
 0x4a8   :  { %v1728_v43 = vadd.f32 %v1727_v57, %v1643_v47  ;;  %vm1787_vm10 = vmor %vm1785_vm7, %vm1786_vm5  ;;  %vm1721_vm14 = vcmp.eq.f32.partialorder %v1720_v23, 8.507059e+37 }
 0x4a9   :  { %v2961_v27 = vpop.eup %2960  ;;  %v1782_v15 = vsub.f32 1.0, %v1781_v58  ;;  %v1792_v58 = vor.u32 1.1754944e-38, %v1791_v5 }
 0x4aa   :  { %v2963_v2 = vpop.eup %2962  ;;  %v1712_v29 = vmul.f32 %v2961_v27, %v1710_v17  ;;  %2964 = vtanh.f32 %v1728_v43  ;;  %vm1717_vm9 = vweird.f32 %v2961_v27  ;;  %v1820_v43 = vrot.slane %v1818_v19, 6 }
 0x4ab   :  { %v1783_v26 = vmul.f32 %v2959_v24, %v1782_v15  ;;  %v1804_v0 = vmul.f32 %v2963_v2, %v4343_v4  ;;  %vm1718_vm13 = vmor %vm1716_vm12, %vm1717_vm9  ;;  %vm1809_vm15 = vweird.f32 %v2963_v2 }
 0x4ac   :  { %v1713_v18 = vsub.f32 1.0, %v1712_v29  ;;  %vm1810_vm2 = vmor %vm1808_vm1, %vm1809_vm15 }
 0x4ad   :  { %v1784_v37 = vadd.f32 %v2959_v24, %v1783_v26  ;;  %v1805_v26 = vsub.f32 1.0, %v1804_v0 }
 0x4ae   :  { %v1714_v38 = vmul.f32 %v2961_v27, %v1713_v18  ;;  %v1770_v30 = vpop.f32.mrf.mxu2 }
 0x4af   :  { %v1788_v47 = vsel %vm1787_vm10, %v2959_v24, %v1784_v37  ;;  %v1806_v24 = vmul.f32 %v2963_v2, %v1805_v26  ;;  %v4954_v26 = vld [vmem:[#allocation47_spill] sm:$0xff] }
 0x4b0   :  { %v2965_v57 = vpop.eup %2964  ;;  %v1715_v15 = vadd.f32 %v2961_v27, %v1714_v38  ;;  %v1793_v8 = vsel %vm1790_vm11, %v1792_v58, %v1788_v47 }
 0x4b1   :  { %v1730_v29 = vsub.f32 %v4234_v22, %v2965_v57  ;;  %v1822_v9 = vmul.f32 %v1820_v43, %v1793_v8  ;;  %v1807_v19 = vadd.f32 %v2963_v2, %v1806_v24  ;;  %v1814_v22 = vand.u32 2147483648, %v4343_v4  ;;  %v4947_v43 = vld [vmem:[#allocation6_spill] sm:$0xff]  ;;  %v4958_v24 = vld [vmem:[#allocation48_spill] sm:$0xff] }
 0x4b2   :  { %v1719_v53 = vsel %vm1718_vm13, %v2961_v27, %v1715_v15  ;;  %v1812_v8 = vand.u32 2147483647, %v4343_v4  ;;  %v4949_v15 = vld [vmem:[#allocation32_spill] sm:$0xff] }
 0x4b3   :  { %v1724_v18 = vsel %vm1721_vm14, %v1723_v49, %v1719_v53  ;;  %v1823_v54 = vadd.f32 %v1822_v9, %v4255_v7  ;;  %v1815_v37 = vor.u32 1.1754944e-38, %v1814_v22  ;;  %v4951_v49 = vld [vmem:[#allocation8_spill] sm:$0xff]  ;;  %v4953_v9 = vld [vmem:[#allocation35_spill] sm:$0xff]  ;;  %v4955_v53 = vld [vmem:[#allocation10_spill] sm:$0xff] }
 0x4b4   :  { %v1731_v5 = vmul.f32 %v1730_v29, %v1724_v18  ;;  %vm1813_vm3 = vcmp.eq.f32.partialorder %v1812_v8, 8.507059e+37  ;;  %v4952_v29 = vld [vmem:[#allocation19_spill] sm:$0xff]  ;;  %v4956_v18 = vld [vmem:[#allocation20_spill] sm:$0xff]  ;;  %v4962_v22 = vld [vmem:[#allocation49_spill] sm:$0xff] }
 0x4b5   :  { %2966 = vtanh.f32 %v1823_v54  ;;  %v1811_v54 = vsel %vm1810_vm2, %v2963_v2, %v1807_v19  ;;  %v4945_v2 = vld [vmem:[#allocation42_spill] sm:$0xff]  ;;  %v4963_v8 = vld [vmem:[#allocation24_spill] sm:$0xff] }
 0x4b6   :  { %v4352_v60 = vadd.f32 %v2965_v57, %v1731_v5  ;;  %v1816_v23 = vsel %vm1813_vm3, %v1815_v37, %v1811_v54  ;;  %v4948_v57 = vld [vmem:[#allocation18_spill] sm:$0xff]  ;;  %v4967_v37 = vld [vmem:[#allocation41_spill] sm:$0xff] }
 0x4b7   :  { %v4957_v5 = vld [vmem:[#allocation38_spill] sm:$0xff] }
 0x4b8   :  { %v1877_v17 = vpack.c.bf16 %v4352_v60, %v4352_v60  ;;  %v4960_v19 = vld [vmem:[#allocation22_spill] sm:$0xff] }
 0x4b9   :  { %v4965_v54 = vld [vmem:[#allocation50_spill] sm:$0xff] }
 0x4ba   :  { %1886 = vmatmul.bf16.vlgmr.msrb.gmra.mxu2 %v1877_v17 }
 0x4bb   :  { %v2967_v34 = vpop.eup %2966  ;;  %2095 = vmatpush.bf16.msrb.mxu2 %v4762_v40 }
 0x4bc   :  { %v1826_v27 = vrot.slane %v2967_v34, 2 }
 0x4be   :  { %v1828_v0 = vsub.f32 %v4266_v46, %v1826_v27  ;;  %v4944_v46 = vld [vmem:[#allocation30_spill] sm:$0xff]  ;;  %v4964_v27 = vld [vmem:[#allocation40_spill] sm:$0xff] }
 0x4bf   :  { %2096 = vmatpush.bf16.msrb.mxu2 %v4763_v14 }
 0x4c0   :  { %v1830_v38 = vrot.slane %v1828_v0, 6  ;;  %v4966_v0 = vld [vmem:[#allocation26_spill] sm:$0xff] }
 0x4c2   :  { %v1832_v58 = vmul.f32 %v1830_v38, %v1816_v23  ;;  %v4968_v38 = vld [vmem:[#allocation51_spill] sm:$0xff] }
 0x4c3   :  { %2097 = vmatpush.bf16.msrb.mxu2 %v4764_v39  ;;  %v4969_v23 = vld [vmem:[#allocation27_spill] sm:$0xff] }
 0x4c4   :  { %v4363_v30 = vadd.f32 %v2967_v34, %v1832_v58  ;;  %v4961_v34 = vld [vmem:[#allocation39_spill] sm:$0xff]  ;;  %v4970_v58 = vld [vmem:[#allocation44_spill] sm:$0xff] }
 0x4c6   :  { %v1834_v47 = vpack.c.bf16 %v4363_v30, %v4363_v30 }
 0x4c7   :  { %2098 = vmatpush.bf16.msrb.mxu2 %v3469_v61 }
 0x4c8   :  { %v1836_v4 = vrot.slane %v1834_v47, 1  ;;  %v4971_v47 = vld [vmem:[#allocation4_spill] sm:$0xff] }
 0x4ca   :  { %1846 = vmatmul.bf16.vlgmr.msra.gmra.mxu3 %v1836_v4  ;;  %1859 = vmatmul.bf16.vlgmr.msrb.gmra.mxu0 %v1836_v4 }
 0x4cb   :  { %1872 = vmatmul.bf16.vlgmr.msrb.gmra.mxu1 %v1836_v4  ;;  %1985 = vmatmul.bf16.vlgmr.msra.gmra.mxu2 %v1836_v4 }
 0x4cc   :  { %1990 = vmatpush.bf16.msra.mxu3 %v3154_v33  ;;  %2069 = vmatpush.bf16.msrb.mxu0 %v3322_v32 }
 0x4cd   :  { %2082 = vmatpush.bf16.msrb.mxu1 %v3483_v10  ;;  %2099 = vmatpush.bf16.msrb.mxu2 %v3511_v35 }
 0x4d0   :  { %1991 = vmatpush.bf16.msra.mxu3 %v3164_v36  ;;  %2070 = vmatpush.bf16.msrb.mxu0 %v3346_v44 }
 0x4d1   :  { %2083 = vmatpush.bf16.msrb.mxu1 %v3525_v55  ;;  %2100 = vmatpush.bf16.msrb.mxu2 %v3543_v21 }
 0x4d4   :  { %1992 = vmatpush.bf16.msra.mxu3 %v3192_v45  ;;  %2071 = vmatpush.bf16.msrb.mxu0 %v3359_v50 }
 0x4d5   :  { %2084 = vmatpush.bf16.msrb.mxu1 %v3556_v48  ;;  %2101 = vmatpush.bf16.msrb.mxu2 %v3575_v31 }
 0x4d8   :  { %1993 = vmatpush.bf16.msra.mxu3 %v3220_v56  ;;  %2072 = vmatpush.bf16.msrb.mxu0 %v3377_v59 }
 0x4d9   :  { %2085 = vmatpush.bf16.msrb.mxu1 %v3592_v63  ;;  %2102 = vmatpush.bf16.msrb.mxu2 %v3610_v16 }
 0x4da   :  { %1899 = vmatmul.bf16.vlgmr.msrb.gmra.mxu3 %v1877_v17  ;;  %1912 = vmatmul.bf16.vlgmr.msra.gmra.mxu0 %v1877_v17  ;;  %v4959_v17 = vld [vmem:[#allocation12_spill] sm:$0xff] }
 0x4db   :  { %1972 = vmatmul.bf16.vlgmr.msra.gmra.mxu1 %v1836_v4 }
 0x4dc   :  { %1994 = vmatpush.bf16.msra.mxu3 %v3248_v1  ;;  %2073 = vmatpush.bf16.msrb.mxu0 %v3404_v12 }
 0x4dd   :  { %2195 = vmatpush.bf16.msra.mxu2 %v3082_v3  ;;  %2086 = vmatpush.bf16.msrb.mxu1 %v3632_v51  ;;  %v4942_v3 = vld [vmem:[#allocation29_spill] sm:$0xff] }
 0x4e0   :  { %1995 = vmatpush.bf16.msra.mxu3 %v3273_v13  ;;  %2074 = vmatpush.bf16.msrb.mxu0 %v3431_v28 }
 0x4e1   :  { %2196 = vmatpush.bf16.msra.mxu2 %v3091_v6  ;;  %2087 = vmatpush.bf16.msrb.mxu1 %v3655_v42  ;;  %v4943_v6 = vld [vmem:[#allocation17_spill] sm:$0xff] }
 0x4e4   :  { %1996 = vmatpush.bf16.msra.mxu3 %v3292_v20  ;;  %2075 = vmatpush.bf16.msrb.mxu0 %v3458_v52 }
 0x4e5   :  { %2197 = vmatpush.bf16.msra.mxu2 %v3106_v11  ;;  %2088 = vmatpush.bf16.msrb.mxu1 %v3675_v62  ;;  %v4946_v11 = vld [vmem:[#allocation43_spill] sm:$0xff] }
 0x4e8   :  { %1997 = vmatpush.bf16.msra.mxu3 %v4851_v41  ;;  %2076 = vmatpush.bf16.msrb.mxu0 %v4942_v3 }
 0x4e9   :  { %2198 = vmatpush.bf16.msra.mxu2 %v3133_v25  ;;  %2089 = vmatpush.bf16.msrb.mxu1 %v4945_v2  ;;  %v4950_v25 = vld [vmem:[#allocation45_spill] sm:$0xff] }
 0x4eb   :  { %1998 = vmatmul.bf16.vlgmr.msra.gmra.mxu3 %v1836_v4  ;;  %v4972_v4 = vld [vmem:[#allocation52_spill] sm:$0xff] }
 0x4ec   :  { %2109 = vmatpush.bf16.msrb.mxu3 %v4943_v6  ;;  %2122 = vmatpush.bf16.msra.mxu0 %v4944_v46 }
 0x4ed   :  { %2135 = vmatpush.bf16.msra.mxu1 %v4946_v11  ;;  %2199 = vmatpush.bf16.msra.mxu2 %v4947_v43  ;;  %v4973_v43 = vld [vmem:[#allocation5_spill] sm:$0xff] }
 0x4f0   :  { %2110 = vmatpush.bf16.msrb.mxu3 %v4948_v57  ;;  %2123 = vmatpush.bf16.msra.mxu0 %v4949_v15 }
 0x4f1   :  { %2136 = vmatpush.bf16.msra.mxu1 %v4950_v25  ;;  %2200 = vmatpush.bf16.msra.mxu2 %v4951_v49  ;;  %v4974_v49 = vld [vmem:[#allocation7_spill] sm:$0xff] }
 0x4f2   :  { %v4983_v25 = vld [vmem:[#allocation55_spill] sm:$0xff] }
 0x4f4   :  { %2111 = vmatpush.bf16.msrb.mxu3 %v4952_v29  ;;  %2124 = vmatpush.bf16.msra.mxu0 %v4953_v9  ;;  %v4982_v9 = vld [vmem:[#allocation23_spill] sm:$0xff] }
 0x4f5   :  { %2137 = vmatpush.bf16.msra.mxu1 %v4954_v26  ;;  %2201 = vmatpush.bf16.msra.mxu2 %v4955_v53  ;;  %v4975_v53 = vld [vmem:[#allocation9_spill] sm:$0xff] }
 0x4f8   :  { %2112 = vmatpush.bf16.msrb.mxu3 %v4956_v18  ;;  %2125 = vmatpush.bf16.msra.mxu0 %v4957_v5  ;;  %v4981_v18 = vld [vmem:[#allocation21_spill] sm:$0xff] }
 0x4f9   :  { %2138 = vmatpush.bf16.msra.mxu1 %v4958_v24  ;;  %2202 = vmatpush.bf16.msra.mxu2 %v4959_v17  ;;  %v4976_v17 = vld [vmem:[#allocation11_spill] sm:$0xff] }
 0x4fc   :  { %2113 = vmatpush.bf16.msrb.mxu3 %v4960_v19  ;;  %2126 = vmatpush.bf16.msra.mxu0 %v4961_v34 }
 0x4fd   :  { %2139 = vmatpush.bf16.msra.mxu1 %v4962_v22 }
 0x500   :  { %2114 = vmatpush.bf16.msrb.mxu3 %v4963_v8  ;;  %2127 = vmatpush.bf16.msra.mxu0 %v4964_v27 }
 0x501   :  { %2140 = vmatpush.bf16.msra.mxu1 %v4965_v54 }
 0x504   :  { %2115 = vmatpush.bf16.msrb.mxu3 %v4966_v0  ;;  %2128 = vmatpush.bf16.msra.mxu0 %v4967_v37  ;;  %v4977_v0 = vld [vmem:[#allocation13_spill] sm:$0xff]  ;;  %v4978_v37 = vld [vmem:[#allocation14_spill] sm:$0xff] }
 0x505   :  { %2141 = vmatpush.bf16.msra.mxu1 %v4968_v38  ;;  %v4979_v38 = vld [vmem:[#allocation15_spill] sm:$0xff] }
 0x508   :  { %2116 = vmatpush.bf16.msrb.mxu3 %v4969_v23  ;;  %2129 = vmatpush.bf16.msra.mxu0 %v4970_v58 }
 0x509   :  { %2142 = vmatpush.bf16.msra.mxu1 %v4972_v4  ;;  %v4980_v4 = vld [vmem:[#allocation54_spill] sm:$0xff] }
 0x50c   :  { %2208 = vmatpush.bf16.msra.mxu3 %v4971_v47 }
 0x510   :  { %2209 = vmatpush.bf16.msra.mxu3 %v4973_v43 }
 0x514   :  { %2210 = vmatpush.bf16.msra.mxu3 %v4974_v49 }
 0x518   :  { %2211 = vmatpush.bf16.msra.mxu3 %v4975_v53 }
 0x51c   :  { %2212 = vmatpush.bf16.msra.mxu3 %v4976_v17 }
 0x520   :  { %2213 = vmatpush.bf16.msra.mxu3 %v4977_v0 }
 0x524   :  { %2214 = vmatpush.bf16.msra.mxu3 %v4978_v37 }
 0x528   :  { %2215 = vmatpush.bf16.msra.mxu3 %v4979_v38 }
 0x53d   :  { %v1887_v23 = vpop.f32.mrf.mxu2 }
 0x545   :  { %v1889_v58 = vpop.f32.mrf.mxu2 }
 0x547   :  { %v1860_v54 = vpop.f32.mrf.mxu0 }
 0x548   :  { %v1873_v47 = vpop.f32.mrf.mxu1 }
 0x54d   :  { %v1847_v27 = vpop.f32.mrf.mxu3 }
 0x54e   :  { %v1848_v8 = vadd.f32 %v1847_v27, %v4980_v4  ;;  %v1986_v43 = vpop.f32.mrf.mxu2  ;;  %v1861_v27 = vadd.f32 %v1860_v54, %v4983_v25 }
 0x54f   :  { %v1862_v22 = vpop.f32.mrf.mxu0  ;;  %v2027_v19 = vrot.slane %v1986_v43, 4 }
 0x550   :  { %v1917_v49 = vadd.f32 %v1887_v23, %v1848_v8  ;;  %v1875_v34 = vpop.f32.mrf.mxu1 }
 0x551   :  { %v2029_v58 = vadd.f32 %v2027_v19, %v4981_v18 }
 0x552   :  { %v2773_v53 = vmul.f32 -1.442695, %v1917_v49 }
 0x553   :  { %v2776_v8 = vmul.f32 -1.442695, %v2029_v58 }
 0x554   :  { %2968 = vpow2.f32 %v2773_v53 }
 0x555   :  { %v1849_v17 = vpop.f32.mrf.mxu3 }
 0x556   :  { %v1988_v0 = vpop.f32.mrf.mxu2 }
 0x557   :  { %v1913_v24 = vpop.f32.mrf.mxu0 }
 0x558   :  { %v1973_v37 = vpop.f32.mrf.mxu1 }
 0x559   :  { %v2004_v5 = vrot.slane %v1973_v37, 4 }
 0x55a   :  { %v2969_v38 = vpop.eup %2968 }
 0x55b   :  { %v1921_v26 = vadd.f32 1.0, %v2969_v38  ;;  %v2006_v29 = vadd.f32 %v2004_v5, %v4982_v9 }
 0x55d   :  { %2970 = vrcp.f32 %v1921_v26  ;;  %v1900_v22 = vpop.f32.mrf.mxu3  ;;  %v2775_v34 = vmul.f32 -1.442695, %v2006_v29  ;;  %v1933_v18 = vand.u32 2147483648, %v1921_v26  ;;  %v1931_v54 = vand.u32 2147483647, %v1921_v26 }
 0x55e   :  { %v1937_v23 = vadd.f32 %v1900_v22, %v1861_v27  ;;  %vm1927_vm5 = vweird.f32 %v1921_v26 }
 0x55f   :  { %v1915_v49 = vpop.f32.mrf.mxu0  ;;  %2972 = vpow2.f32 %v2775_v34  ;;  %vm1932_vm9 = vcmp.eq.f32.partialorder %v1931_v54, 8.507059e+37 }
 0x560   :  { %v1975_v53 = vpop.f32.mrf.mxu1  ;;  %v2774_v43 = vmul.f32 -1.442695, %v1937_v23  ;;  %2974 = vpow2.f32 %v2776_v8  ;;  %v1934_v8 = vor.u32 1.1754944e-38, %v1933_v18  ;;  %v4984_v23 = vld [vmem:[#allocation25_spill] sm:$0xff] }
 0x561   :  { %v1957_v49 = vadd.f32 %v4984_v23, %v1913_v24 }
 0x562   :  { %2976 = vpow2.f32 %v2774_v43  ;;  %v4985_v43 = vld [vmem:[#allocation57_spill] sm:$0xff] }
 0x563   :  { %v2971_v17 = vpop.eup %2970 }
 0x564   :  { %v1923_v0 = vmul.f32 %v2971_v17, %v1921_v26  ;;  %vm1928_vm4 = vweird.f32 %v2971_v17 }
 0x565   :  { %v1902_v37 = vpop.f32.mrf.mxu3  ;;  %v2973_v38 = vpop.eup %2972  ;;  %vm1929_vm7 = vmor %vm1927_vm5, %vm1928_vm4 }
 0x566   :  { %v1924_v19 = vsub.f32 1.0, %v1923_v0  ;;  %v2975_v5 = vpop.eup %2974  ;;  %v2010_v25 = vadd.f32 1.0, %v2973_v38  ;;  %v1874_v0 = vadd.f32 %v1873_v47, %v4985_v43  ;;  %v4448_v47 = vld [vmem:[%s4558_s4] ss:$0 sm:$0xff] }
 0x567   :  { %v4440_v22 = vadd.f32 1.0, %v2975_v5  ;;  %4986 = vst [vmem:[#allocation46_spill] sm:$0xff] %v4448_v47 }
 0x568   :  { %v1925_v9 = vmul.f32 %v2971_v17, %v1924_v19  ;;  %v2977_v58 = vpop.eup %2976  ;;  %2978 = vrcp.f32 %v2010_v25  ;;  %v2020_v18 = vand.u32 2147483647, %v2010_v25  ;;  %vm2016_vm11 = vweird.f32 %v2010_v25 }
 0x569   :  { %v1941_v27 = vadd.f32 1.0, %v2977_v58  ;;  %vm2039_vm4 = vweird.f32 %v4440_v22 }
 0x56a   :  { %v1926_v29 = vadd.f32 %v2971_v17, %v1925_v9  ;;  %vm2021_vm15 = vcmp.eq.f32.partialorder %v2020_v18, 8.507059e+37 }
 0x56b   :  { %2980 = vrcp.f32 %v1941_v27  ;;  %vm1947_vm13 = vweird.f32 %v1941_v27 }
 0x56c   :  { %v1930_v34 = vsel %vm1929_vm7, %v2971_v17, %v1926_v29  ;;  %2982 = vrcp.f32 %v4440_v22  ;;  %v2022_v17 = vand.u32 2147483648, %v2010_v25 }
 0x56d   :  { %v1935_v53 = vsel %vm1932_vm9, %v1934_v8, %v1930_v34  ;;  %v1953_v34 = vand.u32 2147483648, %v1941_v27 }
 0x56e   :  { %v1958_v37 = vmul.f32 %v1957_v49, %v1935_v53  ;;  %v1999_v19 = vpop.f32.mrf.mxu3  ;;  %v2979_v9 = vpop.eup %2978  ;;  %v1951_v53 = vand.u32 2147483647, %v1941_v27 }
 0x56f   :  { %v2012_v38 = vmul.f32 %v2979_v9, %v2010_v25  ;;  %vm2017_vm10 = vweird.f32 %v2979_v9  ;;  %v2049_v8 = vadd.f32 %v4448_v47, %v1999_v19  ;;  %v1954_v19 = vor.u32 1.1754944e-38, %v1953_v34 }
 0x570   :  { %v1959_v26 = vadd.f32 %v1958_v37, %v1874_v0  ;;  %vm2018_vm14 = vmor %vm2016_vm11, %vm2017_vm10  ;;  %vm1952_vm2 = vcmp.eq.f32.partialorder %v1951_v53, 8.507059e+37 }
 0x571   :  { %v2981_v58 = vpop.eup %2980  ;;  %v2013_v4 = vsub.f32 1.0, %v2012_v38  ;;  %v2051_v15 = vrot.slane %v2049_v8, 4 }
 0x572   :  { %2984 = vtanh.f32 %v1959_v26  ;;  %v1943_v5 = vmul.f32 %v2981_v58, %v1941_v27  ;;  %v2983_v54 = vpop.eup %2982  ;;  %vm1948_vm12 = vweird.f32 %v2981_v58 }
 0x573   :  { %v2014_v24 = vmul.f32 %v2979_v9, %v2013_v4  ;;  %v2035_v26 = vmul.f32 %v2983_v54, %v4440_v22  ;;  %v2023_v4 = vor.u32 1.1754944e-38, %v2022_v17  ;;  %vm1949_vm1 = vmor %vm1947_vm13, %vm1948_vm12  ;;  %vm2040_vm3 = vweird.f32 %v2983_v54 }
 0x574   :  { %v1944_v29 = vsub.f32 1.0, %v1943_v5  ;;  %vm2041_vm5 = vmor %vm2039_vm4, %vm2040_vm3 }
 0x575   :  { %v2015_v0 = vadd.f32 %v2979_v9, %v2014_v24  ;;  %v2036_v47 = vsub.f32 1.0, %v2035_v26  ;;  %v5010_v26 = vld [vmem:[#allocation55_spill] sm:$0xff] }
 0x576   :  { %v2001_v23 = vpop.f32.mrf.mxu3  ;;  %v1945_v49 = vmul.f32 %v2981_v58, %v1944_v29 }
 0x577   :  { %v2019_v43 = vsel %vm2018_vm14, %v2979_v9, %v2015_v0  ;;  %v2037_v18 = vmul.f32 %v2983_v54, %v2036_v47 }
 0x578   :  { %v2985_v37 = vpop.eup %2984  ;;  %v1946_v5 = vadd.f32 %v2981_v58, %v1945_v49  ;;  %v2024_v25 = vsel %vm2021_vm15, %v2023_v4, %v2019_v43 }
 0x579   :  { %v1961_v38 = vsub.f32 %v4352_v60, %v2985_v37  ;;  %v2053_v29 = vmul.f32 %v2051_v15, %v2024_v25  ;;  %v2038_v9 = vadd.f32 %v2983_v54, %v2037_v18  ;;  %v2045_v15 = vand.u32 2147483648, %v4440_v22 }
 0x57a   :  { %v1950_v23 = vsel %vm1949_vm1, %v2981_v58, %v1946_v5  ;;  %v2043_v58 = vand.u32 2147483647, %v4440_v22 }
 0x57b   :  { %v1955_v24 = vsel %vm1952_vm2, %v1954_v19, %v1950_v23  ;;  %v2054_v57 = vadd.f32 %v2053_v29, %v4255_v7  ;;  %v2046_v47 = vor.u32 1.1754944e-38, %v2045_v15 }
 0x57c   :  { %v1962_v11 = vmul.f32 %v1961_v38, %v1955_v24  ;;  %vm2044_vm7 = vcmp.eq.f32.partialorder %v2043_v58, 8.507059e+37 }
 0x57d   :  { %2986 = vtanh.f32 %v2054_v57 }
 0x57e   :  { %v4454_v27 = vadd.f32 %v2985_v37, %v1962_v11  ;;  %v2042_v11 = vsel %vm2041_vm5, %v2983_v54, %v2038_v9 }
 0x57f   :  { %v2047_v49 = vsel %vm2044_vm7, %v2046_v47, %v2042_v11  ;;  %v5012_v47 = vld [vmem:[#allocation23_spill] sm:$0xff] }
 0x580   :  { %v2108_v17 = vpack.c.bf16 %v4454_v27, %v4454_v27 }
 0x582   :  { %2117 = vmatmul.bf16.vlgmr.msrb.gmra.mxu3 %v2108_v17 }
 0x583   :  { %2326 = vmatpush.bf16.msrb.mxu3 %v4762_v40  ;;  %v2987_v43 = vpop.eup %2986 }
 0x584   :  { %v2057_v8 = vrot.slane %v2987_v43, 2 }
 0x586   :  { %v2059_v57 = vsub.f32 %v4363_v30, %v2057_v8 }
 0x587   :  { %2327 = vmatpush.bf16.msrb.mxu3 %v4763_v14  ;;  %v5009_v14 = vld [vmem:[#allocation54_spill] sm:$0xff] }
 0x588   :  { %v2061_v34 = vrot.slane %v2059_v57, 6 }
 0x58a   :  { %v2063_v53 = vmul.f32 %v2061_v34, %v2047_v49 }
 0x58b   :  { %2328 = vmatpush.bf16.msrb.mxu3 %v4764_v39 }
 0x58c   :  { %v4465_v40 = vadd.f32 %v2987_v43, %v2063_v53 }
 0x58e   :  { %v2065_v0 = vpack.c.bf16 %v4465_v40, %v4465_v40 }
 0x58f   :  { %2329 = vmatpush.bf16.msrb.mxu3 %v3469_v61  ;;  %v5003_v61 = vld [vmem:[#allocation26_spill] sm:$0xff] }
 0x590   :  { %v2067_v22 = vrot.slane %v2065_v0, 2 }
 0x592   :  { %2077 = vmatmul.bf16.vlgmr.msrb.gmra.mxu0 %v2067_v22  ;;  %2090 = vmatmul.bf16.vlgmr.msrb.gmra.mxu1 %v2067_v22 }
 0x593   :  { %2103 = vmatmul.bf16.vlgmr.msrb.gmra.mxu2 %v2067_v22  ;;  %2216 = vmatmul.bf16.vlgmr.msra.gmra.mxu3 %v2067_v22 }
 0x594   :  { %2221 = vmatpush.bf16.msrb.mxu0 %v3154_v33  ;;  %2300 = vmatpush.bf16.msrb.mxu1 %v3322_v32  ;;  %v4987_v33 = vld [vmem:[#allocation43_spill] sm:$0xff]  ;;  %v4995_v32 = vld [vmem:[#allocation38_spill] sm:$0xff] }
 0x595   :  { %2313 = vmatpush.bf16.msrb.mxu2 %v3483_v10  ;;  %2330 = vmatpush.bf16.msrb.mxu3 %v3511_v35  ;;  %v5004_v10 = vld [vmem:[#allocation41_spill] sm:$0xff]  ;;  %v5005_v35 = vld [vmem:[#allocation51_spill] sm:$0xff] }
 0x598   :  { %2222 = vmatpush.bf16.msrb.mxu0 %v3164_v36  ;;  %2301 = vmatpush.bf16.msrb.mxu1 %v3346_v44  ;;  %v4988_v36 = vld [vmem:[#allocation18_spill] sm:$0xff]  ;;  %v4996_v44 = vld [vmem:[#allocation48_spill] sm:$0xff] }
 0x599   :  { %2314 = vmatpush.bf16.msrb.mxu2 %v3525_v55  ;;  %2331 = vmatpush.bf16.msrb.mxu3 %v3543_v21  ;;  %v5006_v55 = vld [vmem:[#allocation27_spill] sm:$0xff]  ;;  %v5007_v21 = vld [vmem:[#allocation44_spill] sm:$0xff] }
 0x59c   :  { %2223 = vmatpush.bf16.msrb.mxu0 %v3192_v45  ;;  %2302 = vmatpush.bf16.msrb.mxu1 %v3359_v50  ;;  %v4989_v45 = vld [vmem:[#allocation32_spill] sm:$0xff]  ;;  %v4997_v50 = vld [vmem:[#allocation22_spill] sm:$0xff] }
 0x59d   :  { %2315 = vmatpush.bf16.msrb.mxu2 %v3556_v48  ;;  %2332 = vmatpush.bf16.msrb.mxu3 %v3575_v31  ;;  %v5008_v48 = vld [vmem:[#allocation52_spill] sm:$0xff] }
 0x5a0   :  { %2224 = vmatpush.bf16.msrb.mxu0 %v3220_v56  ;;  %2303 = vmatpush.bf16.msrb.mxu1 %v3377_v59  ;;  %v4991_v56 = vld [vmem:[#allocation19_spill] sm:$0xff] }
 0x5a1   :  { %2316 = vmatpush.bf16.msrb.mxu2 %v3592_v63  ;;  %2333 = vmatpush.bf16.msrb.mxu3 %v3610_v16  ;;  %v4998_v59 = vld [vmem:[#allocation39_spill] sm:$0xff] }
 0x5a2   :  { %2130 = vmatmul.bf16.vlgmr.msra.gmra.mxu0 %v2108_v17  ;;  %2143 = vmatmul.bf16.vlgmr.msra.gmra.mxu1 %v2108_v17  ;;  %v5011_v17 = vld [vmem:[#allocation21_spill] sm:$0xff] }
 0x5a3   :  { %2203 = vmatmul.bf16.vlgmr.msra.gmra.mxu2 %v2067_v22 }
 0x5a4   :  { %2225 = vmatpush.bf16.msrb.mxu0 %v3248_v1  ;;  %2304 = vmatpush.bf16.msrb.mxu1 %v3404_v12  ;;  %v4992_v1 = vld [vmem:[#allocation35_spill] sm:$0xff]  ;;  %v4999_v12 = vld [vmem:[#allocation49_spill] sm:$0xff] }
 0x5a5   :  { %2317 = vmatpush.bf16.msrb.mxu2 %v3632_v51  ;;  %v4990_v51 = vld [vmem:[#allocation45_spill] sm:$0xff] }
 0x5a8   :  { %2226 = vmatpush.bf16.msrb.mxu0 %v3273_v13  ;;  %2305 = vmatpush.bf16.msrb.mxu1 %v3431_v28  ;;  %v4993_v13 = vld [vmem:[#allocation47_spill] sm:$0xff]  ;;  %v5000_v28 = vld [vmem:[#allocation24_spill] sm:$0xff] }
 0x5a9   :  { %2318 = vmatpush.bf16.msrb.mxu2 %v3655_v42  ;;  %v5001_v42 = vld [vmem:[#allocation40_spill] sm:$0xff] }
 0x5ac   :  { %2227 = vmatpush.bf16.msrb.mxu0 %v3292_v20  ;;  %2306 = vmatpush.bf16.msrb.mxu1 %v3458_v52  ;;  %v4994_v20 = vld [vmem:[#allocation20_spill] sm:$0xff]  ;;  %v5002_v52 = vld [vmem:[#allocation50_spill] sm:$0xff] }
 0x5ad   :  { %2319 = vmatpush.bf16.msrb.mxu2 %v3675_v62 }
 0x5b0   :  { %2228 = vmatpush.bf16.msrb.mxu0 %v4851_v41  ;;  %2307 = vmatpush.bf16.msrb.mxu1 %v4942_v3 }
 0x5b1   :  { %2320 = vmatpush.bf16.msrb.mxu2 %v4945_v2 }
 0x5b3   :  { %2229 = vmatmul.bf16.vlgmr.msrb.gmra.mxu0 %v2067_v22 }
 0x5b4   :  { %2340 = vmatpush.bf16.msra.mxu0 %v4943_v6  ;;  %2353 = vmatpush.bf16.msra.mxu1 %v4944_v46 }
 0x5b5   :  { %2366 = vmatpush.bf16.msra.mxu2 %v4987_v33 }
 0x5b8   :  { %2341 = vmatpush.bf16.msra.mxu0 %v4988_v36  ;;  %2354 = vmatpush.bf16.msra.mxu1 %v4989_v45 }
 0x5b9   :  { %2367 = vmatpush.bf16.msra.mxu2 %v4990_v51 }
 0x5bc   :  { %2342 = vmatpush.bf16.msra.mxu0 %v4991_v56  ;;  %2355 = vmatpush.bf16.msra.mxu1 %v4992_v1 }
 0x5bd   :  { %2368 = vmatpush.bf16.msra.mxu2 %v4993_v13 }
 0x5c0   :  { %2343 = vmatpush.bf16.msra.mxu0 %v4994_v20  ;;  %2356 = vmatpush.bf16.msra.mxu1 %v4995_v32  ;;  %v4529_v20 = vld [vmem:[%s4562_s8] ss:$0 sm:$0xff] }
 0x5c1   :  { %2369 = vmatpush.bf16.msra.mxu2 %v4996_v44 }
 0x5c4   :  { %2344 = vmatpush.bf16.msra.mxu0 %v4997_v50  ;;  %2357 = vmatpush.bf16.msra.mxu1 %v4998_v59  ;;  %v5013_v59 = vld [vmem:[#allocation57_spill] sm:$0xff] }
 0x5c5   :  { %2370 = vmatpush.bf16.msra.mxu2 %v4999_v12 }
 0x5c8   :  { %2345 = vmatpush.bf16.msra.mxu0 %v5000_v28  ;;  %2358 = vmatpush.bf16.msra.mxu1 %v5001_v42 }
 0x5c9   :  { %2371 = vmatpush.bf16.msra.mxu2 %v5002_v52 }
 0x5cc   :  { %2346 = vmatpush.bf16.msra.mxu0 %v5003_v61  ;;  %2359 = vmatpush.bf16.msra.mxu1 %v5004_v10 }
 0x5cd   :  { %2372 = vmatpush.bf16.msra.mxu2 %v5005_v35 }
 0x5d0   :  { %2347 = vmatpush.bf16.msra.mxu0 %v5006_v55  ;;  %2360 = vmatpush.bf16.msra.mxu1 %v5007_v21 }
 0x5d1   :  { %2373 = vmatpush.bf16.msra.mxu2 %v5008_v48 }
 0x605   :  { %v2118_v31 = vpop.f32.mrf.mxu3 }
 0x60d   :  { %v2120_v63 = vpop.f32.mrf.mxu3 }
 0x60f   :  { %v2078_v16 = vpop.f32.mrf.mxu0  ;;  %v2091_v62 = vpop.f32.mrf.mxu1 }
 0x610   :  { %v2079_v39 = vadd.f32 %v2078_v16, %v5009_v14  ;;  %v2092_v4 = vadd.f32 %v2091_v62, %v5010_v26 }
 0x612   :  { %v2148_v41 = vadd.f32 %v2118_v31, %v2079_v39 }
 0x614   :  { %v2777_v30 = vmul.f32 -1.442695, %v2148_v41 }
 0x616   :  { %2988 = vpow2.f32 %v2777_v30  ;;  %v2104_v3 = vpop.f32.mrf.mxu2  ;;  %v2217_v6 = vpop.f32.mrf.mxu3 }
 0x617   :  { %v2080_v46 = vpop.f32.mrf.mxu0  ;;  %v2093_v2 = vpop.f32.mrf.mxu1  ;;  %v2258_v29 = vrot.slane %v2217_v6, 2  ;;  %v2105_v12 = vadd.f32 %v2104_v3, %v5013_v59 }
 0x619   :  { %v2260_v9 = vadd.f32 %v2258_v29, %v5011_v17  ;;  %v5014_v29 = vld [vmem:[#allocation46_spill] sm:$0xff] }
 0x61b   :  { %v2780_v53 = vmul.f32 -1.442695, %v2260_v9 }
 0x61c   :  { %v2989_v54 = vpop.eup %2988 }
 0x61d   :  { %v2152_v37 = vadd.f32 1.0, %v2989_v54 }
 0x61e   :  { %v2106_v38 = vpop.f32.mrf.mxu2  ;;  %v2219_v5 = vpop.f32.mrf.mxu3 }
 0x61f   :  { %2990 = vrcp.f32 %v2152_v37  ;;  %v2131_v19 = vpop.f32.mrf.mxu0  ;;  %v2144_v25 = vpop.f32.mrf.mxu1  ;;  %v2164_v33 = vand.u32 2147483648, %v2152_v37  ;;  %v2162_v45 = vand.u32 2147483647, %v2152_v37  ;;  %vm2158_vm10 = vweird.f32 %v2152_v37 }
 0x620   :  { %v2168_v23 = vadd.f32 %v2131_v19, %v2092_v4  ;;  %v2188_v32 = vadd.f32 %v4529_v20, %v2144_v25 }
 0x621   :  { %v2165_v1 = vor.u32 1.1754944e-38, %v2164_v33  ;;  %vm2163_vm12 = vcmp.eq.f32.partialorder %v2162_v45, 8.507059e+37 }
 0x622   :  { %v2778_v24 = vmul.f32 -1.442695, %v2168_v23 }
 0x624   :  { %2992 = vpow2.f32 %v2778_v24 }
 0x625   :  { %v2991_v18 = vpop.eup %2990 }
 0x626   :  { %v2204_v43 = vpop.f32.mrf.mxu2  ;;  %v2154_v15 = vmul.f32 %v2991_v18, %v2152_v37  ;;  %vm2159_vm9 = vweird.f32 %v2991_v18 }
 0x627   :  { %v2235_v58 = vrot.slane %v2204_v43, 2  ;;  %v2133_v8 = vpop.f32.mrf.mxu0  ;;  %v2146_v11 = vpop.f32.mrf.mxu1  ;;  %vm2160_vm11 = vmor %vm2158_vm10, %vm2159_vm9 }
 0x628   :  { %v2155_v57 = vsub.f32 1.0, %v2154_v15 }
 0x629   :  { %v2237_v34 = vadd.f32 %v2235_v58, %v5012_v47 }
 0x62a   :  { %v2993_v49 = vpop.eup %2992  ;;  %v2156_v22 = vmul.f32 %v2991_v18, %v2155_v57 }
 0x62b   :  { %v2172_v0 = vadd.f32 1.0, %v2993_v49  ;;  %v2779_v36 = vmul.f32 -1.442695, %v2237_v34 }
 0x62c   :  { %v2157_v51 = vadd.f32 %v2991_v18, %v2156_v22 }
 0x62d   :  { %2994 = vrcp.f32 %v2172_v0  ;;  %v2184_v48 = vand.u32 2147483648, %v2172_v0  ;;  %v2182_v16 = vand.u32 2147483647, %v2172_v0  ;;  %vm2178_vm14 = vweird.f32 %v2172_v0 }
 0x62e   :  { %2996 = vpow2.f32 %v2779_v36  ;;  %v2206_v56 = vpop.f32.mrf.mxu2  ;;  %v2161_v13 = vsel %vm2160_vm11, %v2991_v18, %v2157_v51 }
 0x62f   :  { %2998 = vpow2.f32 %v2780_v53  ;;  %v2166_v50 = vsel %vm2163_vm12, %v2165_v1, %v2161_v13  ;;  %v2185_v41 = vor.u32 1.1754944e-38, %v2184_v48  ;;  %vm2183_vm1 = vcmp.eq.f32.partialorder %v2182_v16, 8.507059e+37 }
 0x630   :  { %v2230_v44 = vpop.f32.mrf.mxu0  ;;  %v2189_v28 = vmul.f32 %v2188_v32, %v2166_v50 }
 0x631   :  { %v2280_v24 = vadd.f32 %v5014_v29, %v2230_v44 }
 0x632   :  { %v2190_v10 = vadd.f32 %v2189_v28, %v2105_v12 }
 0x633   :  { %v2995_v42 = vpop.eup %2994  ;;  %v2282_v58 = vrot.slane %v2280_v24, 2 }
 0x634   :  { %v2997_v52 = vpop.eup %2996  ;;  %v2174_v61 = vmul.f32 %v2995_v42, %v2172_v0  ;;  %3000 = vtanh.f32 %v2190_v10  ;;  %vm2179_vm13 = vweird.f32 %v2995_v42 }
 0x635   :  { %v2999_v35 = vpop.eup %2998  ;;  %v2241_v55 = vadd.f32 1.0, %v2997_v52  ;;  %vm2180_vm15 = vmor %vm2178_vm14, %vm2179_vm13 }
 0x636   :  { %v2175_v21 = vsub.f32 1.0, %v2174_v61  ;;  %v2264_v31 = vadd.f32 1.0, %v2999_v35 }
 0x637   :  { %3002 = vrcp.f32 %v2241_v55  ;;  %v2253_v5 = vand.u32 2147483648, %v2241_v55  ;;  %v2251_v23 = vand.u32 2147483647, %v2241_v55  ;;  %vm2247_vm3 = vweird.f32 %v2241_v55 }
 0x638   :  { %v2176_v63 = vmul.f32 %v2995_v42, %v2175_v21  ;;  %v2232_v62 = vpop.f32.mrf.mxu0  ;;  %3004 = vrcp.f32 %v2264_v31  ;;  %v2276_v0 = vand.u32 2147483648, %v2264_v31  ;;  %vm2270_vm9 = vweird.f32 %v2264_v31 }
 0x639   :  { %v2254_v43 = vor.u32 1.1754944e-38, %v2253_v5  ;;  %vm2252_vm5 = vcmp.eq.f32.partialorder %v2251_v23, 8.507059e+37  ;;  %v2274_v22 = vand.u32 2147483647, %v2264_v31 }
 0x63a   :  { %v2177_v39 = vadd.f32 %v2995_v42, %v2176_v63  ;;  %v3001_v30 = vpop.eup %3000  ;;  %v2277_v51 = vor.u32 1.1754944e-38, %v2276_v0 }
 0x63b   :  { %v2192_v2 = vsub.f32 %v4454_v27, %v3001_v30  ;;  %vm2275_vm11 = vcmp.eq.f32.partialorder %v2274_v22, 8.507059e+37 }
 0x63c   :  { %v2181_v3 = vsel %vm2180_vm15, %v2995_v42, %v2177_v39 }
 0x63d   :  { %v3003_v6 = vpop.eup %3002  ;;  %v2186_v46 = vsel %vm2183_vm1, %v2185_v41, %v2181_v3 }
 0x63e   :  { %v2243_v54 = vmul.f32 %v3003_v6, %v2241_v55  ;;  %v2193_v37 = vmul.f32 %v2192_v2, %v2186_v46  ;;  %v3005_v19 = vpop.eup %3004  ;;  %vm2248_vm2 = vweird.f32 %v3003_v6 }
 0x63f   :  { %v2266_v9 = vmul.f32 %v3005_v19, %v2264_v31  ;;  %vm2249_vm4 = vmor %vm2247_vm3, %vm2248_vm2  ;;  %vm2271_vm7 = vweird.f32 %v3005_v19 }
 0x640   :  { %v2244_v4 = vsub.f32 1.0, %v2243_v54  ;;  %v4534_v38 = vadd.f32 %v3001_v30, %v2193_v37  ;;  %vm2272_vm10 = vmor %vm2270_vm9, %vm2271_vm7 }
 0x641   :  { %v2267_v57 = vsub.f32 1.0, %v2266_v9 }
 0x642   :  { %v2245_v25 = vmul.f32 %v3003_v6, %v2244_v4  ;;  %v2339_v18 = vpack.c.bf16 %v4534_v38, %v4534_v38  ;;  %v2439_v22 = vrot.slane %v4534_v38, 4 }
 0x643   :  { %v2268_v34 = vmul.f32 %v3005_v19, %v2267_v57 }
 0x644   :  { %v2246_v17 = vadd.f32 %v3003_v6, %v2245_v25  ;;  %2348 = vmatmul.bf16.vlgmr.msra.gmra.mxu0 %v2339_v18 }
 0x645   :  { %v2269_v49 = vadd.f32 %v3005_v19, %v2268_v34 }
 0x646   :  { %v2250_v15 = vsel %vm2249_vm4, %v3003_v6, %v2246_v17 }
 0x647   :  { %v2255_v8 = vsel %vm2252_vm5, %v2254_v43, %v2250_v15  ;;  %v2273_v36 = vsel %vm2272_vm10, %v3005_v19, %v2269_v49 }
 0x648   :  { %v2284_v11 = vmul.f32 %v2282_v58, %v2255_v8  ;;  %v2278_v1 = vsel %vm2275_vm11, %v2277_v51, %v2273_v36 }
 0x64a   :  { %v2285_v47 = vadd.f32 %v2284_v11, %v4255_v7 }
 0x64c   :  { %3006 = vtanh.f32 %v2285_v47 }
 0x652   :  { %v3007_v53 = vpop.eup %3006 }
 0x653   :  { %v2288_v33 = vrot.slane %v3007_v53, 2 }
 0x655   :  { %v2290_v45 = vsub.f32 %v4465_v40, %v2288_v33 }
 0x657   :  { %v2292_v56 = vrot.slane %v2290_v45, 6 }
 0x659   :  { %v2294_v13 = vmul.f32 %v2292_v56, %v2278_v1 }
 0x65b   :  { %v2295_v32 = vadd.f32 %v3007_v53, %v2294_v13  ;;  %v2436_v53 = vrot.slane %v4454_v27, 6 }
 0x65d   :  { %2454 = vst [vmem:[#allocation2 - $0x6] sm:$0xc0] %v2295_v32  ;;  %v2296_v7 = vpack.c.bf16 %v2295_v32, %v2295_v32  ;;  %v2449_v45 = vsel %vm60_vm0, %v4352_v60, %v2436_v53 }
 0x65e   :  { %v2450_v51 = vsel %vm2445_vm6, %v2449_v45, %v2439_v22 }
 0x65f   :  { %v2298_v44 = vrot.slane %v2296_v7, 3 }
 0x661   :  { %2308 = vmatmul.bf16.vlgmr.msrb.gmra.mxu1 %v2298_v44  ;;  %2321 = vmatmul.bf16.vlgmr.msrb.gmra.mxu2 %v2298_v44 }
 0x662   :  { %2334 = vmatmul.bf16.vlgmr.msrb.gmra.mxu3 %v2298_v44 }
 0x671   :  { %2361 = vmatmul.bf16.vlgmr.msra.gmra.mxu1 %v2339_v18  ;;  %2374 = vmatmul.bf16.vlgmr.msra.gmra.mxu2 %v2339_v18 }
 0x6c1   :  { %v2349_v50 = vpop.f32.mrf.mxu0 }
 0x6c9   :  { %v2351_v12 = vpop.f32.mrf.mxu0 }
 0x6de   :  { %v2309_v28 = vpop.f32.mrf.mxu1 }
 0x6df   :  { %v2310_v42 = vadd.f32 %v2309_v28, %v5009_v14 }
 0x6e1   :  { %v2379_v40 = vadd.f32 %v2349_v50, %v2310_v42 }
 0x6e3   :  { %v2781_v52 = vmul.f32 -1.442695, %v2379_v40 }
 0x6e4   :  { %v2322_v61 = vpop.f32.mrf.mxu2 }
 0x6e5   :  { %3008 = vpow2.f32 %v2781_v52  ;;  %v2335_v10 = vpop.f32.mrf.mxu3  ;;  %v2323_v31 = vadd.f32 %v2322_v61, %v5010_v26 }
 0x6e6   :  { %v2311_v35 = vpop.f32.mrf.mxu1  ;;  %v2336_v24 = vadd.f32 %v2335_v10, %v5013_v59 }
 0x6eb   :  { %v3009_v55 = vpop.eup %3008 }
 0x6ec   :  { %v2383_v21 = vadd.f32 1.0, %v3009_v55  ;;  %v2324_v48 = vpop.f32.mrf.mxu2 }
 0x6ed   :  { %v2337_v63 = vpop.f32.mrf.mxu3 }
 0x6ee   :  { %3010 = vrcp.f32 %v2383_v21  ;;  %v2362_v16 = vpop.f32.mrf.mxu1  ;;  %v2395_v46 = vand.u32 2147483648, %v2383_v21  ;;  %v2393_v37 = vand.u32 2147483647, %v2383_v21  ;;  %vm2389_vm13 = vweird.f32 %v2383_v21 }
 0x6ef   :  { %v2399_v62 = vadd.f32 %v2362_v16, %v2323_v31 }
 0x6f0   :  { %v2396_v26 = vor.u32 1.1754944e-38, %v2395_v46  ;;  %vm2394_vm15 = vcmp.eq.f32.partialorder %v2393_v37, 8.507059e+37 }
 0x6f1   :  { %v2782_v39 = vmul.f32 -1.442695, %v2399_v62 }
 0x6f3   :  { %3012 = vpow2.f32 %v2782_v39 }
 0x6f4   :  { %v3011_v41 = vpop.eup %3010  ;;  %v2375_v30 = vpop.f32.mrf.mxu2 }
 0x6f5   :  { %v2385_v14 = vmul.f32 %v3011_v41, %v2383_v21  ;;  %vm2390_vm12 = vweird.f32 %v3011_v41  ;;  %v2419_v23 = vadd.f32 %v4529_v20, %v2375_v30 }
 0x6f6   :  { %v2364_v3 = vpop.f32.mrf.mxu1  ;;  %vm2391_vm14 = vmor %vm2389_vm13, %vm2390_vm12 }
 0x6f7   :  { %v2386_v6 = vsub.f32 1.0, %v2385_v14 }
 0x6f9   :  { %v3013_v2 = vpop.eup %3012  ;;  %v2387_v54 = vmul.f32 %v3011_v41, %v2386_v6 }
 0x6fa   :  { %v2403_v4 = vadd.f32 1.0, %v3013_v2 }
 0x6fb   :  { %v2388_v5 = vadd.f32 %v3011_v41, %v2387_v54 }
 0x6fc   :  { %3014 = vrcp.f32 %v2403_v4  ;;  %v2377_v19 = vpop.f32.mrf.mxu2  ;;  %v2415_v58 = vand.u32 2147483648, %v2403_v4  ;;  %v2413_v11 = vand.u32 2147483647, %v2403_v4  ;;  %vm2409_vm2 = vweird.f32 %v2403_v4 }
 0x6fd   :  { %v2392_v25 = vsel %vm2391_vm14, %v3011_v41, %v2388_v5 }
 0x6fe   :  { %v2397_v29 = vsel %vm2394_vm15, %v2396_v26, %v2392_v25  ;;  %v2416_v34 = vor.u32 1.1754944e-38, %v2415_v58  ;;  %vm2414_vm4 = vcmp.eq.f32.partialorder %v2413_v11, 8.507059e+37 }
 0x6ff   :  { %v2420_v18 = vmul.f32 %v2419_v23, %v2397_v29 }
 0x701   :  { %v2421_v17 = vadd.f32 %v2420_v18, %v2336_v24 }
 0x702   :  { %v3015_v9 = vpop.eup %3014 }
 0x703   :  { %v2405_v43 = vmul.f32 %v3015_v9, %v2403_v4  ;;  %3016 = vtanh.f32 %v2421_v17  ;;  %vm2410_vm1 = vweird.f32 %v3015_v9 }
 0x704   :  { %vm2411_vm3 = vmor %vm2409_vm2, %vm2410_vm1 }
 0x705   :  { %v2406_v15 = vsub.f32 1.0, %v2405_v43 }
 0x707   :  { %v2407_v8 = vmul.f32 %v3015_v9, %v2406_v15 }
 0x709   :  { %v3017_v57 = vpop.eup %3016  ;;  %v2408_v47 = vadd.f32 %v3015_v9, %v2407_v8 }
 0x70a   :  { %v2423_v20 = vsub.f32 %v4534_v38, %v3017_v57 }
 0x70b   :  { %v2412_v49 = vsel %vm2411_vm3, %v3015_v9, %v2408_v47 }
 0x70c   :  { %v2417_v59 = vsel %vm2414_vm4, %v2416_v34, %v2412_v49 }
 0x70d   :  { %v2424_v0 = vmul.f32 %v2423_v20, %v2417_v59 }
 0x70f   :  { %v2425_v33 = vadd.f32 %v3017_v57, %v2424_v0 }
 0x711   :  { %v2442_v36 = vrot.slane %v2425_v33, 2  ;;  %2455 = vst [vmem:[#allocation3] sm:$0x3] %v2425_v33 }
 0x713   :  { %v2451_v56 = vsel %vm2447_vm8, %v2450_v51, %v2442_v36 }
 0x714   :  { %2453 = vst [vmem:[%s4564_s9 + $0x8] sm:$0xff] %v2451_v56 }

</bundles_post_ra>
